<compile_context>
chip_gen: v7x
topology: tpu7x:2x2x1
jax: 0.10.0
libtpu: 0.0.40
codegen_flags: <defaults>
</compile_context>

<pallas_src>
import jax
import jax.numpy as jnp
from jax.experimental import pallas as pl
from jax.experimental.pallas import tpu as pltpu

ATTRIBUTE_DIM = 66
CNNFEATURE_DIM = 2048
D_FC1 = 4096

IN_DIM = CNNFEATURE_DIM + ATTRIBUTE_DIM          # 2114
IN_DIM_PAD = ((IN_DIM + 127) // 128) * 128       # 2176 (lane aligned)

N_SPLIT = 2                                      # leading "parallel" axis (v7x: 2 TCs)
TILE_N = 1024                                    # hidden-dim tile per grid step
N_INNER = D_FC1 // (N_SPLIT * TILE_N)            # 2 reduction steps per split


def _disc_kernel(x_ref, w1_ref, b1_ref, w2_ref, o_ref):
    # grid = (N_SPLIT, N_INNER); o_ref is the (B, 1) partial for this split,
    # resident across the inner "arbitrary" reduction axis.
    j = pl.program_id(1)

    @pl.when(j == 0)
    def _():
        o_ref[...] = jnp.zeros_like(o_ref)

    # fc1 tile: (B, Kpad) bf16 @ (Kpad, TILE_N) bf16 -> f32 on the MXU.
    h = jnp.dot(x_ref[...], w1_ref[...], preferred_element_type=jnp.float32)
    h = h + b1_ref[...]
    # leaky_relu, negative_slope = 0.2
    h = jnp.where(h > 0, h, 0.2 * h)
    # fc2 partial contraction against a lane-dense (1, TILE_N) W2 row:
    # VPU multiply + lane reduction (no degenerate N=1 MXU matmul).
    o_ref[...] += jnp.sum(h * w2_ref[...], axis=-1, keepdims=True)


def prepare_params(w1, b1, w2, b2):
    """One-time parameter prep (call OUTSIDE the jitted forward).

    w1: (2114, 4096), b1: (4096,), w2: (4096, 1), b2: (1,)
    Returns (w1_padded_bf16, b1_row_f32, w2_row_f32, b2_f32).
    """
    w1p = jnp.pad(w1, ((0, IN_DIM_PAD - IN_DIM), (0, 0))).astype(jnp.bfloat16)
    b1r = b1.reshape(1, D_FC1).astype(jnp.float32)
    w2r = w2.reshape(1, D_FC1).astype(jnp.float32)     # transpose of (4096, 1) vector
    b2r = jnp.asarray(b2, jnp.float32).reshape(1, 1)
    return w1p, b1r, w2r, b2r


@jax.jit
def discriminator_forward(cnn_features, attributes, w1p, b1r, w2r, b2r):
    """cnn_features: (B, 2048), attributes: (B, 66) -> (B, 1) float32."""
    B = cnn_features.shape[0]

    # Glue: concat + zero-pad x to the lane-aligned width (small: B x 2176 bf16).
    x = jnp.concatenate(
        [cnn_features.astype(jnp.bfloat16),
         attributes.astype(jnp.bfloat16),
         jnp.zeros((B, IN_DIM_PAD - IN_DIM), jnp.bfloat16)],
        axis=1,
    )

    cost = pl.CostEstimate(
        flops=2 * B * IN_DIM_PAD * D_FC1 + 4 * B * D_FC1,
        transcendentals=0,
        bytes_accessed=(IN_DIM_PAD * D_FC1 * 2)      # W1 (bf16)
        + (B * IN_DIM_PAD * 2)                       # x (bf16)
        + (2 * D_FC1 * 4)                            # b1 + w2 rows (f32)
        + (N_SPLIT * B * 4),                         # partial outputs
    )

    grid_spec = pltpu.PrefetchScalarGridSpec(
        num_scalar_prefetch=0,
        grid=(N_SPLIT, N_INNER),
        in_specs=[
            pl.BlockSpec((B, IN_DIM_PAD), lambda p, j: (0, 0)),       # x (resident)
            pl.BlockSpec((IN_DIM_PAD, TILE_N),
                         lambda p, j: (0, p * N_INNER + j)),          # W1 tile (bf16)
            pl.BlockSpec((1, TILE_N), lambda p, j: (0, p * N_INNER + j)),  # b1 tile
            pl.BlockSpec((1, TILE_N), lambda p, j: (0, p * N_INNER + j)),  # W2 row tile
        ],
        out_specs=pl.BlockSpec((None, B, 1), lambda p, j: (p, 0, 0)),  # per-split partial
    )

    partials = pl.pallas_call(
        _disc_kernel,
        out_shape=jax.ShapeDtypeStruct((N_SPLIT, B, 1), jnp.float32),
        grid_spec=grid_spec,
        compiler_params=pltpu.CompilerParams(
            dimension_semantics=("parallel", "arbitrary"),
        ),
        cost_estimate=cost,
    )(x, w1p, b1r, w2r)

    return partials.sum(axis=0) + b2r


def _reference_forward(cnn_features, attributes, w1, b1, w2, b2):
    # Matches the kernel's numerics: bf16-rounded x / W1 with f32 accumulation.
    x = jnp.concatenate([cnn_features, attributes], axis=1)
    x = x.astype(jnp.bfloat16).astype(jnp.float32)
    w1q = w1.astype(jnp.bfloat16).astype(jnp.float32)
    h = jnp.dot(x, w1q, precision=jax.lax.Precision.HIGHEST) + b1.reshape(1, -1)
    h = jnp.where(h > 0, h, 0.2 * h)
    return jnp.dot(h, w2, precision=jax.lax.Precision.HIGHEST) + b2.reshape(1, 1)


if __name__ == "__main__":
    key = jax.random.PRNGKey(0)
    k_cnn, k_attr, k_w1, k_b1, k_w2, k_b2 = jax.random.split(key, 6)

    B = 8  # small batch
    cnn_features = jax.random.normal(k_cnn, (B, CNNFEATURE_DIM), dtype=jnp.float32)
    attributes = jax.random.normal(k_attr, (B, ATTRIBUTE_DIM), dtype=jnp.float32)

    # Deterministic synthetic parameters (nn.Linear shapes, stored transposed).
    w1 = jax.random.normal(k_w1, (IN_DIM, D_FC1), dtype=jnp.float32) * 0.02
    b1 = jax.random.normal(k_b1, (D_FC1,), dtype=jnp.float32) * 0.02
    w2 = jax.random.normal(k_w2, (D_FC1, 1), dtype=jnp.float32) * 0.02
    b2 = jax.random.normal(k_b2, (1,), dtype=jnp.float32) * 0.02

    # One-time parameter prep (padding / bf16 cast happens here, NOT per call).
    w1p, b1r, w2r, b2r = prepare_params(w1, b1, w2, b2)

    out = discriminator_forward(cnn_features, attributes, w1p, b1r, w2r, b2r)
    out = jax.block_until_ready(out)

    ref = _reference_forward(cnn_features, attributes, w1, b1, w2, b2)
    assert out.shape == (B, 1)
    assert jnp.allclose(out, ref, atol=1e-3, rtol=1e-3), (out, ref)

    print("KERNEL_OK")
</pallas_src>

<mosaic_0001>
module attributes {stable_mosaic.version = 11 : i64} {
  func.func @_disc_kernel(%arg0: i32, %arg1: i32, %arg2: memref<8x2176xbf16, #tpu.memory_space<vmem>>, %arg3: memref<2176x1024xbf16, #tpu.memory_space<vmem>>, %arg4: memref<1x1024xf32, #tpu.memory_space<vmem>>, %arg5: memref<1x1024xf32, #tpu.memory_space<vmem>>, %arg6: memref<1x8x1xf32, #tpu.memory_space<vmem>>) attributes {dimension_semantics = [#tpu.dimension_semantics<parallel>, #tpu.dimension_semantics<arbitrary>], iteration_bounds = array<i64: 2, 2>, scalar_prefetch = 0 : i64, scratch_operands = 0 : i64, tpu.core_type = #tpu.core_type<tc>, window_params = [{pipeline_mode = #tpu.pipeline_mode<synchronous>, transform_indices = @transform_0, window_bounds = array<i64: 8, 2176>}, {transform_indices = @transform_1, window_bounds = array<i64: 2176, 1024>}, {transform_indices = @transform_2, window_bounds = array<i64: 1, 1024>}, {transform_indices = @transform_3, window_bounds = array<i64: 1, 1024>}, {transform_indices = @transform_4, window_bounds = array<i64: 1, 8, 1>}]} {
    %c0_i32 = arith.constant 0 : i32
    %0 = arith.cmpi eq, %arg1, %c0_i32 : i32
    %1 = arith.extui %0 : i1 to i32
    %c0_i32_0 = arith.constant 0 : i32
    %2 = arith.cmpi ne, %1, %c0_i32_0 : i32
    scf.if %2 {
      %cst_17 = arith.constant 0.000000e+00 : f32
      %25 = vector.broadcast %cst_17 : f32 to vector<8x1xf32>
      %c0_18 = arith.constant 0 : index
      %c0_19 = arith.constant 0 : index
      %c0_20 = arith.constant 0 : index
      %26 = vector.load %arg6[%c0_18, %c0_19, %c0_20] : memref<1x8x1xf32, #tpu.memory_space<vmem>>, vector<1x8x1xf32>
      %27 = vector.shape_cast %26 : vector<1x8x1xf32> to vector<8x1xf32>
      %28 = vector.shape_cast %25 : vector<8x1xf32> to vector<1x8x1xf32>
      tpu.vector_store %arg6[%c0_18, %c0_19, %c0_20], %28 {strides = array<i32>} : memref<1x8x1xf32, #tpu.memory_space<vmem>>, vector<1x8x1xf32>,
    } else {
    }
    %c0 = arith.constant 0 : index
    %c0_1 = arith.constant 0 : index
    %3 = vector.load %arg2[%c0, %c0_1] : memref<8x2176xbf16, #tpu.memory_space<vmem>>, vector<8x2176xbf16>
    %c0_2 = arith.constant 0 : index
    %c0_3 = arith.constant 0 : index
    %4 = vector.load %arg3[%c0_2, %c0_3] : memref<2176x1024xbf16, #tpu.memory_space<vmem>>, vector<2176x1024xbf16>
    %cst = arith.constant dense<0.000000e+00> : vector<8x1024xf32>
    %5 = tpu.matmul %3, %4, %cst {dimension_numbers = #tpu.dot_dimension_numbers<[1], [0], [0], [1], [0, 0, 1, 1], [], []>} : vector<8x2176xbf16>, vector<2176x1024xbf16>, vector<8x1024xf32> -> vector<8x1024xf32>
    %c0_4 = arith.constant 0 : index
    %c0_5 = arith.constant 0 : index
    %6 = vector.load %arg4[%c0_4, %c0_5] : memref<1x1024xf32, #tpu.memory_space<vmem>>, vector<1x1024xf32>
    %7 = vector.broadcast %6 : vector<1x1024xf32> to vector<8x1024xf32>
    %8 = arith.addf %5, %7 : vector<8x1024xf32>
    %cst_6 = arith.constant 0.000000e+00 : f32
    %9 = vector.broadcast %cst_6 : f32 to vector<8x1024xf32>
    %10 = arith.cmpf ogt, %8, %9 : vector<8x1024xf32>
    %cst_7 = arith.constant 2.000000e-01 : f32
    %11 = vector.broadcast %cst_7 : f32 to vector<8x1024xf32>
    %12 = arith.mulf %11, %8 : vector<8x1024xf32>
    %13 = arith.select %10, %8, %12 : vector<8x1024xi1>, vector<8x1024xf32>
    %c0_8 = arith.constant 0 : index
    %c0_9 = arith.constant 0 : index
    %c0_10 = arith.constant 0 : index
    %14 = vector.load %arg6[%c0_8, %c0_9, %c0_10] : memref<1x8x1xf32, #tpu.memory_space<vmem>>, vector<1x8x1xf32>
    %15 = vector.shape_cast %14 : vector<1x8x1xf32> to vector<8x1xf32>
    %c0_11 = arith.constant 0 : index
    %c0_12 = arith.constant 0 : index
    %16 = vector.load %arg5[%c0_11, %c0_12] : memref<1x1024xf32, #tpu.memory_space<vmem>>, vector<1x1024xf32>
    %17 = vector.broadcast %16 : vector<1x1024xf32> to vector<8x1024xf32>
    %18 = arith.mulf %13, %17 : vector<8x1024xf32>
    %cst_13 = arith.constant dense<0.000000e+00> : vector<8xf32>
    %19 = vector.multi_reduction <add>, %18, %cst_13 [1] : vector<8x1024xf32> to vector<8xf32>
    %20 = vector.shape_cast %19 : vector<8xf32> to vector<8x1xf32>
    %21 = arith.addf %15, %20 : vector<8x1xf32>
    %c0_14 = arith.constant 0 : index
    %c0_15 = arith.constant 0 : index
    %c0_16 = arith.constant 0 : index
    %22 = vector.load %arg6[%c0_14, %c0_15, %c0_16] : memref<1x8x1xf32, #tpu.memory_space<vmem>>, vector<1x8x1xf32>
    %23 = vector.shape_cast %22 : vector<1x8x1xf32> to vector<8x1xf32>
    %24 = vector.shape_cast %21 : vector<8x1xf32> to vector<1x8x1xf32>
    tpu.vector_store %arg6[%c0_14, %c0_15, %c0_16], %24 {strides = array<i32>} : memref<1x8x1xf32, #tpu.memory_space<vmem>>, vector<1x8x1xf32>,
    return
  }
  func.func @transform_0(%arg0: i32, %arg1: i32) -> (i32, i32) {
    %c0_i32 = arith.constant 0 : i32
    %c0_i32_0 = arith.constant 0 : i32
    %c0_i32_1 = arith.constant 0 : i32
    return %c0_i32, %c0_i32_0 : i32, i32
  }
  func.func @transform_1(%arg0: i32, %arg1: i32) -> (i32, i32) {
    %c2_i32 = arith.constant 2 : i32
    %0 = arith.muli %arg0, %c2_i32 : i32
    %1 = arith.addi %0, %arg1 : i32
    %c0_i32 = arith.constant 0 : i32
    %c0_i32_0 = arith.constant 0 : i32
    return %c0_i32, %1 : i32, i32
  }
  func.func @transform_2(%arg0: i32, %arg1: i32) -> (i32, i32) {
    %c2_i32 = arith.constant 2 : i32
    %0 = arith.muli %arg0, %c2_i32 : i32
    %1 = arith.addi %0, %arg1 : i32
    %c0_i32 = arith.constant 0 : i32
    %c0_i32_0 = arith.constant 0 : i32
    return %c0_i32, %1 : i32, i32
  }
  func.func @transform_3(%arg0: i32, %arg1: i32) -> (i32, i32) {
    %c2_i32 = arith.constant 2 : i32
    %0 = arith.muli %arg0, %c2_i32 : i32
    %1 = arith.addi %0, %arg1 : i32
    %c0_i32 = arith.constant 0 : i32
    %c0_i32_0 = arith.constant 0 : i32
    return %c0_i32, %1 : i32, i32
  }
  func.func @transform_4(%arg0: i32, %arg1: i32) -> (i32, i32, i32) {
    %c0_i32 = arith.constant 0 : i32
    %c0_i32_0 = arith.constant 0 : i32
    %c0_i32_1 = arith.constant 0 : i32
    return %arg0, %c0_i32, %c0_i32_0 : i32, i32, i32
  }
}

</mosaic_0001>

<bundles_post_ra>
// kernel: discriminator_forward.1
= control target key start
LH: loop header
LB: loop body
LE: loop exit
PB: predicated region body
PF: predicated region fallthrough
CT: control target
= control target key end

     0   :  { %s11762_s0 = inlined_call_operand.vmem [shape: bf16[8,2176], index: 0, kind: input, shape index: {}]   ;;  %s11763_s1 = inlined_call_operand.hbm [shape: bf16[2176,4096], index: 1, kind: input, shape index: {}]   ;;  %s11764_s2 = inlined_call_operand.hbm [shape: f32[1,4096], index: 2, kind: input, shape index: {}]   ;;  %s11765_s3 = inlined_call_operand.hbm [shape: f32[1,4096], index: 3, kind: input, shape index: {}]   ;;  %s11766_s4 = inlined_call_operand.vmem [shape: f32[2,8,1], index: 4, kind: output, shape index: {}]  }
   0x1   :  { %11775 = sst [smem:[#allocation13_spill]] %s11763_s1 }
   0x2   :  { %11776 = sst [smem:[#allocation14_spill]] %s11764_s2 }
   0x3   :  { %9 = vsyncpa [#allocation3], 0 }
   0x4   :  { %11 = vsyncpa [#allocation3 + $0x1], 0 }
   0x5   :  { %12 = vsyncpa [#allocation5], 0 }
   0x6   :  { %14 = vsyncpa [#allocation5 + $0x1], 0  ;;  %s10237_s15 = smov 0   ;;  %s10239_s16 = smov 0  }
   0x7   :  { %s10241_s17 = smov 0   ;;  %s10243_s18 = smov 0  }
   0x8   :  { %s10245_s19 = smov 0   ;;  %s10247_s20 = smov 0  }
   0x9   :  { %s10249_s21 = smov 0   ;;  %s10251_s22 = smov 0  }
   0xa LB: > { %11777 = sst [smem:[#allocation9_spill]] %s10194_s20  ;;  %s11767_s23 = sadd.s32 4294967295, %s10202_s22   ;;  %s10202_s22 = sphi %s10251_s22, %s20_s22   ;;  %s10198_s21 = sphi %s10249_s21, %s11796_s21   ;;  %s10194_s20 = sphi %s10247_s20, %s11795_s20   ;;  %s10190_s19 = sphi %s10245_s19, %s11794_s19   ;;  %s10186_s18 = sphi %s10243_s18, %s11793_s18   ;;  %s10182_s17 = sphi %s10241_s17, %s11799_s17   ;;  %s10178_s16 = sphi %s10239_s16, %s11798_s16   ;;  %s10174_s15 = sphi %s10237_s15, %s11797_s15  }
   0xb   : > { %11778 = sst [smem:[#allocation10_spill]] %s10198_s21  ;;  %s29_s24 = sadd.s32 1, %s10194_s20 }
   0xc   : > { %p30_p0 = scmp.ge.s32.totalorder %s29_s24, 2  ;;  %s32_s25 = sadd.s32 1, %s10198_s21 }
   0xd   : > { %s8664_s26 = sshll.u32 %s10198_s21, 1  ;;  %s64_s27 = sadd.s32 1, %s10182_s17 }
   0xe   : > { %s11801_s24 = smov (%p30_p0, %s29_s24), 0  ;;  %s11803_s25 = smov (!%p30_p0, %s32_s25), %s10198_s21 }
   0xf   : > { %11779 = sst [smem:[#allocation11_spill]] %s11801_s24  ;;  %s10284_s28 = sadd.s32 %s10194_s20, %s8664_s26 }
  0x10   : > { %p71_p1 = scmp.ne.s32.totalorder %s10182_s17, %s10178_s16  ;;  %p34_p2 = scmp.ge.s32.totalorder %s11803_s25, 2 }
  0x11   : > { %p72_p3 = scmp.eq.s32.totalorder %s10202_s22, 0  ;;  %p77_p4 = scmp.ne.s32.totalorder %s10178_s16, %s10174_s15 }
  0x12   : > { %p78_p5 = scmp.eq.s32.totalorder %s11767_s23, 0  ;;  %s11805_s25 = smov (%p34_p2, %s11803_s25), 0 }
  0x13   : > { %11780 = sst [smem:[#allocation12_spill]] %s11805_s25  ;;  %p10294_p6 = por %p72_p3, %p71_p1 }
  0x14   : > { %p10298_p7 = por %p78_p5, %p77_p4  ;;  %s8665_s5 = sshll.u32 %s11805_s25, 1 }
  0x15   : > { %s60_s6 = sadd.s32 %s8665_s5, %s11801_s24  ;;  %p9952_p8 = scmp.lt.s32.totalorder %s10202_s22, 4 }
  0x16   : > { %s11782_s30 = scalar_select %p10298_p7, 1, 0 }
  0x17   : > { %s61_s7 = ssub.s32 %s10284_s28, %s60_s6  ;;  %s10307_s8 = sand.u32 1, %s10182_s17  }
  0x18   : > { %p62_p9 = scmp.eq.s32.totalorder %s61_s7, 0  ;;  %s9934_s9 = smul.u32 8704, %s10307_s8 }
  0x19   : > { %s9795_s10 = sshll.u32 %s10284_s28, 9  ;;  %s11783_s1 = sld [smem:[#allocation13_spill]] }
  0x1a   : > { %s10312_s11 = scalar_select %p62_p9, %s10182_s17, %s64_s27  }
  0x1b   : > { %s194_s15 = scalar_lea.vmem [#allocation2], %s9934_s9  ;;  %p10321_p10 = pnand %p9952_p8, %p10294_p6 }
  0x1c   : > { %s203_s26 = sshll.u32 %s194_s15, 4  ;;  %s213_s6 = sand.u32 1, %s10202_s22   ;;  %s10325_s26 = int_to_ptr.vmem [resolvable:$true] %s203_s26 }
  0x1d   : > { %s11784_s5 = scalar_select %p10321_p10, 1, 0 }
  0x1e   : > { %s11770_s7 = sshll.u32 %s10307_s8, 3  ;;  %s9796_s23 = sshll.u32 %s10284_s28, 7 }
  0x1f   : > { %s10317_s14 = scalar_lea.hbm %s11783_s1, %s9795_s10  ;;  %s11785_s2 = sld [smem:[#allocation14_spill]] }
  0x20   : > { %s217_s29 = scalar_lea.vmem [#allocation4], %s11770_s7  ;;  %s10342_s13 = scalar_lea.hbm %s11765_s3, %s9796_s23 }
  0x21   : > { %s227_s9 = sshll.u32 %s217_s29, 4  ;;  %s10344_s28 = scalar_lea.sflag [#allocation5], %s213_s6  ;;  %s10337_s9 = int_to_ptr.vmem [resolvable:$true] %s227_s9 }
  0x22   : > { %p10350_p12 = pneg %p10321_p10 }
  0x25   : > { %s10333_s24 = scalar_lea.hbm %s11785_s2, %s9796_s23  ;;  %s10047_s7 = scalar_lea.hbm %s11785_s2, 512 }
  0x26   : > { %s10042_s15 = scalar_lea.hbm %s10333_s24, 128  ;;  %p10048_p1 = scmp.lt.u32.totalorder %s10333_s24, %s11785_s2 }
  0x27   : > { %p10043_p11 = scmp.ne.s32.totalorder %s10333_s24, %s10042_s15  ;;  %p10049_p2 = scmp.lt.u32.totalorder %s10047_s7, %s10042_s15 }
  0x28   : > { %p10051_p4 = scmp.lt.u32.totalorder %s10042_s15, %s10333_s24 }
  0x29   : > { %p10045_p13 = pnand %p10350_p12, %p10043_p11  ;;  %p10050_p3 = por %p10049_p2, %p10048_p1 }
  0x2b   : > { %p10046_p0 = pneg %p10045_p13  ;;  %p10052_p5 = por %p10051_p4, %p10050_p3 }
  0x2d   : > { %p10053_p6 = pnand %p10052_p5, %p10046_p0 }
  0x2f   : > { %10056 = shalt.err (!%p10053_p6)
}
  0x30   : > { %s10057_s6 = scalar_lea.vmem %s10337_s9, 128  ;;  %s10204_s12 = smov [#allocation4]  }
  0x31   : > { %p10058_p8 = scmp.ne.s32.totalorder %s10337_s9, %s10057_s6  ;;  %s10062_s27 = sshll.u32 %s10204_s12, 4  ;;  %s10063_s27 = int_to_ptr.vmem [resolvable:$false] %s10062_s27 }
  0x32   : > { %s10064_s29 = scalar_lea.vmem %s10063_s27, 256  ;;  %p10065_p13 = scmp.lt.s32.totalorder %s10337_s9, %s10063_s27 }
  0x33   : > { %p10060_p9 = pnand %p10058_p8, %p10350_p12  ;;  %p10066_p7 = scmp.lt.s32.totalorder %s10064_s29, %s10057_s6 }
  0x35   : > { %p10061_p11 = pneg %p10060_p9  ;;  %p10067_p1 = por %p10066_p7, %p10065_p13 }
  0x37   : > { %p10068_p2 = pnand %p10067_p1, %p10061_p11 }
  0x39   : > { %10071 = shalt.err (!%p10068_p2)
}
  0x3a   : > { %9948 = dma.hbm_to_vmem [thread:$0]  (!%p10321_p10), %s10333_s24, 128, %s10337_s9, %s10344_s28  }
  0x3b   : > { %p8683_p0 = scmp.ge.s32.totalorder %s10202_s22, 1  ;;  %p253_p3 = scmp.lt.s32.totalorder %s10202_s22, 5 }
  0x3c   : > { %s191_s15 = scalar_lea.sflag [#allocation3], %s10307_s8  ;;  %s10072_s10 = scalar_lea.hbm %s10317_s14, 139264 }
  0x3d   : > { %p10376_p4 = pnand %p8683_p0, %p253_p3  ;;  %p10073_p7 = scmp.ne.s32.totalorder %s10317_s14, %s10072_s10 }
  0x3e   : > { %s10077_s12 = scalar_lea.hbm %s11783_s1, 557056  ;;  %p10078_p8 = scmp.lt.u32.totalorder %s10317_s14, %s11783_s1 }
  0x3f   : > { %s11787_s7 = scalar_select %p10376_p4, 1, 0 }
  0x40   : > { %p10075_p5 = pnand %p10073_p7, %p10350_p12  ;;  %p10079_p9 = scmp.lt.u32.totalorder %s10077_s12, %s10072_s10 }
  0x41   : > { %p10081_p13 = scmp.lt.u32.totalorder %s10072_s10, %s10317_s14 }
  0x42   : > { %p10076_p6 = pneg %p10075_p5  ;;  %p10080_p11 = por %p10079_p9, %p10078_p8 }
  0x44   : > { %p10082_p1 = por %p10081_p13, %p10080_p11 }
  0x46   : > { %p10083_p2 = pnand %p10082_p1, %p10076_p6 }
  0x48   : > { %10086 = shalt.err (!%p10083_p2)
}
  0x49   : > { %s10087_s24 = scalar_lea.vmem %s10325_s26, 139264  ;;  %s10205_s9 = smov [#allocation2]  }
  0x4a   : > { %p10088_p0 = scmp.ne.s32.totalorder %s10325_s26, %s10087_s24  ;;  %s10092_s23 = sshll.u32 %s10205_s9, 4  ;;  %s10093_s23 = int_to_ptr.vmem [resolvable:$false] %s10092_s23 }
  0x4b   : > { %s10094_s6 = scalar_lea.vmem %s10093_s23, 278528  ;;  %p10095_p5 = scmp.lt.s32.totalorder %s10325_s26, %s10093_s23 }
  0x4c   : > { %p10090_p3 = pnand %p10088_p0, %p10350_p12  ;;  %p10096_p4 = scmp.lt.s32.totalorder %s10094_s6, %s10087_s24 }
  0x4e   : > { %p10091_p7 = pneg %p10090_p3  ;;  %p10097_p8 = por %p10096_p4, %p10095_p5 }
  0x50   : > { %p10098_p9 = pnand %p10097_p8, %p10091_p7 }
  0x52   : > { %10101 = shalt.err (!%p10098_p9)
}
  0x53   : > { %s10206_s10 = smov 2048   ;;  %s10207_s12 = smov 512  }
  0x54   : > { %s10208_s27 = smov 32   ;;  %s11788_s29 = sshll.u32 %s10307_s8, 3 }
  0x55   : > { %9945 = dma.hbm_to_vmem [thread:$0]  (!%p10321_p10), %s10317_s14, 139264, %s10325_s26, %s191_s15, %s10206_s10, %s10207_s12, %s10208_s27  }
  0x56   : > { %s238_s24 = scalar_lea.vmem [#allocation6], %s11788_s29  ;;  %s10102_s23 = scalar_lea.hbm %s10342_s13, 128 }
  0x57   : > { %s248_s9 = sshll.u32 %s238_s24, 4  ;;  %p10103_p4 = scmp.ne.s32.totalorder %s10342_s13, %s10102_s23  ;;  %s249_s9 = int_to_ptr.vmem [resolvable:$true] %s248_s9 }
  0x58   : > { %s10107_s2 = scalar_lea.hbm %s11765_s3, 512  ;;  %p10108_p13 = scmp.lt.u32.totalorder %s10342_s13, %s11765_s3 }
  0x59   : > { %p10105_p6 = pnand %p10103_p4, %p10350_p12  ;;  %p10109_p1 = scmp.lt.u32.totalorder %s10107_s2, %s10102_s23 }
  0x5a   : > { %p10111_p0 = scmp.lt.u32.totalorder %s10102_s23, %s10342_s13 }
  0x5b   : > { %p10106_p11 = pneg %p10105_p6  ;;  %p10110_p2 = por %p10109_p1, %p10108_p13 }
  0x5d   : > { %p10112_p3 = por %p10111_p0, %p10110_p2 }
  0x5f   : > { %p10113_p7 = pnand %p10112_p3, %p10106_p11 }
  0x61   : > { %10116 = shalt.err (!%p10113_p7)
}
  0x62   : > { %s10117_s8 = scalar_lea.vmem %s249_s9, 128  ;;  %s10209_s14 = smov [#allocation6]  }
  0x63   : > { %p10118_p5 = scmp.ne.s32.totalorder %s249_s9, %s10117_s8  ;;  %s10122_s26 = sshll.u32 %s10209_s14, 4  ;;  %s10123_s26 = int_to_ptr.vmem [resolvable:$false] %s10122_s26 }
  0x64   : > { %s10124_s1 = scalar_lea.vmem %s10123_s26, 256  ;;  %p10125_p4 = scmp.lt.s32.totalorder %s249_s9, %s10123_s26 }
  0x65   : > { %p10120_p8 = pnand %p10118_p5, %p10350_p12  ;;  %p10126_p6 = scmp.lt.s32.totalorder %s10124_s1, %s10117_s8 }
  0x67   : > { %p10121_p9 = pneg %p10120_p8  ;;  %p10127_p10 = por %p10126_p6, %p10125_p4 }
  0x69   : > { %p10128_p1 = pnand %p10127_p10, %p10121_p9 }
  0x6b   : > { %10131 = shalt.err (!%p10128_p1)
}
  0x6c   : > { %p11789_p13 = scmp.ne.s32.totalorder %s11784_s5, 0  ;;  %p11790_p11 = scmp.ne.s32.totalorder %s11787_s7, 0 }
  0x6d   : > { %s259_s2 = sand.u32 (!%p11790_p11), 1, %s10178_s16   ;;  %p11791_p12 = scmp.ne.s32.totalorder (!%p11790_p11), %s11782_s30, 0 }
  0x6e   : > { %9951 = dma.hbm_to_vmem [thread:$0]  (!%p11789_p13), %s10342_s13, 128, %s249_s9, %s10344_s28  }
  0x6f   : > { %257 = sbr.rel (%p11790_p11) target bundleno = 1597 (0x63d), region = 36  ;;  %s260_s21 = scalar_lea.sflag (!%p11790_p11), [#allocation3], %s259_s2 }
  0x70   : > { %s9935_s20 = smul.u32 (!%p11790_p11), 8704, %s259_s2 }
  0x72   : > { %s10427_s25 = scalar_lea.vmem (!%p11790_p11), [#allocation2], %s9935_s20 }
  0x76   : > { %10165 = dma.done.wait (%p11791_p12), %s260_s21, 139264  }
  0x77   : > { %10167 = vsyncadd (%p11791_p12), %s260_s21, 4294828032  ;;  %s11792_s5 = sadd.s32 4294967295, %s10202_s22   ;;  %s8684_s13 = sshll.u32 %s259_s2, 3 }
  0x78   : > { %s268_s15 = sand.u32 1, %s11792_s5   ;;  %s10435_s7 = scalar_lea.vmem [#allocation4], %s8684_s13 }
  0x79   : > { %s269_s28 = scalar_lea.sflag [#allocation5], %s268_s15 }
  0x7a   : > { %10169 = dma.done.wait (%p11791_p12), %s269_s28, 256  }
  0x7b   : > { %10171 = vsyncadd (%p11791_p12), %s269_s28, 4294967040  ;;  %p324_p10 = scmp.lt.s32.totalorder %s10190_s19, 1  ;;  %s10448_s24 = scalar_lea.vmem [#allocation6], %s8684_s13 }
  0x7c   : > { %p8687_p2 = scmp.ne.s32.totalorder %s10186_s18, 0 }
  0x7d   : > { %s11807_s19 = smov (!%p324_p10, %s10190_s19), 1  ;;  %vm333_vm0 = vcmask (!%p8687_p2), 7168   ;;  %v10210_v0 = vmov (!%p8687_p2), 0.0  }
  0x7e   : > { %s8686_s10 = sshll.u32 %s11807_s19, 3  ;;  %332 = sbr.rel (%p8687_p2) target bundleno = 133 (0x85), region = 52 }
  0x7f   : > { %s10446_s29 = scalar_lea.vmem %s11766_s4, %s8686_s10 }
  0x80   : > { %334 = vst.msk [vmem:[%s10446_s29] sm:$0xff] (!%p8687_p2), %vm333_vm0, %v10210_v0 }
  0x85 PF: > { %v344_v1 = vld [vmem:[%s10427_s25] sm:$0xff]  ;;  %v345_v3 = vld [vmem:[%s10427_s25 + $0x8] sm:$0xff]  ;;  %vm8535_vm9 = vcmask 7168  }
  0x86   : > { %v348_v2 = vld [vmem:[%s10427_s25 + $0x20] sm:$0xff]  ;;  %v349_v5 = vld [vmem:[%s10427_s25 + $0x28] sm:$0xff] }
  0x87   : > { %v8706_v4 = vcombine.high %v344_v1, %v348_v2  ;;  %v8705_v6 = vcombine.low %v344_v1, %v348_v2  ;;  %v352_v7 = vld [vmem:[%s10427_s25 + $0x40] sm:$0xff]  ;;  %v8708_v9 = vcombine.high %v345_v3, %v349_v5  ;;  %v8707_v10 = vcombine.low %v345_v3, %v349_v5  ;;  %v353_v12 = vld [vmem:[%s10427_s25 + $0x48] sm:$0xff] }
  0x88   : > { %v356_v8 = vld [vmem:[%s10427_s25 + $0x60] sm:$0xff]  ;;  %v357_v13 = vld [vmem:[%s10427_s25 + $0x68] sm:$0xff] }
  0x89   : > { %v8714_v11 = vcombine.high %v352_v7, %v356_v8  ;;  %v360_v14 = vld [vmem:[%s10427_s25 + $0x80] sm:$0xff]  ;;  %6974 = vmatprep.subr.bf16.mxu0 %v8706_v4  ;;  %v8716_v15 = vcombine.high %v353_v12, %v357_v13  ;;  %v361_v17 = vld [vmem:[%s10427_s25 + $0x88] sm:$0xff]  ;;  %7343 = vmatprep.subr.bf16.mxu1 %v8708_v9  ;;  %v8713_v19 = vcombine.low %v352_v7, %v356_v8 }
  0x8a   : > { %v364_v16 = vld [vmem:[%s10427_s25 + $0xa0] sm:$0xff]  ;;  %v365_v18 = vld [vmem:[%s10427_s25 + $0xa8] sm:$0xff]  ;;  %6975 = vmatpush1.bf16.msra.mxu0 %v8705_v6  ;;  %7344 = vmatpush1.bf16.msra.mxu1 %v8707_v10  ;;  %v8715_v20 = vcombine.low %v353_v12, %v357_v13 }
  0x8b   : > { %6976 = vmatprep.subr.bf16.mxu0 %v8714_v11  ;;  %v8722_v21 = vcombine.high %v360_v14, %v364_v16  ;;  %7345 = vmatprep.subr.bf16.mxu1 %v8716_v15  ;;  %v8724_v22 = vcombine.high %v361_v17, %v365_v18  ;;  %v368_v23 = vld [vmem:[%s10427_s25 + $0xc0] sm:$0xff]  ;;  %v369_v25 = vld [vmem:[%s10427_s25 + $0xc8] sm:$0xff]  ;;  %v8721_v27 = vcombine.low %v360_v14, %v364_v16 }
  0x8c   : > { %v372_v24 = vld [vmem:[%s10427_s25 + $0xe0] sm:$0xff]  ;;  %v373_v26 = vld [vmem:[%s10427_s25 + $0xe8] sm:$0xff]  ;;  %v8723_v28 = vcombine.low %v361_v17, %v365_v18 }
  0x8d   : > { %v8730_v29 = vcombine.high %v368_v23, %v372_v24  ;;  %v8732_v30 = vcombine.high %v369_v25, %v373_v26  ;;  %v376_v31 = vld [vmem:[%s10427_s25 + $0x100] sm:$0xff]  ;;  %v377_v33 = vld [vmem:[%s10427_s25 + $0x108] sm:$0xff]  ;;  %v8729_v35 = vcombine.low %v368_v23, %v372_v24  ;;  %v8731_v36 = vcombine.low %v369_v25, %v373_v26 }
  0x8e   : > { %6977 = vmatpush1.bf16.msra.mxu0 %v8713_v19  ;;  %7346 = vmatpush1.bf16.msra.mxu1 %v8715_v20  ;;  %v380_v32 = vld [vmem:[%s10427_s25 + $0x120] sm:$0xff]  ;;  %v381_v34 = vld [vmem:[%s10427_s25 + $0x128] sm:$0xff] }
  0x8f   : > { %6978 = vmatprep.subr.bf16.mxu0 %v8722_v21  ;;  %7347 = vmatprep.subr.bf16.mxu1 %v8724_v22  ;;  %v8738_v37 = vcombine.high %v376_v31, %v380_v32  ;;  %v8740_v38 = vcombine.high %v377_v33, %v381_v34  ;;  %v384_v39 = vld [vmem:[%s10427_s25 + $0x140] sm:$0xff]  ;;  %v385_v41 = vld [vmem:[%s10427_s25 + $0x148] sm:$0xff]  ;;  %v8737_v43 = vcombine.low %v376_v31, %v380_v32 }
  0x90   : > { %v388_v40 = vld [vmem:[%s10427_s25 + $0x160] sm:$0xff]  ;;  %v389_v42 = vld [vmem:[%s10427_s25 + $0x168] sm:$0xff]  ;;  %v8739_v44 = vcombine.low %v377_v33, %v381_v34 }
  0x91   : > { %v8746_v45 = vcombine.high %v384_v39, %v388_v40  ;;  %v8748_v46 = vcombine.high %v385_v41, %v389_v42  ;;  %v392_v47 = vld [vmem:[%s10427_s25 + $0x180] sm:$0xff]  ;;  %v393_v49 = vld [vmem:[%s10427_s25 + $0x188] sm:$0xff]  ;;  %v8745_v51 = vcombine.low %v384_v39, %v388_v40  ;;  %v8747_v52 = vcombine.low %v385_v41, %v389_v42 }
  0x92   : > { %6979 = vmatpush1.bf16.msra.mxu0 %v8721_v27  ;;  %7348 = vmatpush1.bf16.msra.mxu1 %v8723_v28  ;;  %v396_v48 = vld [vmem:[%s10427_s25 + $0x1a0] sm:$0xff]  ;;  %v397_v50 = vld [vmem:[%s10427_s25 + $0x1a8] sm:$0xff] }
  0x93   : > { %6980 = vmatprep.subr.bf16.mxu0 %v8730_v29  ;;  %7349 = vmatprep.subr.bf16.mxu1 %v8732_v30  ;;  %v8754_v53 = vcombine.high %v392_v47, %v396_v48  ;;  %v10483_v54 = vld [vmem:[%s11762_s0] sm:$0xff]  ;;  %v8756_v55 = vcombine.high %v393_v49, %v397_v50  ;;  %v401_v59 = vld [vmem:[%s10427_s25 + $0x1c8] sm:$0xff]  ;;  %v8753_v61 = vcombine.low %v392_v47, %v396_v48 }
  0x94   : > { %v400_v56 = vld [vmem:[%s10427_s25 + $0x1c0] sm:$0xff]  ;;  %v10489_v58 = vcombine.high %v10483_v54, %v10483_v54  ;;  %v405_v60 = vld [vmem:[%s10427_s25 + $0x1e8] sm:$0xff]  ;;  %v8755_v62 = vcombine.low %v393_v49, %v397_v50 }
  0x95   : > { %v404_v57 = vld [vmem:[%s10427_s25 + $0x1e0] sm:$0xff]  ;;  %v8764_v0 = vcombine.high %v401_v59, %v405_v60  ;;  %v409_v3 = vld [vmem:[%s10427_s25 + $0x208] sm:$0xff]  ;;  %v8763_v6 = vcombine.low %v401_v59, %v405_v60 }
  0x96   : > { %6981 = vmatpush1.bf16.msra.mxu0 %v8729_v35  ;;  %7350 = vmatpush1.bf16.msra.mxu1 %v8731_v36  ;;  %v8762_v63 = vcombine.high %v400_v56, %v404_v57  ;;  %v408_v1 = vld [vmem:[%s10427_s25 + $0x200] sm:$0xff]  ;;  %v413_v4 = vld [vmem:[%s10427_s25 + $0x228] sm:$0xff]  ;;  %v8761_v5 = vcombine.low %v400_v56, %v404_v57 }
  0x97   : > { %6982 = vmatprep.subr.bf16.mxu0 %v8738_v37  ;;  %7351 = vmatprep.subr.bf16.mxu1 %v8740_v38  ;;  %v412_v2 = vld [vmem:[%s10427_s25 + $0x220] sm:$0xff]  ;;  %v8772_v8 = vcombine.high %v409_v3, %v413_v4  ;;  %v417_v11 = vld [vmem:[%s10427_s25 + $0x248] sm:$0xff]  ;;  %v8771_v14 = vcombine.low %v409_v3, %v413_v4 }
  0x98   : > { %7006 = vmatprep.mubr.bf16.mxu0 %v10489_v58  ;;  %7375 = vmatprep.mubr.bf16.mxu1 %v10489_v58  ;;  %v8770_v7 = vcombine.high %v408_v1, %v412_v2  ;;  %v416_v9 = vld [vmem:[%s10427_s25 + $0x240] sm:$0xff]  ;;  %v421_v12 = vld [vmem:[%s10427_s25 + $0x268] sm:$0xff]  ;;  %v8769_v13 = vcombine.low %v408_v1, %v412_v2 }
  0x99   : > { %v420_v10 = vld [vmem:[%s10427_s25 + $0x260] sm:$0xff]  ;;  %v8780_v16 = vcombine.high %v417_v11, %v421_v12  ;;  %v425_v19 = vld [vmem:[%s10427_s25 + $0x288] sm:$0xff]  ;;  %v8779_v22 = vcombine.low %v417_v11, %v421_v12 }
  0x9a   : > { %6983 = vmatpush1.bf16.msra.mxu0 %v8737_v43  ;;  %7352 = vmatpush1.bf16.msra.mxu1 %v8739_v44  ;;  %v8778_v15 = vcombine.high %v416_v9, %v420_v10  ;;  %v424_v17 = vld [vmem:[%s10427_s25 + $0x280] sm:$0xff]  ;;  %v429_v20 = vld [vmem:[%s10427_s25 + $0x2a8] sm:$0xff]  ;;  %v8777_v21 = vcombine.low %v416_v9, %v420_v10 }
  0x9b   : > { %6984 = vmatprep.subr.bf16.mxu0 %v8746_v45  ;;  %7353 = vmatprep.subr.bf16.mxu1 %v8748_v46  ;;  %v428_v18 = vld [vmem:[%s10427_s25 + $0x2a0] sm:$0xff]  ;;  %v8788_v24 = vcombine.high %v425_v19, %v429_v20  ;;  %v433_v27 = vld [vmem:[%s10427_s25 + $0x2c8] sm:$0xff]  ;;  %v8787_v30 = vcombine.low %v425_v19, %v429_v20 }
  0x9c   : > { %v8786_v23 = vcombine.high %v424_v17, %v428_v18  ;;  %v432_v25 = vld [vmem:[%s10427_s25 + $0x2c0] sm:$0xff]  ;;  %v437_v28 = vld [vmem:[%s10427_s25 + $0x2e8] sm:$0xff]  ;;  %v8785_v29 = vcombine.low %v424_v17, %v428_v18 }
  0x9d   : > { %v436_v26 = vld [vmem:[%s10427_s25 + $0x2e0] sm:$0xff]  ;;  %v8796_v32 = vcombine.high %v433_v27, %v437_v28  ;;  %v441_v35 = vld [vmem:[%s10427_s25 + $0x308] sm:$0xff]  ;;  %v8795_v38 = vcombine.low %v433_v27, %v437_v28 }
  0x9e   : > { %6985 = vmatpush1.bf16.msra.mxu0 %v8745_v51  ;;  %7354 = vmatpush1.bf16.msra.mxu1 %v8747_v52  ;;  %v8794_v31 = vcombine.high %v432_v25, %v436_v26  ;;  %v440_v33 = vld [vmem:[%s10427_s25 + $0x300] sm:$0xff]  ;;  %v445_v36 = vld [vmem:[%s10427_s25 + $0x328] sm:$0xff]  ;;  %v8793_v37 = vcombine.low %v432_v25, %v436_v26 }
  0x9f   : > { %6986 = vmatprep.subr.bf16.mxu0 %v8754_v53  ;;  %7355 = vmatprep.subr.bf16.mxu1 %v8756_v55  ;;  %v444_v34 = vld [vmem:[%s10427_s25 + $0x320] sm:$0xff]  ;;  %v8804_v40 = vcombine.high %v441_v35, %v445_v36  ;;  %v449_v43 = vld [vmem:[%s10427_s25 + $0x348] sm:$0xff]  ;;  %v8803_v46 = vcombine.low %v441_v35, %v445_v36 }
  0xa0   : > { %v8802_v39 = vcombine.high %v440_v33, %v444_v34  ;;  %v448_v41 = vld [vmem:[%s10427_s25 + $0x340] sm:$0xff]  ;;  %v453_v44 = vld [vmem:[%s10427_s25 + $0x368] sm:$0xff]  ;;  %v8801_v45 = vcombine.low %v440_v33, %v444_v34 }
  0xa1   : > { %v452_v42 = vld [vmem:[%s10427_s25 + $0x360] sm:$0xff]  ;;  %v8812_v48 = vcombine.high %v449_v43, %v453_v44  ;;  %v457_v51 = vld [vmem:[%s10427_s25 + $0x388] sm:$0xff]  ;;  %v8811_v55 = vcombine.low %v449_v43, %v453_v44 }
  0xa2   : > { %6987 = vmatpush1.bf16.msra.mxu0 %v8753_v61  ;;  %7356 = vmatpush1.bf16.msra.mxu1 %v8755_v62  ;;  %v8810_v47 = vcombine.high %v448_v41, %v452_v42  ;;  %v456_v49 = vld [vmem:[%s10427_s25 + $0x380] sm:$0xff]  ;;  %v461_v52 = vld [vmem:[%s10427_s25 + $0x3a8] sm:$0xff]  ;;  %v8809_v53 = vcombine.low %v448_v41, %v452_v42 }
  0xa3   : > { %6988 = vmatprep.subr.bf16.mxu0 %v8762_v63  ;;  %7357 = vmatprep.subr.bf16.mxu1 %v8764_v0  ;;  %v460_v50 = vld [vmem:[%s10427_s25 + $0x3a0] sm:$0xff]  ;;  %v8820_v57 = vcombine.high %v457_v51, %v461_v52  ;;  %v465_v61 = vld [vmem:[%s10427_s25 + $0x3c8] sm:$0xff]  ;;  %v8819_v0 = vcombine.low %v457_v51, %v461_v52 }
  0xa4   : > { %v8818_v56 = vcombine.high %v456_v49, %v460_v50  ;;  %v464_v59 = vld [vmem:[%s10427_s25 + $0x3c0] sm:$0xff]  ;;  %v469_v62 = vld [vmem:[%s10427_s25 + $0x3e8] sm:$0xff]  ;;  %v8817_v63 = vcombine.low %v456_v49, %v460_v50 }
  0xa5   : > { %v468_v60 = vld [vmem:[%s10427_s25 + $0x3e0] sm:$0xff]  ;;  %v8828_v2 = vcombine.high %v465_v61, %v469_v62 }
  0xa6   : > { %6989 = vmatpush1.bf16.msra.mxu0 %v8761_v5  ;;  %7358 = vmatpush1.bf16.msra.mxu1 %v8763_v6  ;;  %v8826_v1 = vcombine.high %v464_v59, %v468_v60  ;;  %v472_v3 = vld [vmem:[%s10427_s25 + $0x400] sm:$0xff]  ;;  %v473_v5 = vld [vmem:[%s10427_s25 + $0x408] sm:$0xff] }
  0xa7   : > { %6990 = vmatprep.subr.bf16.mxu0 %v8770_v7  ;;  %7359 = vmatprep.subr.bf16.mxu1 %v8772_v8  ;;  %v476_v4 = vld [vmem:[%s10427_s25 + $0x420] sm:$0xff]  ;;  %v477_v6 = vld [vmem:[%s10427_s25 + $0x428] sm:$0xff]  ;;  %v8825_v7 = vcombine.low %v464_v59, %v468_v60  ;;  %v8827_v8 = vcombine.low %v465_v61, %v469_v62 }
  0xa8   : > { %v8834_v9 = vcombine.high %v472_v3, %v476_v4  ;;  %v8836_v10 = vcombine.high %v473_v5, %v477_v6  ;;  %v480_v11 = vld [vmem:[%s10427_s25 + $0x440] sm:$0xff]  ;;  %v8833_v17 = vcombine.low %v472_v3, %v476_v4  ;;  %v8835_v18 = vcombine.low %v473_v5, %v477_v6 }
  0xa9   : > { %v484_v12 = vld [vmem:[%s10427_s25 + $0x460] sm:$0xff] }
  0xaa   : > { %6991 = vmatpush1.bf16.msra.mxu0 %v8769_v13  ;;  %7360 = vmatpush1.bf16.msra.mxu1 %v8771_v14  ;;  %v10535_v13 = vcombine.low %v10483_v54, %v10483_v54  ;;  %v481_v14 = vld [vmem:[%s10427_s25 + $0x448] sm:$0xff]  ;;  %v8842_v19 = vcombine.high %v480_v11, %v484_v12  ;;  %v488_v54 = vld [vmem:[%s10427_s25 + $0x480] sm:$0xff]  ;;  %v8841_v25 = vcombine.low %v480_v11, %v484_v12 }
  0xab   : > { %6992 = vmatprep.subr.bf16.mxu0 %v8778_v15  ;;  %7361 = vmatprep.subr.bf16.mxu1 %v8780_v16  ;;  %v485_v15 = vld [vmem:[%s10427_s25 + $0x468] sm:$0xff] }
  0xac   : > { %v10542_v16 = vld [vmem:[%s11762_s0 + $0x8] sm:$0xff]  ;;  %v8844_v20 = vcombine.high %v481_v14, %v485_v15  ;;  %v8843_v26 = vcombine.low %v481_v14, %v485_v15 }
  0xae   : > { %6993 = vmatpush1.bf16.msra.mxu0 %v8777_v21  ;;  %7362 = vmatpush1.bf16.msra.mxu1 %v8779_v22  ;;  %v492_v21 = vld [vmem:[%s10427_s25 + $0x4a0] sm:$0xff]  ;;  %v10548_v22 = vcombine.high %v10542_v16, %v10542_v16 }
  0xaf   : > { %6994 = vmatprep.subr.bf16.mxu0 %v8786_v23  ;;  %7363 = vmatprep.subr.bf16.mxu1 %v8788_v24  ;;  %v489_v23 = vld [vmem:[%s10427_s25 + $0x488] sm:$0xff]  ;;  %v8850_v27 = vcombine.high %v488_v54, %v492_v21  ;;  %v8849_v33 = vcombine.low %v488_v54, %v492_v21 }
  0xb0   : > { %v493_v24 = vld [vmem:[%s10427_s25 + $0x4a8] sm:$0xff] }
  0xb1   : > { %v8852_v28 = vcombine.high %v489_v23, %v493_v24  ;;  %v8851_v34 = vcombine.low %v489_v23, %v493_v24 }
  0xb2   : > { %6995 = vmatpush1.bf16.msra.mxu0 %v8785_v29  ;;  %7364 = vmatpush1.bf16.msra.mxu1 %v8787_v30  ;;  %v496_v29 = vld [vmem:[%s10427_s25 + $0x4c0] sm:$0xff] }
  0xb3   : > { %6996 = vmatprep.subr.bf16.mxu0 %v8794_v31  ;;  %7365 = vmatprep.subr.bf16.mxu1 %v8796_v32  ;;  %v500_v30 = vld [vmem:[%s10427_s25 + $0x4e0] sm:$0xff]  ;;  %v497_v31 = vld [vmem:[%s10427_s25 + $0x4c8] sm:$0xff] }
  0xb4   : > { %v501_v32 = vld [vmem:[%s10427_s25 + $0x4e8] sm:$0xff]  ;;  %v8858_v35 = vcombine.high %v496_v29, %v500_v30  ;;  %v8857_v41 = vcombine.low %v496_v29, %v500_v30 }
  0xb5   : > { %v8860_v36 = vcombine.high %v497_v31, %v501_v32  ;;  %v8859_v42 = vcombine.low %v497_v31, %v501_v32 }
  0xb6   : > { %6997 = vmatpush1.bf16.msra.mxu0 %v8793_v37  ;;  %7366 = vmatpush1.bf16.msra.mxu1 %v8795_v38  ;;  %v504_v37 = vld [vmem:[%s10427_s25 + $0x500] sm:$0xff] }
  0xb7   : > { %6998 = vmatprep.subr.bf16.mxu0 %v8802_v39  ;;  %7367 = vmatprep.subr.bf16.mxu1 %v8804_v40  ;;  %v508_v38 = vld [vmem:[%s10427_s25 + $0x520] sm:$0xff]  ;;  %v505_v39 = vld [vmem:[%s10427_s25 + $0x508] sm:$0xff] }
  0xb8   : > { %v509_v40 = vld [vmem:[%s10427_s25 + $0x528] sm:$0xff]  ;;  %v8866_v43 = vcombine.high %v504_v37, %v508_v38  ;;  %v8865_v49 = vcombine.low %v504_v37, %v508_v38 }
  0xb9   : > { %v8868_v44 = vcombine.high %v505_v39, %v509_v40  ;;  %v8867_v50 = vcombine.low %v505_v39, %v509_v40 }
  0xba   : > { %6999 = vmatpush1.bf16.msra.mxu0 %v8801_v45  ;;  %7368 = vmatpush1.bf16.msra.mxu1 %v8803_v46  ;;  %v512_v45 = vld [vmem:[%s10427_s25 + $0x540] sm:$0xff] }
  0xbb   : > { %7000 = vmatprep.subr.bf16.mxu0 %v8810_v47  ;;  %7369 = vmatprep.subr.bf16.mxu1 %v8812_v48  ;;  %v516_v46 = vld [vmem:[%s10427_s25 + $0x560] sm:$0xff]  ;;  %v513_v47 = vld [vmem:[%s10427_s25 + $0x548] sm:$0xff] }
  0xbc   : > { %v517_v48 = vld [vmem:[%s10427_s25 + $0x568] sm:$0xff]  ;;  %v8874_v51 = vcombine.high %v512_v45, %v516_v46  ;;  %v8873_v59 = vcombine.low %v512_v45, %v516_v46 }
  0xbd   : > { %v8876_v52 = vcombine.high %v513_v47, %v517_v48  ;;  %v8875_v60 = vcombine.low %v513_v47, %v517_v48 }
  0xbe   : > { %7001 = vmatpush1.bf16.msra.mxu0 %v8809_v53  ;;  %7370 = vmatpush1.bf16.msra.mxu1 %v8811_v55  ;;  %v520_v53 = vld [vmem:[%s10427_s25 + $0x580] sm:$0xff] }
  0xbf   : > { %7002 = vmatprep.subr.bf16.mxu0 %v8818_v56  ;;  %7371 = vmatprep.subr.bf16.mxu1 %v8820_v57  ;;  %v524_v55 = vld [vmem:[%s10427_s25 + $0x5a0] sm:$0xff]  ;;  %v521_v56 = vld [vmem:[%s10427_s25 + $0x588] sm:$0xff] }
  0xc0   : > { %v525_v57 = vld [vmem:[%s10427_s25 + $0x5a8] sm:$0xff]  ;;  %v8882_v61 = vcombine.high %v520_v53, %v524_v55  ;;  %v8881_v3 = vcombine.low %v520_v53, %v524_v55 }
  0xc1   : > { %v8884_v62 = vcombine.high %v521_v56, %v525_v57  ;;  %v8883_v4 = vcombine.low %v521_v56, %v525_v57 }
  0xc2   : > { %7003 = vmatpush1.bf16.msra.mxu0 %v8817_v63  ;;  %7372 = vmatpush1.bf16.msra.mxu1 %v8819_v0  ;;  %v528_v63 = vld [vmem:[%s10427_s25 + $0x5c0] sm:$0xff] }
  0xc3   : > { %7004 = vmatprep.subr.bf16.mxu0 %v8826_v1  ;;  %7373 = vmatprep.subr.bf16.mxu1 %v8828_v2  ;;  %v532_v0 = vld [vmem:[%s10427_s25 + $0x5e0] sm:$0xff]  ;;  %v529_v1 = vld [vmem:[%s10427_s25 + $0x5c8] sm:$0xff] }
  0xc4   : > { %v533_v2 = vld [vmem:[%s10427_s25 + $0x5e8] sm:$0xff]  ;;  %v8890_v5 = vcombine.high %v528_v63, %v532_v0  ;;  %v8889_v11 = vcombine.low %v528_v63, %v532_v0 }
  0xc5   : > { %v8892_v6 = vcombine.high %v529_v1, %v533_v2  ;;  %v8891_v12 = vcombine.low %v529_v1, %v533_v2 }
  0xc6   : > { %7005 = vmatpush1.bf16.msra.mxu0 %v8825_v7  ;;  %7374 = vmatpush1.bf16.msra.mxu1 %v8827_v8  ;;  %v536_v7 = vld [vmem:[%s10427_s25 + $0x600] sm:$0xff] }
  0xc7   : > { %7015 = vmatprep.subr.bf16.mxu0 %v8834_v9  ;;  %7384 = vmatprep.subr.bf16.mxu1 %v8836_v10  ;;  %v540_v8 = vld [vmem:[%s10427_s25 + $0x620] sm:$0xff]  ;;  %v537_v9 = vld [vmem:[%s10427_s25 + $0x608] sm:$0xff] }
  0xc8   : > { %v541_v10 = vld [vmem:[%s10427_s25 + $0x628] sm:$0xff]  ;;  %v8898_v14 = vcombine.high %v536_v7, %v540_v8  ;;  %v8897_v54 = vcombine.low %v536_v7, %v540_v8 }
  0xc9   : > { %7007 = vmatmul.mubr.bf16.vlgmr.msra.gmra.mrb[0].mxu0 %v10535_v13  ;;  %7376 = vmatmul.mubr.bf16.vlgmr.msra.gmra.mrb[0].mxu1 %v10535_v13  ;;  %v8900_v15 = vcombine.high %v537_v9, %v541_v10  ;;  %v8899_v21 = vcombine.low %v537_v9, %v541_v10 }
  0xca   : > { %7016 = vmatpush1.bf16.msra.mxu0 %v8833_v17  ;;  %7385 = vmatpush1.bf16.msra.mxu1 %v8835_v18  ;;  %v544_v17 = vld [vmem:[%s10427_s25 + $0x640] sm:$0xff] }
  0xcb   : > { %7017 = vmatprep.subr.bf16.mxu0 %v8842_v19  ;;  %7386 = vmatprep.subr.bf16.mxu1 %v8844_v20  ;;  %v548_v18 = vld [vmem:[%s10427_s25 + $0x660] sm:$0xff]  ;;  %v545_v19 = vld [vmem:[%s10427_s25 + $0x648] sm:$0xff] }
  0xcc   : > { %7047 = vmatprep.mubr.bf16.mxu0 %v10548_v22  ;;  %7416 = vmatprep.mubr.bf16.mxu1 %v10548_v22  ;;  %v549_v20 = vld [vmem:[%s10427_s25 + $0x668] sm:$0xff]  ;;  %v8906_v23 = vcombine.high %v544_v17, %v548_v18  ;;  %v8905_v29 = vcombine.low %v544_v17, %v548_v18 }
  0xcd   : > { %v8908_v24 = vcombine.high %v545_v19, %v549_v20  ;;  %v8907_v30 = vcombine.low %v545_v19, %v549_v20 }
  0xce   : > { %7018 = vmatpush1.bf16.msra.mxu0 %v8841_v25  ;;  %7387 = vmatpush1.bf16.msra.mxu1 %v8843_v26  ;;  %v552_v25 = vld [vmem:[%s10427_s25 + $0x680] sm:$0xff] }
  0xcf   : > { %7019 = vmatprep.subr.bf16.mxu0 %v8850_v27  ;;  %7388 = vmatprep.subr.bf16.mxu1 %v8852_v28  ;;  %v556_v26 = vld [vmem:[%s10427_s25 + $0x6a0] sm:$0xff]  ;;  %v553_v27 = vld [vmem:[%s10427_s25 + $0x688] sm:$0xff] }
  0xd0   : > { %v557_v28 = vld [vmem:[%s10427_s25 + $0x6a8] sm:$0xff]  ;;  %v8914_v31 = vcombine.high %v552_v25, %v556_v26  ;;  %v8913_v37 = vcombine.low %v552_v25, %v556_v26  ;;  %v10623_v26 = vld [vmem:[%s11762_s0 + $0x10] sm:$0xff] }
  0xd1   : > { %v8916_v32 = vcombine.high %v553_v27, %v557_v28  ;;  %v8915_v38 = vcombine.low %v553_v27, %v557_v28  ;;  %v613_v25 = vld [vmem:[%s10427_s25 + $0x868] sm:$0xff] }
  0xd2   : > { %7020 = vmatpush1.bf16.msra.mxu0 %v8849_v33  ;;  %7389 = vmatpush1.bf16.msra.mxu1 %v8851_v34  ;;  %v560_v33 = vld [vmem:[%s10427_s25 + $0x6c0] sm:$0xff] }
  0xd3   : > { %7021 = vmatprep.subr.bf16.mxu0 %v8858_v35  ;;  %7390 = vmatprep.subr.bf16.mxu1 %v8860_v36  ;;  %v564_v34 = vld [vmem:[%s10427_s25 + $0x6e0] sm:$0xff]  ;;  %v561_v35 = vld [vmem:[%s10427_s25 + $0x6c8] sm:$0xff] }
  0xd4   : > { %v565_v36 = vld [vmem:[%s10427_s25 + $0x6e8] sm:$0xff]  ;;  %v8922_v39 = vcombine.high %v560_v33, %v564_v34  ;;  %v8921_v45 = vcombine.low %v560_v33, %v564_v34 }
  0xd5   : > { %v8924_v40 = vcombine.high %v561_v35, %v565_v36  ;;  %v8923_v46 = vcombine.low %v561_v35, %v565_v36  ;;  %v617_v33 = vld [vmem:[%s10427_s25 + $0x888] sm:$0xff] }
  0xd6   : > { %7022 = vmatpush1.bf16.msra.mxu0 %v8857_v41  ;;  %7391 = vmatpush1.bf16.msra.mxu1 %v8859_v42  ;;  %v568_v41 = vld [vmem:[%s10427_s25 + $0x700] sm:$0xff]  ;;  %v621_v34 = vld [vmem:[%s10427_s25 + $0x8a8] sm:$0xff] }
  0xd7   : > { %7023 = vmatprep.subr.bf16.mxu0 %v8866_v43  ;;  %7392 = vmatprep.subr.bf16.mxu1 %v8868_v44  ;;  %v572_v42 = vld [vmem:[%s10427_s25 + $0x720] sm:$0xff]  ;;  %v569_v43 = vld [vmem:[%s10427_s25 + $0x708] sm:$0xff] }
  0xd8   : > { %v573_v44 = vld [vmem:[%s10427_s25 + $0x728] sm:$0xff]  ;;  %v8930_v47 = vcombine.high %v568_v41, %v572_v42  ;;  %v8929_v53 = vcombine.low %v568_v41, %v572_v42 }
  0xd9   : > { %v8932_v48 = vcombine.high %v569_v43, %v573_v44  ;;  %v8931_v55 = vcombine.low %v569_v43, %v573_v44  ;;  %v625_v41 = vld [vmem:[%s10427_s25 + $0x8c8] sm:$0xff]  ;;  %v8979_v44 = vcombine.low %v617_v33, %v621_v34 }
  0xda   : > { %7024 = vmatpush1.bf16.msra.mxu0 %v8865_v49  ;;  %7393 = vmatpush1.bf16.msra.mxu1 %v8867_v50  ;;  %v576_v49 = vld [vmem:[%s10427_s25 + $0x740] sm:$0xff]  ;;  %v629_v42 = vld [vmem:[%s10427_s25 + $0x8e8] sm:$0xff] }
  0xdb   : > { %7025 = vmatprep.subr.bf16.mxu0 %v8874_v51  ;;  %7394 = vmatprep.subr.bf16.mxu1 %v8876_v52  ;;  %v580_v50 = vld [vmem:[%s10427_s25 + $0x760] sm:$0xff]  ;;  %v577_v51 = vld [vmem:[%s10427_s25 + $0x748] sm:$0xff] }
  0xdc   : > { %v581_v52 = vld [vmem:[%s10427_s25 + $0x768] sm:$0xff]  ;;  %v8938_v56 = vcombine.high %v576_v49, %v580_v50  ;;  %v8937_v63 = vcombine.low %v576_v49, %v580_v50 }
  0xdd   : > { %v8940_v57 = vcombine.high %v577_v51, %v581_v52  ;;  %v8939_v0 = vcombine.low %v577_v51, %v581_v52  ;;  %v633_v49 = vld [vmem:[%s10427_s25 + $0x908] sm:$0xff]  ;;  %v8987_v52 = vcombine.low %v625_v41, %v629_v42 }
  0xde   : > { %7026 = vmatpush1.bf16.msra.mxu0 %v8873_v59  ;;  %7395 = vmatpush1.bf16.msra.mxu1 %v8875_v60  ;;  %v584_v59 = vld [vmem:[%s10427_s25 + $0x780] sm:$0xff]  ;;  %v637_v50 = vld [vmem:[%s10427_s25 + $0x928] sm:$0xff] }
  0xdf   : > { %7027 = vmatprep.subr.bf16.mxu0 %v8882_v61  ;;  %7396 = vmatprep.subr.bf16.mxu1 %v8884_v62  ;;  %v588_v60 = vld [vmem:[%s10427_s25 + $0x7a0] sm:$0xff]  ;;  %v585_v61 = vld [vmem:[%s10427_s25 + $0x788] sm:$0xff] }
  0xe0   : > { %v589_v62 = vld [vmem:[%s10427_s25 + $0x7a8] sm:$0xff]  ;;  %v8946_v1 = vcombine.high %v584_v59, %v588_v60  ;;  %v8945_v7 = vcombine.low %v584_v59, %v588_v60 }
  0xe1   : > { %v8948_v2 = vcombine.high %v585_v61, %v589_v62  ;;  %v8947_v8 = vcombine.low %v585_v61, %v589_v62  ;;  %v641_v59 = vld [vmem:[%s10427_s25 + $0x948] sm:$0xff]  ;;  %v8995_v62 = vcombine.low %v633_v49, %v637_v50 }
  0xe2   : > { %7028 = vmatpush1.bf16.msra.mxu0 %v8881_v3  ;;  %7397 = vmatpush1.bf16.msra.mxu1 %v8883_v4  ;;  %v592_v3 = vld [vmem:[%s10427_s25 + $0x7c0] sm:$0xff]  ;;  %v645_v60 = vld [vmem:[%s10427_s25 + $0x968] sm:$0xff] }
  0xe3   : > { %7029 = vmatprep.subr.bf16.mxu0 %v8890_v5  ;;  %7398 = vmatprep.subr.bf16.mxu1 %v8892_v6  ;;  %v596_v4 = vld [vmem:[%s10427_s25 + $0x7e0] sm:$0xff]  ;;  %v593_v5 = vld [vmem:[%s10427_s25 + $0x7c8] sm:$0xff] }
  0xe4   : > { %v597_v6 = vld [vmem:[%s10427_s25 + $0x7e8] sm:$0xff]  ;;  %v8954_v9 = vcombine.high %v592_v3, %v596_v4  ;;  %v8953_v17 = vcombine.low %v592_v3, %v596_v4 }
  0xe5   : > { %v8956_v10 = vcombine.high %v593_v5, %v597_v6  ;;  %v8955_v18 = vcombine.low %v593_v5, %v597_v6  ;;  %v649_v3 = vld [vmem:[%s10427_s25 + $0x988] sm:$0xff]  ;;  %v9003_v6 = vcombine.low %v641_v59, %v645_v60 }
  0xe6   : > { %7030 = vmatpush1.bf16.msra.mxu0 %v8889_v11  ;;  %7399 = vmatpush1.bf16.msra.mxu1 %v8891_v12  ;;  %v600_v11 = vld [vmem:[%s10427_s25 + $0x800] sm:$0xff]  ;;  %v653_v4 = vld [vmem:[%s10427_s25 + $0x9a8] sm:$0xff] }
  0xe7   : > { %7031 = vmatprep.subr.bf16.mxu0 %v8898_v14  ;;  %7400 = vmatprep.subr.bf16.mxu1 %v8900_v15  ;;  %v604_v12 = vld [vmem:[%s10427_s25 + $0x820] sm:$0xff]  ;;  %v601_v14 = vld [vmem:[%s10427_s25 + $0x808] sm:$0xff] }
  0xe8   : > { %v605_v15 = vld [vmem:[%s10427_s25 + $0x828] sm:$0xff]  ;;  %v8962_v19 = vcombine.high %v600_v11, %v604_v12  ;;  %v8961_v27 = vcombine.low %v600_v11, %v604_v12 }
  0xe9   : > { %v8964_v20 = vcombine.high %v601_v14, %v605_v15  ;;  %v8963_v28 = vcombine.low %v601_v14, %v605_v15  ;;  %v657_v11 = vld [vmem:[%s10427_s25 + $0x9c8] sm:$0xff]  ;;  %v9011_v15 = vcombine.low %v649_v3, %v653_v4 }
  0xea   : > { %7032 = vmatpush1.bf16.msra.mxu0 %v8897_v54  ;;  %7401 = vmatpush1.bf16.msra.mxu1 %v8899_v21  ;;  %v608_v54 = vld [vmem:[%s10427_s25 + $0x840] sm:$0xff]  ;;  %v661_v12 = vld [vmem:[%s10427_s25 + $0x9e8] sm:$0xff] }
  0xeb   : > { %7033 = vmatprep.subr.bf16.mxu0 %v8906_v23  ;;  %7402 = vmatprep.subr.bf16.mxu1 %v8908_v24  ;;  %v612_v21 = vld [vmem:[%s10427_s25 + $0x860] sm:$0xff]  ;;  %v10616_v23 = vcombine.low %v10542_v16, %v10542_v16  ;;  %v609_v24 = vld [vmem:[%s10427_s25 + $0x848] sm:$0xff] }
  0xec   : > { %v616_v16 = vld [vmem:[%s10427_s25 + $0x880] sm:$0xff]  ;;  %v8969_v35 = vcombine.low %v608_v54, %v612_v21  ;;  %v8971_v36 = vcombine.low %v609_v24, %v613_v25 }
  0xee   : > { %7034 = vmatpush1.bf16.msra.mxu0 %v8905_v29  ;;  %7403 = vmatpush1.bf16.msra.mxu1 %v8907_v30  ;;  %v8970_v29 = vcombine.high %v608_v54, %v612_v21  ;;  %v8972_v30 = vcombine.high %v609_v24, %v613_v25  ;;  %v665_v54 = vld [vmem:[%s10427_s25 + $0xa08] sm:$0xff]  ;;  %v9019_v25 = vcombine.low %v657_v11, %v661_v12 }
  0xef   : > { %7035 = vmatprep.subr.bf16.mxu0 %v8914_v31  ;;  %7404 = vmatprep.subr.bf16.mxu1 %v8916_v32  ;;  %v620_v31 = vld [vmem:[%s10427_s25 + $0x8a0] sm:$0xff]  ;;  %v10629_v32 = vcombine.high %v10623_v26, %v10623_v26  ;;  %v669_v21 = vld [vmem:[%s10427_s25 + $0xa28] sm:$0xff] }
  0xf0   : > { %v8977_v43 = vcombine.low %v616_v16, %v620_v31 }
  0xf2   : > { %7036 = vmatpush1.bf16.msra.mxu0 %v8913_v37  ;;  %7405 = vmatpush1.bf16.msra.mxu1 %v8915_v38  ;;  %v8978_v37 = vcombine.high %v616_v16, %v620_v31  ;;  %v8980_v38 = vcombine.high %v617_v33, %v621_v34  ;;  %v673_v16 = vld [vmem:[%s10427_s25 + $0xa48] sm:$0xff]  ;;  %v9027_v34 = vcombine.low %v665_v54, %v669_v21 }
  0xf3   : > { %7037 = vmatprep.subr.bf16.mxu0 %v8922_v39  ;;  %7406 = vmatprep.subr.bf16.mxu1 %v8924_v40  ;;  %v624_v39 = vld [vmem:[%s10427_s25 + $0x8c0] sm:$0xff]  ;;  %v677_v31 = vld [vmem:[%s10427_s25 + $0xa68] sm:$0xff] }
  0xf4   : > { %v628_v40 = vld [vmem:[%s10427_s25 + $0x8e0] sm:$0xff] }
  0xf5   : > { %v8985_v51 = vcombine.low %v624_v39, %v628_v40 }
  0xf6   : > { %7038 = vmatpush1.bf16.msra.mxu0 %v8921_v45  ;;  %7407 = vmatpush1.bf16.msra.mxu1 %v8923_v46  ;;  %v8986_v45 = vcombine.high %v624_v39, %v628_v40  ;;  %v8988_v46 = vcombine.high %v625_v41, %v629_v42  ;;  %v681_v39 = vld [vmem:[%s10427_s25 + $0xa88] sm:$0xff]  ;;  %v9035_v42 = vcombine.low %v673_v16, %v677_v31 }
  0xf7   : > { %7039 = vmatprep.subr.bf16.mxu0 %v8930_v47  ;;  %7408 = vmatprep.subr.bf16.mxu1 %v8932_v48  ;;  %v632_v47 = vld [vmem:[%s10427_s25 + $0x900] sm:$0xff]  ;;  %v685_v40 = vld [vmem:[%s10427_s25 + $0xaa8] sm:$0xff] }
  0xf8   : > { %v636_v48 = vld [vmem:[%s10427_s25 + $0x920] sm:$0xff] }
  0xf9   : > { %v8993_v61 = vcombine.low %v632_v47, %v636_v48 }
  0xfa   : > { %7040 = vmatpush1.bf16.msra.mxu0 %v8929_v53  ;;  %7409 = vmatpush1.bf16.msra.mxu1 %v8931_v55  ;;  %v8994_v53 = vcombine.high %v632_v47, %v636_v48  ;;  %v8996_v55 = vcombine.high %v633_v49, %v637_v50  ;;  %v689_v47 = vld [vmem:[%s10427_s25 + $0xac8] sm:$0xff]  ;;  %v9043_v50 = vcombine.low %v681_v39, %v685_v40 }
  0xfb   : > { %7041 = vmatprep.subr.bf16.mxu0 %v8938_v56  ;;  %7410 = vmatprep.subr.bf16.mxu1 %v8940_v57  ;;  %v640_v56 = vld [vmem:[%s10427_s25 + $0x940] sm:$0xff]  ;;  %v693_v48 = vld [vmem:[%s10427_s25 + $0xae8] sm:$0xff] }
  0xfc   : > { %v644_v57 = vld [vmem:[%s10427_s25 + $0x960] sm:$0xff] }
  0xfd   : > { %v9001_v5 = vcombine.low %v640_v56, %v644_v57 }
  0xfe   : > { %7042 = vmatpush1.bf16.msra.mxu0 %v8937_v63  ;;  %7411 = vmatpush1.bf16.msra.mxu1 %v8939_v0  ;;  %v9002_v63 = vcombine.high %v640_v56, %v644_v57  ;;  %v9004_v0 = vcombine.high %v641_v59, %v645_v60  ;;  %v697_v56 = vld [vmem:[%s10427_s25 + $0xb08] sm:$0xff]  ;;  %v9051_v60 = vcombine.low %v689_v47, %v693_v48 }
  0xff   : > { %7043 = vmatprep.subr.bf16.mxu0 %v8946_v1  ;;  %7412 = vmatprep.subr.bf16.mxu1 %v8948_v2  ;;  %v648_v1 = vld [vmem:[%s10427_s25 + $0x980] sm:$0xff]  ;;  %v701_v57 = vld [vmem:[%s10427_s25 + $0xb28] sm:$0xff] }
 0x100   : > { %v652_v2 = vld [vmem:[%s10427_s25 + $0x9a0] sm:$0xff] }
 0x101   : > { %v9009_v14 = vcombine.low %v648_v1, %v652_v2 }
 0x102   : > { %7044 = vmatpush1.bf16.msra.mxu0 %v8945_v7  ;;  %7413 = vmatpush1.bf16.msra.mxu1 %v8947_v8  ;;  %v9010_v7 = vcombine.high %v648_v1, %v652_v2  ;;  %v9012_v8 = vcombine.high %v649_v3, %v653_v4  ;;  %v705_v1 = vld [vmem:[%s10427_s25 + $0xb48] sm:$0xff]  ;;  %v9059_v4 = vcombine.low %v697_v56, %v701_v57 }
 0x103   : > { %7045 = vmatprep.subr.bf16.mxu0 %v8954_v9  ;;  %7414 = vmatprep.subr.bf16.mxu1 %v8956_v10  ;;  %v656_v9 = vld [vmem:[%s10427_s25 + $0x9c0] sm:$0xff]  ;;  %v709_v2 = vld [vmem:[%s10427_s25 + $0xb68] sm:$0xff] }
 0x104   : > { %v660_v10 = vld [vmem:[%s10427_s25 + $0x9e0] sm:$0xff] }
 0x105   : > { %v9017_v24 = vcombine.low %v656_v9, %v660_v10 }
 0x106   : > { %7046 = vmatpush1.bf16.msra.mxu0 %v8953_v17  ;;  %7415 = vmatpush1.bf16.msra.mxu1 %v8955_v18  ;;  %v9018_v17 = vcombine.high %v656_v9, %v660_v10  ;;  %v9020_v18 = vcombine.high %v657_v11, %v661_v12  ;;  %v713_v9 = vld [vmem:[%s10427_s25 + $0xb88] sm:$0xff]  ;;  %v9067_v12 = vcombine.low %v705_v1, %v709_v2 }
 0x107   : > { %7056 = vmatprep.subr.bf16.mxu0 %v8962_v19  ;;  %7425 = vmatprep.subr.bf16.mxu1 %v8964_v20  ;;  %v664_v19 = vld [vmem:[%s10427_s25 + $0xa00] sm:$0xff]  ;;  %v717_v10 = vld [vmem:[%s10427_s25 + $0xba8] sm:$0xff] }
 0x108   : > { %v668_v20 = vld [vmem:[%s10427_s25 + $0xa20] sm:$0xff] }
 0x109   : > { %7048 = vmatmul.mubr.bf16.vlgmr.msra.gmra.mrb[0].mxu0 %v10616_v23  ;;  %7417 = vmatmul.mubr.bf16.vlgmr.msra.gmra.mrb[0].mxu1 %v10616_v23  ;;  %v9025_v33 = vcombine.low %v664_v19, %v668_v20 }
 0x10a   : > { %7057 = vmatpush1.bf16.msra.mxu0 %v8961_v27  ;;  %7426 = vmatpush1.bf16.msra.mxu1 %v8963_v28  ;;  %v9026_v27 = vcombine.high %v664_v19, %v668_v20  ;;  %v9028_v28 = vcombine.high %v665_v54, %v669_v21  ;;  %v721_v19 = vld [vmem:[%s10427_s25 + $0xbc8] sm:$0xff]  ;;  %v9075_v21 = vcombine.low %v713_v9, %v717_v10 }
 0x10b   : > { %7058 = vmatprep.subr.bf16.mxu0 %v8970_v29  ;;  %7427 = vmatprep.subr.bf16.mxu1 %v8972_v30  ;;  %v672_v29 = vld [vmem:[%s10427_s25 + $0xa40] sm:$0xff]  ;;  %v725_v20 = vld [vmem:[%s10427_s25 + $0xbe8] sm:$0xff] }
 0x10c   : > { %7088 = vmatprep.mubr.bf16.mxu0 %v10629_v32  ;;  %7457 = vmatprep.mubr.bf16.mxu1 %v10629_v32  ;;  %v676_v30 = vld [vmem:[%s10427_s25 + $0xa60] sm:$0xff] }
 0x10d   : > { %v9033_v41 = vcombine.low %v672_v29, %v676_v30 }
 0x10e   : > { %7059 = vmatpush1.bf16.msra.mxu0 %v8969_v35  ;;  %7428 = vmatpush1.bf16.msra.mxu1 %v8971_v36  ;;  %v9034_v35 = vcombine.high %v672_v29, %v676_v30  ;;  %v9036_v36 = vcombine.high %v673_v16, %v677_v31  ;;  %v729_v29 = vld [vmem:[%s10427_s25 + $0xc08] sm:$0xff]  ;;  %v9083_v31 = vcombine.low %v721_v19, %v725_v20 }
 0x10f   : > { %7060 = vmatprep.subr.bf16.mxu0 %v8978_v37  ;;  %7429 = vmatprep.subr.bf16.mxu1 %v8980_v38  ;;  %v680_v37 = vld [vmem:[%s10427_s25 + $0xa80] sm:$0xff]  ;;  %v733_v30 = vld [vmem:[%s10427_s25 + $0xc28] sm:$0xff] }
 0x110   : > { %v684_v38 = vld [vmem:[%s10427_s25 + $0xaa0] sm:$0xff] }
 0x111   : > { %v9041_v49 = vcombine.low %v680_v37, %v684_v38 }
 0x112   : > { %7061 = vmatpush1.bf16.msra.mxu0 %v8977_v43  ;;  %7430 = vmatpush1.bf16.msra.mxu1 %v8979_v44  ;;  %v9042_v43 = vcombine.high %v680_v37, %v684_v38  ;;  %v9044_v44 = vcombine.high %v681_v39, %v685_v40  ;;  %v10697_v37 = vcombine.low %v10623_v26, %v10623_v26  ;;  %v737_v38 = vld [vmem:[%s10427_s25 + $0xc48] sm:$0xff]  ;;  %v10704_v40 = vld [vmem:[%s11762_s0 + $0x18] sm:$0xff]  ;;  %v744_v26 = vld [vmem:[%s10427_s25 + $0xc80] sm:$0xff] }
 0x113   : > { %7062 = vmatprep.subr.bf16.mxu0 %v8986_v45  ;;  %7431 = vmatprep.subr.bf16.mxu1 %v8988_v46  ;;  %v688_v45 = vld [vmem:[%s10427_s25 + $0xac0] sm:$0xff]  ;;  %v741_v39 = vld [vmem:[%s10427_s25 + $0xc68] sm:$0xff] }
 0x114   : > { %v692_v46 = vld [vmem:[%s10427_s25 + $0xae0] sm:$0xff] }
 0x115   : > { %v9049_v59 = vcombine.low %v688_v45, %v692_v46 }
 0x116   : > { %7063 = vmatpush1.bf16.msra.mxu0 %v8985_v51  ;;  %7432 = vmatpush1.bf16.msra.mxu1 %v8987_v52  ;;  %v9050_v51 = vcombine.high %v688_v45, %v692_v46  ;;  %v9052_v52 = vcombine.high %v689_v47, %v693_v48  ;;  %v748_v45 = vld [vmem:[%s10427_s25 + $0xca0] sm:$0xff]  ;;  %v10710_v46 = vcombine.high %v10704_v40, %v10704_v40  ;;  %v745_v47 = vld [vmem:[%s10427_s25 + $0xc88] sm:$0xff] }
 0x117   : > { %7064 = vmatprep.subr.bf16.mxu0 %v8994_v53  ;;  %7433 = vmatprep.subr.bf16.mxu1 %v8996_v55  ;;  %v696_v53 = vld [vmem:[%s10427_s25 + $0xb00] sm:$0xff]  ;;  %v749_v48 = vld [vmem:[%s10427_s25 + $0xca8] sm:$0xff] }
 0x118   : > { %v700_v55 = vld [vmem:[%s10427_s25 + $0xb20] sm:$0xff] }
 0x119   : > { %v9057_v3 = vcombine.low %v696_v53, %v700_v55 }
 0x11a   : > { %7065 = vmatpush1.bf16.msra.mxu0 %v8993_v61  ;;  %7434 = vmatpush1.bf16.msra.mxu1 %v8995_v62  ;;  %v9058_v61 = vcombine.high %v696_v53, %v700_v55  ;;  %v9060_v62 = vcombine.high %v697_v56, %v701_v57  ;;  %v752_v53 = vld [vmem:[%s10427_s25 + $0xcc0] sm:$0xff]  ;;  %v753_v56 = vld [vmem:[%s10427_s25 + $0xcc8] sm:$0xff] }
 0x11b   : > { %7066 = vmatprep.subr.bf16.mxu0 %v9002_v63  ;;  %7435 = vmatprep.subr.bf16.mxu1 %v9004_v0  ;;  %v704_v63 = vld [vmem:[%s10427_s25 + $0xb40] sm:$0xff]  ;;  %v757_v57 = vld [vmem:[%s10427_s25 + $0xce8] sm:$0xff] }
 0x11c   : > { %v708_v0 = vld [vmem:[%s10427_s25 + $0xb60] sm:$0xff] }
 0x11d   : > { %v9065_v11 = vcombine.low %v704_v63, %v708_v0  ;;  %v756_v55 = vld [vmem:[%s10427_s25 + $0xce0] sm:$0xff] }
 0x11e   : > { %7067 = vmatpush1.bf16.msra.mxu0 %v9001_v5  ;;  %7436 = vmatpush1.bf16.msra.mxu1 %v9003_v6  ;;  %v9066_v5 = vcombine.high %v704_v63, %v708_v0  ;;  %v9068_v6 = vcombine.high %v705_v1, %v709_v2  ;;  %v760_v63 = vld [vmem:[%s10427_s25 + $0xd00] sm:$0xff]  ;;  %v761_v1 = vld [vmem:[%s10427_s25 + $0xd08] sm:$0xff] }
 0x11f   : > { %7068 = vmatprep.subr.bf16.mxu0 %v9010_v7  ;;  %7437 = vmatprep.subr.bf16.mxu1 %v9012_v8  ;;  %v712_v7 = vld [vmem:[%s10427_s25 + $0xb80] sm:$0xff]  ;;  %v765_v2 = vld [vmem:[%s10427_s25 + $0xd28] sm:$0xff] }
 0x120   : > { %v716_v8 = vld [vmem:[%s10427_s25 + $0xba0] sm:$0xff] }
 0x121   : > { %v9073_v54 = vcombine.low %v712_v7, %v716_v8  ;;  %v764_v0 = vld [vmem:[%s10427_s25 + $0xd20] sm:$0xff] }
 0x122   : > { %7069 = vmatpush1.bf16.msra.mxu0 %v9009_v14  ;;  %7438 = vmatpush1.bf16.msra.mxu1 %v9011_v15  ;;  %v9074_v14 = vcombine.high %v712_v7, %v716_v8  ;;  %v9076_v15 = vcombine.high %v713_v9, %v717_v10  ;;  %v768_v7 = vld [vmem:[%s10427_s25 + $0xd40] sm:$0xff]  ;;  %v769_v9 = vld [vmem:[%s10427_s25 + $0xd48] sm:$0xff] }
 0x123   : > { %7070 = vmatprep.subr.bf16.mxu0 %v9018_v17  ;;  %7439 = vmatprep.subr.bf16.mxu1 %v9020_v18  ;;  %v720_v17 = vld [vmem:[%s10427_s25 + $0xbc0] sm:$0xff]  ;;  %v773_v10 = vld [vmem:[%s10427_s25 + $0xd68] sm:$0xff] }
 0x124   : > { %v724_v18 = vld [vmem:[%s10427_s25 + $0xbe0] sm:$0xff] }
 0x125   : > { %v9081_v16 = vcombine.low %v720_v17, %v724_v18  ;;  %v772_v8 = vld [vmem:[%s10427_s25 + $0xd60] sm:$0xff] }
 0x126   : > { %7071 = vmatpush1.bf16.msra.mxu0 %v9017_v24  ;;  %7440 = vmatpush1.bf16.msra.mxu1 %v9019_v25  ;;  %v9082_v24 = vcombine.high %v720_v17, %v724_v18  ;;  %v9084_v25 = vcombine.high %v721_v19, %v725_v20  ;;  %v776_v17 = vld [vmem:[%s10427_s25 + $0xd80] sm:$0xff]  ;;  %v777_v19 = vld [vmem:[%s10427_s25 + $0xd88] sm:$0xff] }
 0x127   : > { %7072 = vmatprep.subr.bf16.mxu0 %v9026_v27  ;;  %7441 = vmatprep.subr.bf16.mxu1 %v9028_v28  ;;  %v728_v27 = vld [vmem:[%s10427_s25 + $0xc00] sm:$0xff]  ;;  %v781_v20 = vld [vmem:[%s10427_s25 + $0xda8] sm:$0xff] }
 0x128   : > { %v732_v28 = vld [vmem:[%s10427_s25 + $0xc20] sm:$0xff] }
 0x129   : > { %v780_v18 = vld [vmem:[%s10427_s25 + $0xda0] sm:$0xff] }
 0x12a   : > { %7073 = vmatpush1.bf16.msra.mxu0 %v9025_v33  ;;  %7442 = vmatpush1.bf16.msra.mxu1 %v9027_v34  ;;  %v9090_v33 = vcombine.high %v728_v27, %v732_v28  ;;  %v9092_v34 = vcombine.high %v729_v29, %v733_v30 }
 0x12b   : > { %7074 = vmatprep.subr.bf16.mxu0 %v9034_v35  ;;  %7443 = vmatprep.subr.bf16.mxu1 %v9036_v36  ;;  %v736_v35 = vld [vmem:[%s10427_s25 + $0xc40] sm:$0xff] }
 0x12c   : > { %v740_v36 = vld [vmem:[%s10427_s25 + $0xc60] sm:$0xff] }
 0x12e   : > { %7075 = vmatpush1.bf16.msra.mxu0 %v9033_v41  ;;  %7444 = vmatpush1.bf16.msra.mxu1 %v9035_v42  ;;  %v9089_v41 = vcombine.low %v728_v27, %v732_v28  ;;  %v9091_v42 = vcombine.low %v729_v29, %v733_v30  ;;  %v784_v27 = vld [vmem:[%s10427_s25 + $0xdc0] sm:$0xff]  ;;  %v785_v29 = vld [vmem:[%s10427_s25 + $0xdc8] sm:$0xff] }
 0x12f   : > { %7076 = vmatprep.subr.bf16.mxu0 %v9042_v43  ;;  %7445 = vmatprep.subr.bf16.mxu1 %v9044_v44  ;;  %v9098_v43 = vcombine.high %v736_v35, %v740_v36  ;;  %v9100_v44 = vcombine.high %v737_v38, %v741_v39  ;;  %v788_v28 = vld [vmem:[%s10427_s25 + $0xde0] sm:$0xff]  ;;  %v789_v30 = vld [vmem:[%s10427_s25 + $0xde8] sm:$0xff] }
 0x132   : > { %7077 = vmatpush1.bf16.msra.mxu0 %v9041_v49  ;;  %7446 = vmatpush1.bf16.msra.mxu1 %v9043_v50  ;;  %v9097_v49 = vcombine.low %v736_v35, %v740_v36  ;;  %v9099_v50 = vcombine.low %v737_v38, %v741_v39  ;;  %v792_v35 = vld [vmem:[%s10427_s25 + $0xe00] sm:$0xff]  ;;  %v793_v38 = vld [vmem:[%s10427_s25 + $0xe08] sm:$0xff] }
 0x133   : > { %7078 = vmatprep.subr.bf16.mxu0 %v9050_v51  ;;  %7447 = vmatprep.subr.bf16.mxu1 %v9052_v52  ;;  %v9106_v51 = vcombine.high %v744_v26, %v748_v45  ;;  %v9108_v52 = vcombine.high %v745_v47, %v749_v48  ;;  %v796_v36 = vld [vmem:[%s10427_s25 + $0xe20] sm:$0xff]  ;;  %v797_v39 = vld [vmem:[%s10427_s25 + $0xe28] sm:$0xff] }
 0x136   : > { %7079 = vmatpush1.bf16.msra.mxu0 %v9049_v59  ;;  %7448 = vmatpush1.bf16.msra.mxu1 %v9051_v60  ;;  %v9105_v59 = vcombine.low %v744_v26, %v748_v45  ;;  %v9107_v60 = vcombine.low %v745_v47, %v749_v48  ;;  %v800_v26 = vld [vmem:[%s10427_s25 + $0xe40] sm:$0xff]  ;;  %v801_v47 = vld [vmem:[%s10427_s25 + $0xe48] sm:$0xff] }
 0x137   : > { %7080 = vmatprep.subr.bf16.mxu0 %v9058_v61  ;;  %7449 = vmatprep.subr.bf16.mxu1 %v9060_v62  ;;  %v9114_v61 = vcombine.high %v752_v53, %v756_v55  ;;  %v9116_v62 = vcombine.high %v753_v56, %v757_v57  ;;  %v804_v45 = vld [vmem:[%s10427_s25 + $0xe60] sm:$0xff]  ;;  %v805_v48 = vld [vmem:[%s10427_s25 + $0xe68] sm:$0xff] }
 0x13a   : > { %7081 = vmatpush1.bf16.msra.mxu0 %v9057_v3  ;;  %7450 = vmatpush1.bf16.msra.mxu1 %v9059_v4  ;;  %v9113_v3 = vcombine.low %v752_v53, %v756_v55  ;;  %v9115_v4 = vcombine.low %v753_v56, %v757_v57  ;;  %v808_v53 = vld [vmem:[%s10427_s25 + $0xe80] sm:$0xff]  ;;  %v809_v56 = vld [vmem:[%s10427_s25 + $0xe88] sm:$0xff] }
 0x13b   : > { %7082 = vmatprep.subr.bf16.mxu0 %v9066_v5  ;;  %7451 = vmatprep.subr.bf16.mxu1 %v9068_v6  ;;  %v9122_v5 = vcombine.high %v760_v63, %v764_v0  ;;  %v9124_v6 = vcombine.high %v761_v1, %v765_v2  ;;  %v812_v55 = vld [vmem:[%s10427_s25 + $0xea0] sm:$0xff]  ;;  %v813_v57 = vld [vmem:[%s10427_s25 + $0xea8] sm:$0xff] }
 0x13e   : > { %7083 = vmatpush1.bf16.msra.mxu0 %v9065_v11  ;;  %7452 = vmatpush1.bf16.msra.mxu1 %v9067_v12  ;;  %v9121_v11 = vcombine.low %v760_v63, %v764_v0  ;;  %v9123_v12 = vcombine.low %v761_v1, %v765_v2  ;;  %v816_v63 = vld [vmem:[%s10427_s25 + $0xec0] sm:$0xff]  ;;  %v817_v1 = vld [vmem:[%s10427_s25 + $0xec8] sm:$0xff] }
 0x13f   : > { %7084 = vmatprep.subr.bf16.mxu0 %v9074_v14  ;;  %7453 = vmatprep.subr.bf16.mxu1 %v9076_v15  ;;  %v9130_v14 = vcombine.high %v768_v7, %v772_v8  ;;  %v9132_v15 = vcombine.high %v769_v9, %v773_v10  ;;  %v820_v0 = vld [vmem:[%s10427_s25 + $0xee0] sm:$0xff]  ;;  %v821_v2 = vld [vmem:[%s10427_s25 + $0xee8] sm:$0xff] }
 0x142   : > { %7085 = vmatpush1.bf16.msra.mxu0 %v9073_v54  ;;  %7454 = vmatpush1.bf16.msra.mxu1 %v9075_v21  ;;  %v9129_v54 = vcombine.low %v768_v7, %v772_v8  ;;  %v9131_v21 = vcombine.low %v769_v9, %v773_v10  ;;  %v824_v7 = vld [vmem:[%s10427_s25 + $0xf00] sm:$0xff]  ;;  %v825_v9 = vld [vmem:[%s10427_s25 + $0xf08] sm:$0xff] }
 0x143   : > { %7086 = vmatprep.subr.bf16.mxu0 %v9082_v24  ;;  %7455 = vmatprep.subr.bf16.mxu1 %v9084_v25  ;;  %v9138_v24 = vcombine.high %v776_v17, %v780_v18  ;;  %v9140_v25 = vcombine.high %v777_v19, %v781_v20  ;;  %v828_v8 = vld [vmem:[%s10427_s25 + $0xf20] sm:$0xff]  ;;  %v829_v10 = vld [vmem:[%s10427_s25 + $0xf28] sm:$0xff] }
 0x146   : > { %7087 = vmatpush1.bf16.msra.mxu0 %v9081_v16  ;;  %7456 = vmatpush1.bf16.msra.mxu1 %v9083_v31  ;;  %v9137_v16 = vcombine.low %v776_v17, %v780_v18  ;;  %v9139_v31 = vcombine.low %v777_v19, %v781_v20  ;;  %v832_v17 = vld [vmem:[%s10427_s25 + $0xf40] sm:$0xff]  ;;  %v833_v19 = vld [vmem:[%s10427_s25 + $0xf48] sm:$0xff] }
 0x147   : > { %7097 = vmatprep.subr.bf16.mxu0 %v9090_v33  ;;  %7466 = vmatprep.subr.bf16.mxu1 %v9092_v34  ;;  %v9146_v33 = vcombine.high %v784_v27, %v788_v28  ;;  %v9148_v34 = vcombine.high %v785_v29, %v789_v30  ;;  %v836_v18 = vld [vmem:[%s10427_s25 + $0xf60] sm:$0xff]  ;;  %v837_v20 = vld [vmem:[%s10427_s25 + $0xf68] sm:$0xff] }
 0x149   : > { %7089 = vmatmul.mubr.bf16.vlgmr.msra.gmra.mrb[0].mxu0 %v10697_v37  ;;  %7458 = vmatmul.mubr.bf16.vlgmr.msra.gmra.mrb[0].mxu1 %v10697_v37 }
 0x14a   : > { %7098 = vmatpush1.bf16.msra.mxu0 %v9089_v41  ;;  %7467 = vmatpush1.bf16.msra.mxu1 %v9091_v42  ;;  %v9145_v41 = vcombine.low %v784_v27, %v788_v28  ;;  %v9147_v42 = vcombine.low %v785_v29, %v789_v30  ;;  %v840_v27 = vld [vmem:[%s10427_s25 + $0xf80] sm:$0xff]  ;;  %v841_v29 = vld [vmem:[%s10427_s25 + $0xf88] sm:$0xff] }
 0x14b   : > { %7099 = vmatprep.subr.bf16.mxu0 %v9098_v43  ;;  %7468 = vmatprep.subr.bf16.mxu1 %v9100_v44  ;;  %v9154_v43 = vcombine.high %v792_v35, %v796_v36  ;;  %v9156_v44 = vcombine.high %v793_v38, %v797_v39  ;;  %v844_v28 = vld [vmem:[%s10427_s25 + $0xfa0] sm:$0xff]  ;;  %v845_v30 = vld [vmem:[%s10427_s25 + $0xfa8] sm:$0xff] }
 0x14c   : > { %7129 = vmatprep.mubr.bf16.mxu0 %v10710_v46  ;;  %7498 = vmatprep.mubr.bf16.mxu1 %v10710_v46 }
 0x14e   : > { %7100 = vmatpush1.bf16.msra.mxu0 %v9097_v49  ;;  %7469 = vmatpush1.bf16.msra.mxu1 %v9099_v50  ;;  %v9153_v49 = vcombine.low %v792_v35, %v796_v36  ;;  %v9155_v50 = vcombine.low %v793_v38, %v797_v39  ;;  %v848_v35 = vld [vmem:[%s10427_s25 + $0xfc0] sm:$0xff]  ;;  %v849_v38 = vld [vmem:[%s10427_s25 + $0xfc8] sm:$0xff] }
 0x14f   : > { %7101 = vmatprep.subr.bf16.mxu0 %v9106_v51  ;;  %7470 = vmatprep.subr.bf16.mxu1 %v9108_v52  ;;  %v9162_v51 = vcombine.high %v800_v26, %v804_v45  ;;  %v9164_v52 = vcombine.high %v801_v47, %v805_v48  ;;  %v852_v36 = vld [vmem:[%s10427_s25 + $0xfe0] sm:$0xff]  ;;  %v853_v39 = vld [vmem:[%s10427_s25 + $0xfe8] sm:$0xff] }
 0x152   : > { %7102 = vmatpush1.bf16.msra.mxu0 %v9105_v59  ;;  %7471 = vmatpush1.bf16.msra.mxu1 %v9107_v60  ;;  %v9161_v59 = vcombine.low %v800_v26, %v804_v45  ;;  %v9163_v60 = vcombine.low %v801_v47, %v805_v48  ;;  %v856_v26 = vld [vmem:[%s10427_s25 + $0x1000] sm:$0xff]  ;;  %v857_v47 = vld [vmem:[%s10427_s25 + $0x1008] sm:$0xff] }
 0x153   : > { %7103 = vmatprep.subr.bf16.mxu0 %v9114_v61  ;;  %7472 = vmatprep.subr.bf16.mxu1 %v9116_v62  ;;  %v9170_v61 = vcombine.high %v808_v53, %v812_v55  ;;  %v9172_v62 = vcombine.high %v809_v56, %v813_v57  ;;  %v860_v45 = vld [vmem:[%s10427_s25 + $0x1020] sm:$0xff]  ;;  %v861_v48 = vld [vmem:[%s10427_s25 + $0x1028] sm:$0xff] }
 0x156   : > { %7104 = vmatpush1.bf16.msra.mxu0 %v9113_v3  ;;  %7473 = vmatpush1.bf16.msra.mxu1 %v9115_v4  ;;  %v9169_v3 = vcombine.low %v808_v53, %v812_v55  ;;  %v9171_v4 = vcombine.low %v809_v56, %v813_v57  ;;  %v864_v53 = vld [vmem:[%s10427_s25 + $0x1040] sm:$0xff]  ;;  %v10778_v56 = vcombine.low %v10704_v40, %v10704_v40  ;;  %v865_v57 = vld [vmem:[%s10427_s25 + $0x1048] sm:$0xff] }
 0x157   : > { %7105 = vmatprep.subr.bf16.mxu0 %v9122_v5  ;;  %7474 = vmatprep.subr.bf16.mxu1 %v9124_v6  ;;  %v9178_v5 = vcombine.high %v816_v63, %v820_v0  ;;  %v9180_v6 = vcombine.high %v817_v1, %v821_v2  ;;  %v868_v55 = vld [vmem:[%s10427_s25 + $0x1060] sm:$0xff] }
 0x158   : > { %v872_v40 = vld [vmem:[%s10427_s25 + $0x1080] sm:$0xff] }
 0x15a   : > { %7106 = vmatpush1.bf16.msra.mxu0 %v9121_v11  ;;  %7475 = vmatpush1.bf16.msra.mxu1 %v9123_v12  ;;  %v9177_v11 = vcombine.low %v816_v63, %v820_v0  ;;  %v9179_v12 = vcombine.low %v817_v1, %v821_v2  ;;  %v9226_v63 = vcombine.high %v864_v53, %v868_v55  ;;  %v876_v1 = vld [vmem:[%s10427_s25 + $0x10a0] sm:$0xff] }
 0x15b   : > { %7107 = vmatprep.subr.bf16.mxu0 %v9130_v14  ;;  %7476 = vmatprep.subr.bf16.mxu1 %v9132_v15  ;;  %v9186_v14 = vcombine.high %v824_v7, %v828_v8  ;;  %v9188_v15 = vcombine.high %v825_v9, %v829_v10 }
 0x15e   : > { %7108 = vmatpush1.bf16.msra.mxu0 %v9129_v54  ;;  %7477 = vmatpush1.bf16.msra.mxu1 %v9131_v21  ;;  %v9185_v54 = vcombine.low %v824_v7, %v828_v8  ;;  %v9187_v21 = vcombine.low %v825_v9, %v829_v10  ;;  %v9234_v7 = vcombine.high %v872_v40, %v876_v1  ;;  %v880_v9 = vld [vmem:[%s10427_s25 + $0x10c0] sm:$0xff] }
 0x15f   : > { %7109 = vmatprep.subr.bf16.mxu0 %v9138_v24  ;;  %7478 = vmatprep.subr.bf16.mxu1 %v9140_v25  ;;  %v9194_v24 = vcombine.high %v832_v17, %v836_v18  ;;  %v9196_v25 = vcombine.high %v833_v19, %v837_v20  ;;  %v884_v10 = vld [vmem:[%s10427_s25 + $0x10e0] sm:$0xff] }
 0x162   : > { %7110 = vmatpush1.bf16.msra.mxu0 %v9137_v16  ;;  %7479 = vmatpush1.bf16.msra.mxu1 %v9139_v31  ;;  %v9193_v16 = vcombine.low %v832_v17, %v836_v18  ;;  %v9195_v31 = vcombine.low %v833_v19, %v837_v20  ;;  %v9242_v17 = vcombine.high %v880_v9, %v884_v10  ;;  %v888_v19 = vld [vmem:[%s10427_s25 + $0x1100] sm:$0xff] }
 0x163   : > { %7111 = vmatprep.subr.bf16.mxu0 %v9146_v33  ;;  %7480 = vmatprep.subr.bf16.mxu1 %v9148_v34  ;;  %v9202_v33 = vcombine.high %v840_v27, %v844_v28  ;;  %v9204_v34 = vcombine.high %v841_v29, %v845_v30  ;;  %v892_v20 = vld [vmem:[%s10427_s25 + $0x1120] sm:$0xff] }
 0x166   : > { %7112 = vmatpush1.bf16.msra.mxu0 %v9145_v41  ;;  %7481 = vmatpush1.bf16.msra.mxu1 %v9147_v42  ;;  %v9201_v41 = vcombine.low %v840_v27, %v844_v28  ;;  %v9203_v42 = vcombine.low %v841_v29, %v845_v30  ;;  %v9250_v27 = vcombine.high %v888_v19, %v892_v20  ;;  %v896_v29 = vld [vmem:[%s10427_s25 + $0x1140] sm:$0xff] }
 0x167   : > { %7113 = vmatprep.subr.bf16.mxu0 %v9154_v43  ;;  %7482 = vmatprep.subr.bf16.mxu1 %v9156_v44  ;;  %v9210_v43 = vcombine.high %v848_v35, %v852_v36  ;;  %v9212_v44 = vcombine.high %v849_v38, %v853_v39  ;;  %v900_v30 = vld [vmem:[%s10427_s25 + $0x1160] sm:$0xff] }
 0x16a   : > { %7114 = vmatpush1.bf16.msra.mxu0 %v9153_v49  ;;  %7483 = vmatpush1.bf16.msra.mxu1 %v9155_v50  ;;  %v9209_v49 = vcombine.low %v848_v35, %v852_v36  ;;  %v9211_v50 = vcombine.low %v849_v38, %v853_v39  ;;  %v9258_v35 = vcombine.high %v896_v29, %v900_v30  ;;  %v904_v38 = vld [vmem:[%s10427_s25 + $0x1180] sm:$0xff] }
 0x16b   : > { %7115 = vmatprep.subr.bf16.mxu0 %v9162_v51  ;;  %7484 = vmatprep.subr.bf16.mxu1 %v9164_v52  ;;  %v9218_v51 = vcombine.high %v856_v26, %v860_v45  ;;  %v9220_v52 = vcombine.high %v857_v47, %v861_v48  ;;  %v908_v39 = vld [vmem:[%s10427_s25 + $0x11a0] sm:$0xff] }
 0x16e   : > { %7116 = vmatpush1.bf16.msra.mxu0 %v9161_v59  ;;  %7485 = vmatpush1.bf16.msra.mxu1 %v9163_v60  ;;  %v869_v59 = vld [vmem:[%s10427_s25 + $0x1068] sm:$0xff]  ;;  %v10785_v60 = vld [vmem:[%s11762_s0 + $0x20] sm:$0xff] }
 0x16f   : > { %7117 = vmatprep.subr.bf16.mxu0 %v9170_v61  ;;  %7486 = vmatprep.subr.bf16.mxu1 %v9172_v62  ;;  %v9217_v61 = vcombine.low %v856_v26, %v860_v45  ;;  %v9219_v62 = vcombine.low %v857_v47, %v861_v48  ;;  %v9228_v0 = vcombine.high %v865_v57, %v869_v59  ;;  %v912_v47 = vld [vmem:[%s10427_s25 + $0x11c0] sm:$0xff] }
 0x170   : > { %v10791_v2 = vcombine.high %v10785_v60, %v10785_v60  ;;  %v9266_v26 = vcombine.high %v904_v38, %v908_v39  ;;  %v916_v48 = vld [vmem:[%s10427_s25 + $0x11e0] sm:$0xff] }
 0x172   : > { %7118 = vmatpush1.bf16.msra.mxu0 %v9169_v3  ;;  %7487 = vmatpush1.bf16.msra.mxu1 %v9171_v4  ;;  %v873_v3 = vld [vmem:[%s10427_s25 + $0x1088] sm:$0xff] }
 0x173   : > { %7119 = vmatprep.subr.bf16.mxu0 %v9178_v5  ;;  %7488 = vmatprep.subr.bf16.mxu1 %v9180_v6  ;;  %v877_v4 = vld [vmem:[%s10427_s25 + $0x10a8] sm:$0xff]  ;;  %v9225_v5 = vcombine.low %v864_v53, %v868_v55  ;;  %v9227_v6 = vcombine.low %v865_v57, %v869_v59  ;;  %v9274_v53 = vcombine.high %v912_v47, %v916_v48  ;;  %v920_v57 = vld [vmem:[%s10427_s25 + $0x1200] sm:$0xff] }
 0x174   : > { %v9236_v8 = vcombine.high %v873_v3, %v877_v4  ;;  %v924_v59 = vld [vmem:[%s10427_s25 + $0x1220] sm:$0xff] }
 0x176   : > { %7120 = vmatpush1.bf16.msra.mxu0 %v9177_v11  ;;  %7489 = vmatpush1.bf16.msra.mxu1 %v9179_v12  ;;  %v881_v11 = vld [vmem:[%s10427_s25 + $0x10c8] sm:$0xff] }
 0x177   : > { %7121 = vmatprep.subr.bf16.mxu0 %v9186_v14  ;;  %7490 = vmatprep.subr.bf16.mxu1 %v9188_v15  ;;  %v885_v12 = vld [vmem:[%s10427_s25 + $0x10e8] sm:$0xff]  ;;  %v9233_v14 = vcombine.low %v872_v40, %v876_v1  ;;  %v9235_v15 = vcombine.low %v873_v3, %v877_v4  ;;  %v9282_v40 = vcombine.high %v920_v57, %v924_v59  ;;  %v928_v3 = vld [vmem:[%s10427_s25 + $0x1240] sm:$0xff] }
 0x178   : > { %v9244_v18 = vcombine.high %v881_v11, %v885_v12  ;;  %v932_v4 = vld [vmem:[%s10427_s25 + $0x1260] sm:$0xff] }
 0x17a   : > { %7122 = vmatpush1.bf16.msra.mxu0 %v9185_v54  ;;  %7491 = vmatpush1.bf16.msra.mxu1 %v9187_v21  ;;  %v889_v54 = vld [vmem:[%s10427_s25 + $0x1108] sm:$0xff] }
 0x17b   : > { %7123 = vmatprep.subr.bf16.mxu0 %v9194_v24  ;;  %7492 = vmatprep.subr.bf16.mxu1 %v9196_v25  ;;  %v893_v21 = vld [vmem:[%s10427_s25 + $0x1128] sm:$0xff]  ;;  %v9241_v24 = vcombine.low %v880_v9, %v884_v10  ;;  %v9243_v25 = vcombine.low %v881_v11, %v885_v12  ;;  %v9290_v9 = vcombine.high %v928_v3, %v932_v4  ;;  %v936_v11 = vld [vmem:[%s10427_s25 + $0x1280] sm:$0xff] }
 0x17c   : > { %v9252_v28 = vcombine.high %v889_v54, %v893_v21  ;;  %v940_v12 = vld [vmem:[%s10427_s25 + $0x12a0] sm:$0xff] }
 0x17e   : > { %7124 = vmatpush1.bf16.msra.mxu0 %v9193_v16  ;;  %7493 = vmatpush1.bf16.msra.mxu1 %v9195_v31  ;;  %v897_v16 = vld [vmem:[%s10427_s25 + $0x1148] sm:$0xff] }
 0x17f   : > { %7125 = vmatprep.subr.bf16.mxu0 %v9202_v33  ;;  %7494 = vmatprep.subr.bf16.mxu1 %v9204_v34  ;;  %v901_v31 = vld [vmem:[%s10427_s25 + $0x1168] sm:$0xff]  ;;  %v9249_v33 = vcombine.low %v888_v19, %v892_v20  ;;  %v9251_v34 = vcombine.low %v889_v54, %v893_v21  ;;  %v9298_v19 = vcombine.high %v936_v11, %v940_v12  ;;  %v944_v54 = vld [vmem:[%s10427_s25 + $0x12c0] sm:$0xff] }
 0x180   : > { %v9260_v36 = vcombine.high %v897_v16, %v901_v31  ;;  %v948_v21 = vld [vmem:[%s10427_s25 + $0x12e0] sm:$0xff] }
 0x182   : > { %7126 = vmatpush1.bf16.msra.mxu0 %v9201_v41  ;;  %7495 = vmatpush1.bf16.msra.mxu1 %v9203_v42  ;;  %v905_v41 = vld [vmem:[%s10427_s25 + $0x1188] sm:$0xff] }
 0x183   : > { %7127 = vmatprep.subr.bf16.mxu0 %v9210_v43  ;;  %7496 = vmatprep.subr.bf16.mxu1 %v9212_v44  ;;  %v909_v42 = vld [vmem:[%s10427_s25 + $0x11a8] sm:$0xff]  ;;  %v9257_v43 = vcombine.low %v896_v29, %v900_v30  ;;  %v9259_v44 = vcombine.low %v897_v16, %v901_v31  ;;  %v9306_v29 = vcombine.high %v944_v54, %v948_v21  ;;  %v952_v16 = vld [vmem:[%s10427_s25 + $0x1300] sm:$0xff] }
 0x184   : > { %v9268_v45 = vcombine.high %v905_v41, %v909_v42  ;;  %v956_v31 = vld [vmem:[%s10427_s25 + $0x1320] sm:$0xff] }
 0x186   : > { %7128 = vmatpush1.bf16.msra.mxu0 %v9209_v49  ;;  %7497 = vmatpush1.bf16.msra.mxu1 %v9211_v50  ;;  %v913_v49 = vld [vmem:[%s10427_s25 + $0x11c8] sm:$0xff] }
 0x187   : > { %7138 = vmatprep.subr.bf16.mxu0 %v9218_v51  ;;  %7507 = vmatprep.subr.bf16.mxu1 %v9220_v52  ;;  %v917_v50 = vld [vmem:[%s10427_s25 + $0x11e8] sm:$0xff]  ;;  %v9265_v51 = vcombine.low %v904_v38, %v908_v39  ;;  %v9267_v52 = vcombine.low %v905_v41, %v909_v42  ;;  %v9314_v38 = vcombine.high %v952_v16, %v956_v31  ;;  %v960_v41 = vld [vmem:[%s10427_s25 + $0x1340] sm:$0xff] }
 0x188   : > { %v9276_v55 = vcombine.high %v913_v49, %v917_v50  ;;  %v964_v42 = vld [vmem:[%s10427_s25 + $0x1360] sm:$0xff] }
 0x189   : > { %7130 = vmatmul.mubr.bf16.vlgmr.msra.gmra.mrb[0].mxu0 %v10778_v56  ;;  %7499 = vmatmul.mubr.bf16.vlgmr.msra.gmra.mrb[0].mxu1 %v10778_v56 }
 0x18a   : > { %7139 = vmatpush1.bf16.msra.mxu0 %v9217_v61  ;;  %7508 = vmatpush1.bf16.msra.mxu1 %v9219_v62  ;;  %v921_v61 = vld [vmem:[%s10427_s25 + $0x1208] sm:$0xff] }
 0x18b   : > { %7140 = vmatprep.subr.bf16.mxu0 %v9226_v63  ;;  %7509 = vmatprep.subr.bf16.mxu1 %v9228_v0  ;;  %v925_v62 = vld [vmem:[%s10427_s25 + $0x1228] sm:$0xff]  ;;  %v9273_v63 = vcombine.low %v912_v47, %v916_v48  ;;  %v9275_v0 = vcombine.low %v913_v49, %v917_v50  ;;  %v9322_v47 = vcombine.high %v960_v41, %v964_v42  ;;  %v968_v49 = vld [vmem:[%s10427_s25 + $0x1380] sm:$0xff] }
 0x18c   : > { %7170 = vmatprep.mubr.bf16.mxu0 %v10791_v2  ;;  %7539 = vmatprep.mubr.bf16.mxu1 %v10791_v2  ;;  %v9284_v1 = vcombine.high %v921_v61, %v925_v62  ;;  %v972_v50 = vld [vmem:[%s10427_s25 + $0x13a0] sm:$0xff] }
 0x18e   : > { %7141 = vmatpush1.bf16.msra.mxu0 %v9225_v5  ;;  %7510 = vmatpush1.bf16.msra.mxu1 %v9227_v6  ;;  %v929_v5 = vld [vmem:[%s10427_s25 + $0x1248] sm:$0xff] }
 0x18f   : > { %7142 = vmatprep.subr.bf16.mxu0 %v9234_v7  ;;  %7511 = vmatprep.subr.bf16.mxu1 %v9236_v8  ;;  %v933_v6 = vld [vmem:[%s10427_s25 + $0x1268] sm:$0xff]  ;;  %v9281_v7 = vcombine.low %v920_v57, %v924_v59  ;;  %v9283_v8 = vcombine.low %v921_v61, %v925_v62  ;;  %v9330_v57 = vcombine.high %v968_v49, %v972_v50  ;;  %v976_v61 = vld [vmem:[%s10427_s25 + $0x13c0] sm:$0xff] }
 0x190   : > { %v9292_v10 = vcombine.high %v929_v5, %v933_v6  ;;  %v980_v62 = vld [vmem:[%s10427_s25 + $0x13e0] sm:$0xff] }
 0x192   : > { %7143 = vmatpush1.bf16.msra.mxu0 %v9233_v14  ;;  %7512 = vmatpush1.bf16.msra.mxu1 %v9235_v15  ;;  %v937_v14 = vld [vmem:[%s10427_s25 + $0x1288] sm:$0xff] }
 0x193   : > { %7144 = vmatprep.subr.bf16.mxu0 %v9242_v17  ;;  %7513 = vmatprep.subr.bf16.mxu1 %v9244_v18  ;;  %v941_v15 = vld [vmem:[%s10427_s25 + $0x12a8] sm:$0xff]  ;;  %v9289_v17 = vcombine.low %v928_v3, %v932_v4  ;;  %v9291_v18 = vcombine.low %v929_v5, %v933_v6  ;;  %v9338_v3 = vcombine.high %v976_v61, %v980_v62  ;;  %v984_v5 = vld [vmem:[%s10427_s25 + $0x1400] sm:$0xff] }
 0x194   : > { %v9300_v20 = vcombine.high %v937_v14, %v941_v15  ;;  %v988_v6 = vld [vmem:[%s10427_s25 + $0x1420] sm:$0xff] }
 0x196   : > { %7145 = vmatpush1.bf16.msra.mxu0 %v9241_v24  ;;  %7514 = vmatpush1.bf16.msra.mxu1 %v9243_v25  ;;  %v945_v24 = vld [vmem:[%s10427_s25 + $0x12c8] sm:$0xff] }
 0x197   : > { %7146 = vmatprep.subr.bf16.mxu0 %v9250_v27  ;;  %7515 = vmatprep.subr.bf16.mxu1 %v9252_v28  ;;  %v949_v25 = vld [vmem:[%s10427_s25 + $0x12e8] sm:$0xff]  ;;  %v9297_v27 = vcombine.low %v936_v11, %v940_v12  ;;  %v9299_v28 = vcombine.low %v937_v14, %v941_v15  ;;  %v9346_v11 = vcombine.high %v984_v5, %v988_v6  ;;  %v992_v14 = vld [vmem:[%s10427_s25 + $0x1440] sm:$0xff] }
 0x198   : > { %v9308_v30 = vcombine.high %v945_v24, %v949_v25  ;;  %v996_v15 = vld [vmem:[%s10427_s25 + $0x1460] sm:$0xff] }
 0x19a   : > { %7147 = vmatpush1.bf16.msra.mxu0 %v9249_v33  ;;  %7516 = vmatpush1.bf16.msra.mxu1 %v9251_v34  ;;  %v953_v33 = vld [vmem:[%s10427_s25 + $0x1308] sm:$0xff] }
 0x19b   : > { %7148 = vmatprep.subr.bf16.mxu0 %v9258_v35  ;;  %7517 = vmatprep.subr.bf16.mxu1 %v9260_v36  ;;  %v957_v34 = vld [vmem:[%s10427_s25 + $0x1328] sm:$0xff]  ;;  %v9305_v35 = vcombine.low %v944_v54, %v948_v21  ;;  %v9307_v36 = vcombine.low %v945_v24, %v949_v25  ;;  %v9345_v54 = vcombine.low %v984_v5, %v988_v6 }
 0x19c   : > { %v9316_v39 = vcombine.high %v953_v33, %v957_v34  ;;  %v9354_v24 = vcombine.high %v992_v14, %v996_v15 }
 0x19e   : > { %7149 = vmatpush1.bf16.msra.mxu0 %v9257_v43  ;;  %7518 = vmatpush1.bf16.msra.mxu1 %v9259_v44  ;;  %v961_v43 = vld [vmem:[%s10427_s25 + $0x1348] sm:$0xff] }
 0x19f   : > { %7150 = vmatprep.subr.bf16.mxu0 %v9266_v26  ;;  %7519 = vmatprep.subr.bf16.mxu1 %v9268_v45  ;;  %v965_v44 = vld [vmem:[%s10427_s25 + $0x1368] sm:$0xff]  ;;  %v9313_v26 = vcombine.low %v952_v16, %v956_v31  ;;  %v9315_v45 = vcombine.low %v953_v33, %v957_v34  ;;  %v9353_v16 = vcombine.low %v992_v14, %v996_v15 }
 0x1a0   : > { %v9324_v48 = vcombine.high %v961_v43, %v965_v44 }
 0x1a2   : > { %7151 = vmatpush1.bf16.msra.mxu0 %v9265_v51  ;;  %7520 = vmatpush1.bf16.msra.mxu1 %v9267_v52  ;;  %v969_v51 = vld [vmem:[%s10427_s25 + $0x1388] sm:$0xff] }
 0x1a3   : > { %7152 = vmatprep.subr.bf16.mxu0 %v9274_v53  ;;  %7521 = vmatprep.subr.bf16.mxu1 %v9276_v55  ;;  %v973_v52 = vld [vmem:[%s10427_s25 + $0x13a8] sm:$0xff]  ;;  %v9321_v53 = vcombine.low %v960_v41, %v964_v42  ;;  %v9323_v55 = vcombine.low %v961_v43, %v965_v44 }
 0x1a4   : > { %v9332_v59 = vcombine.high %v969_v51, %v973_v52 }
 0x1a6   : > { %7153 = vmatpush1.bf16.msra.mxu0 %v9273_v63  ;;  %7522 = vmatpush1.bf16.msra.mxu1 %v9275_v0  ;;  %v977_v63 = vld [vmem:[%s10427_s25 + $0x13c8] sm:$0xff] }
 0x1a7   : > { %7154 = vmatprep.subr.bf16.mxu0 %v9282_v40  ;;  %7523 = vmatprep.subr.bf16.mxu1 %v9284_v1  ;;  %v981_v0 = vld [vmem:[%s10427_s25 + $0x13e8] sm:$0xff]  ;;  %v9329_v40 = vcombine.low %v968_v49, %v972_v50  ;;  %v9331_v1 = vcombine.low %v969_v51, %v973_v52 }
 0x1a8   : > { %v9340_v4 = vcombine.high %v977_v63, %v981_v0 }
 0x1aa   : > { %7155 = vmatpush1.bf16.msra.mxu0 %v9281_v7  ;;  %7524 = vmatpush1.bf16.msra.mxu1 %v9283_v8  ;;  %v985_v7 = vld [vmem:[%s10427_s25 + $0x1408] sm:$0xff] }
 0x1ab   : > { %7156 = vmatprep.subr.bf16.mxu0 %v9290_v9  ;;  %7525 = vmatprep.subr.bf16.mxu1 %v9292_v10  ;;  %v989_v8 = vld [vmem:[%s10427_s25 + $0x1428] sm:$0xff]  ;;  %v9337_v9 = vcombine.low %v976_v61, %v980_v62  ;;  %v9339_v10 = vcombine.low %v977_v63, %v981_v0 }
 0x1ac   : > { %v9348_v12 = vcombine.high %v985_v7, %v989_v8  ;;  %v9347_v21 = vcombine.low %v985_v7, %v989_v8 }
 0x1ae   : > { %7157 = vmatpush1.bf16.msra.mxu0 %v9289_v17  ;;  %7526 = vmatpush1.bf16.msra.mxu1 %v9291_v18  ;;  %v10859_v17 = vcombine.low %v10785_v60, %v10785_v60  ;;  %v993_v18 = vld [vmem:[%s10427_s25 + $0x1448] sm:$0xff]  ;;  %v1000_v60 = vld [vmem:[%s10427_s25 + $0x1480] sm:$0xff] }
 0x1af   : > { %7158 = vmatprep.subr.bf16.mxu0 %v9298_v19  ;;  %7527 = vmatprep.subr.bf16.mxu1 %v9300_v20  ;;  %v997_v19 = vld [vmem:[%s10427_s25 + $0x1468] sm:$0xff] }
 0x1b0   : > { %v10866_v20 = vld [vmem:[%s11762_s0 + $0x28] sm:$0xff]  ;;  %v9356_v25 = vcombine.high %v993_v18, %v997_v19  ;;  %v9355_v31 = vcombine.low %v993_v18, %v997_v19 }
 0x1b2   : > { %7159 = vmatpush1.bf16.msra.mxu0 %v9297_v27  ;;  %7528 = vmatpush1.bf16.msra.mxu1 %v9299_v28  ;;  %v1004_v27 = vld [vmem:[%s10427_s25 + $0x14a0] sm:$0xff]  ;;  %v10872_v28 = vcombine.high %v10866_v20, %v10866_v20 }
 0x1b3   : > { %7160 = vmatprep.subr.bf16.mxu0 %v9306_v29  ;;  %7529 = vmatprep.subr.bf16.mxu1 %v9308_v30  ;;  %v1001_v29 = vld [vmem:[%s10427_s25 + $0x1488] sm:$0xff]  ;;  %v9362_v33 = vcombine.high %v1000_v60, %v1004_v27  ;;  %v9361_v41 = vcombine.low %v1000_v60, %v1004_v27 }
 0x1b4   : > { %v1005_v30 = vld [vmem:[%s10427_s25 + $0x14a8] sm:$0xff] }
 0x1b5   : > { %v9364_v34 = vcombine.high %v1001_v29, %v1005_v30  ;;  %v9363_v42 = vcombine.low %v1001_v29, %v1005_v30 }
 0x1b6   : > { %7161 = vmatpush1.bf16.msra.mxu0 %v9305_v35  ;;  %7530 = vmatpush1.bf16.msra.mxu1 %v9307_v36  ;;  %v1008_v35 = vld [vmem:[%s10427_s25 + $0x14c0] sm:$0xff] }
 0x1b7   : > { %7162 = vmatprep.subr.bf16.mxu0 %v9314_v38  ;;  %7531 = vmatprep.subr.bf16.mxu1 %v9316_v39  ;;  %v1012_v36 = vld [vmem:[%s10427_s25 + $0x14e0] sm:$0xff]  ;;  %v1009_v38 = vld [vmem:[%s10427_s25 + $0x14c8] sm:$0xff] }
 0x1b8   : > { %v1013_v39 = vld [vmem:[%s10427_s25 + $0x14e8] sm:$0xff]  ;;  %v9370_v43 = vcombine.high %v1008_v35, %v1012_v36  ;;  %v9369_v49 = vcombine.low %v1008_v35, %v1012_v36 }
 0x1b9   : > { %v9372_v44 = vcombine.high %v1009_v38, %v1013_v39  ;;  %v9371_v50 = vcombine.low %v1009_v38, %v1013_v39 }
 0x1ba   : > { %7163 = vmatpush1.bf16.msra.mxu0 %v9313_v26  ;;  %7532 = vmatpush1.bf16.msra.mxu1 %v9315_v45  ;;  %v1016_v26 = vld [vmem:[%s10427_s25 + $0x1500] sm:$0xff] }
 0x1bb   : > { %7164 = vmatprep.subr.bf16.mxu0 %v9322_v47  ;;  %7533 = vmatprep.subr.bf16.mxu1 %v9324_v48  ;;  %v1020_v45 = vld [vmem:[%s10427_s25 + $0x1520] sm:$0xff]  ;;  %v1017_v47 = vld [vmem:[%s10427_s25 + $0x1508] sm:$0xff] }
 0x1bc   : > { %v1021_v48 = vld [vmem:[%s10427_s25 + $0x1528] sm:$0xff]  ;;  %v9378_v51 = vcombine.high %v1016_v26, %v1020_v45  ;;  %v9377_v61 = vcombine.low %v1016_v26, %v1020_v45 }
 0x1bd   : > { %v9380_v52 = vcombine.high %v1017_v47, %v1021_v48  ;;  %v9379_v62 = vcombine.low %v1017_v47, %v1021_v48 }
 0x1be   : > { %7165 = vmatpush1.bf16.msra.mxu0 %v9321_v53  ;;  %7534 = vmatpush1.bf16.msra.mxu1 %v9323_v55  ;;  %v1024_v53 = vld [vmem:[%s10427_s25 + $0x1540] sm:$0xff] }
 0x1bf   : > { %7166 = vmatprep.subr.bf16.mxu0 %v9330_v57  ;;  %7535 = vmatprep.subr.bf16.mxu1 %v9332_v59  ;;  %v1028_v55 = vld [vmem:[%s10427_s25 + $0x1560] sm:$0xff]  ;;  %v1025_v57 = vld [vmem:[%s10427_s25 + $0x1548] sm:$0xff] }
 0x1c0   : > { %v1029_v59 = vld [vmem:[%s10427_s25 + $0x1568] sm:$0xff]  ;;  %v9386_v63 = vcombine.high %v1024_v53, %v1028_v55  ;;  %v9385_v5 = vcombine.low %v1024_v53, %v1028_v55 }
 0x1c1   : > { %v9388_v0 = vcombine.high %v1025_v57, %v1029_v59  ;;  %v9387_v6 = vcombine.low %v1025_v57, %v1029_v59 }
 0x1c2   : > { %7167 = vmatpush1.bf16.msra.mxu0 %v9329_v40  ;;  %7536 = vmatpush1.bf16.msra.mxu1 %v9331_v1  ;;  %v1032_v40 = vld [vmem:[%s10427_s25 + $0x1580] sm:$0xff] }
 0x1c3   : > { %7168 = vmatprep.subr.bf16.mxu0 %v9338_v3  ;;  %7537 = vmatprep.subr.bf16.mxu1 %v9340_v4  ;;  %v1036_v1 = vld [vmem:[%s10427_s25 + $0x15a0] sm:$0xff]  ;;  %v1033_v3 = vld [vmem:[%s10427_s25 + $0x1588] sm:$0xff] }
 0x1c4   : > { %v1037_v4 = vld [vmem:[%s10427_s25 + $0x15a8] sm:$0xff]  ;;  %v9394_v7 = vcombine.high %v1032_v40, %v1036_v1  ;;  %v9393_v14 = vcombine.low %v1032_v40, %v1036_v1 }
 0x1c5   : > { %v9396_v8 = vcombine.high %v1033_v3, %v1037_v4  ;;  %v9395_v15 = vcombine.low %v1033_v3, %v1037_v4 }
 0x1c6   : > { %7169 = vmatpush1.bf16.msra.mxu0 %v9337_v9  ;;  %7538 = vmatpush1.bf16.msra.mxu1 %v9339_v10  ;;  %v1040_v9 = vld [vmem:[%s10427_s25 + $0x15c0] sm:$0xff] }
 0x1c7   : > { %7179 = vmatprep.subr.bf16.mxu0 %v9346_v11  ;;  %7548 = vmatprep.subr.bf16.mxu1 %v9348_v12  ;;  %v1044_v10 = vld [vmem:[%s10427_s25 + $0x15e0] sm:$0xff]  ;;  %v1041_v11 = vld [vmem:[%s10427_s25 + $0x15c8] sm:$0xff] }
 0x1c8   : > { %v1045_v12 = vld [vmem:[%s10427_s25 + $0x15e8] sm:$0xff]  ;;  %v9402_v18 = vcombine.high %v1040_v9, %v1044_v10  ;;  %v9401_v60 = vcombine.low %v1040_v9, %v1044_v10 }
 0x1c9   : > { %7171 = vmatmul.mubr.bf16.vlgmr.msra.gmra.mrb[0].mxu0 %v10859_v17  ;;  %7540 = vmatmul.mubr.bf16.vlgmr.msra.gmra.mrb[0].mxu1 %v10859_v17  ;;  %v9404_v19 = vcombine.high %v1041_v11, %v1045_v12  ;;  %v9403_v27 = vcombine.low %v1041_v11, %v1045_v12 }
 0x1ca   : > { %7180 = vmatpush1.bf16.msra.mxu0 %v9345_v54  ;;  %7549 = vmatpush1.bf16.msra.mxu1 %v9347_v21  ;;  %v1048_v54 = vld [vmem:[%s10427_s25 + $0x1600] sm:$0xff] }
 0x1cb   : > { %7181 = vmatprep.subr.bf16.mxu0 %v9354_v24  ;;  %7550 = vmatprep.subr.bf16.mxu1 %v9356_v25  ;;  %v1052_v21 = vld [vmem:[%s10427_s25 + $0x1620] sm:$0xff]  ;;  %v1049_v24 = vld [vmem:[%s10427_s25 + $0x1608] sm:$0xff] }
 0x1cc   : > { %7211 = vmatprep.mubr.bf16.mxu0 %v10872_v28  ;;  %7580 = vmatprep.mubr.bf16.mxu1 %v10872_v28  ;;  %v1053_v25 = vld [vmem:[%s10427_s25 + $0x1628] sm:$0xff]  ;;  %v9410_v29 = vcombine.high %v1048_v54, %v1052_v21  ;;  %v9409_v35 = vcombine.low %v1048_v54, %v1052_v21 }
 0x1cd   : > { %v9412_v30 = vcombine.high %v1049_v24, %v1053_v25  ;;  %v9411_v36 = vcombine.low %v1049_v24, %v1053_v25 }
 0x1ce   : > { %7182 = vmatpush1.bf16.msra.mxu0 %v9353_v16  ;;  %7551 = vmatpush1.bf16.msra.mxu1 %v9355_v31  ;;  %v1056_v16 = vld [vmem:[%s10427_s25 + $0x1640] sm:$0xff] }
 0x1cf   : > { %7183 = vmatprep.subr.bf16.mxu0 %v9362_v33  ;;  %7552 = vmatprep.subr.bf16.mxu1 %v9364_v34  ;;  %v1060_v31 = vld [vmem:[%s10427_s25 + $0x1660] sm:$0xff]  ;;  %v1057_v33 = vld [vmem:[%s10427_s25 + $0x1648] sm:$0xff] }
 0x1d0   : > { %v1061_v34 = vld [vmem:[%s10427_s25 + $0x1668] sm:$0xff]  ;;  %v9418_v38 = vcombine.high %v1056_v16, %v1060_v31  ;;  %v9417_v26 = vcombine.low %v1056_v16, %v1060_v31 }
 0x1d1   : > { %v9420_v39 = vcombine.high %v1057_v33, %v1061_v34  ;;  %v9419_v45 = vcombine.low %v1057_v33, %v1061_v34 }
 0x1d2   : > { %7184 = vmatpush1.bf16.msra.mxu0 %v9361_v41  ;;  %7553 = vmatpush1.bf16.msra.mxu1 %v9363_v42  ;;  %v1064_v41 = vld [vmem:[%s10427_s25 + $0x1680] sm:$0xff] }
 0x1d3   : > { %7185 = vmatprep.subr.bf16.mxu0 %v9370_v43  ;;  %7554 = vmatprep.subr.bf16.mxu1 %v9372_v44  ;;  %v1068_v42 = vld [vmem:[%s10427_s25 + $0x16a0] sm:$0xff]  ;;  %v1065_v43 = vld [vmem:[%s10427_s25 + $0x1688] sm:$0xff] }
 0x1d4   : > { %v1069_v44 = vld [vmem:[%s10427_s25 + $0x16a8] sm:$0xff]  ;;  %v9426_v47 = vcombine.high %v1064_v41, %v1068_v42  ;;  %v9425_v53 = vcombine.low %v1064_v41, %v1068_v42 }
 0x1d5   : > { %v9428_v48 = vcombine.high %v1065_v43, %v1069_v44  ;;  %v9427_v55 = vcombine.low %v1065_v43, %v1069_v44 }
 0x1d6   : > { %7186 = vmatpush1.bf16.msra.mxu0 %v9369_v49  ;;  %7555 = vmatpush1.bf16.msra.mxu1 %v9371_v50  ;;  %v1072_v49 = vld [vmem:[%s10427_s25 + $0x16c0] sm:$0xff] }
 0x1d7   : > { %7187 = vmatprep.subr.bf16.mxu0 %v9378_v51  ;;  %7556 = vmatprep.subr.bf16.mxu1 %v9380_v52  ;;  %v1076_v50 = vld [vmem:[%s10427_s25 + $0x16e0] sm:$0xff]  ;;  %v1073_v51 = vld [vmem:[%s10427_s25 + $0x16c8] sm:$0xff] }
 0x1d8   : > { %v1077_v52 = vld [vmem:[%s10427_s25 + $0x16e8] sm:$0xff]  ;;  %v9434_v57 = vcombine.high %v1072_v49, %v1076_v50  ;;  %v9433_v40 = vcombine.low %v1072_v49, %v1076_v50  ;;  %v10947_v50 = vld [vmem:[%s11762_s0 + $0x30] sm:$0xff] }
 0x1d9   : > { %v9436_v59 = vcombine.high %v1073_v51, %v1077_v52  ;;  %v9435_v1 = vcombine.low %v1073_v51, %v1077_v52  ;;  %v1125_v49 = vld [vmem:[%s10427_s25 + $0x1868] sm:$0xff] }
 0x1da   : > { %7188 = vmatpush1.bf16.msra.mxu0 %v9377_v61  ;;  %7557 = vmatpush1.bf16.msra.mxu1 %v9379_v62  ;;  %v1080_v61 = vld [vmem:[%s10427_s25 + $0x1700] sm:$0xff] }
 0x1db   : > { %7189 = vmatprep.subr.bf16.mxu0 %v9386_v63  ;;  %7558 = vmatprep.subr.bf16.mxu1 %v9388_v0  ;;  %v1084_v62 = vld [vmem:[%s10427_s25 + $0x1720] sm:$0xff]  ;;  %v1081_v63 = vld [vmem:[%s10427_s25 + $0x1708] sm:$0xff] }
 0x1dc   : > { %v1085_v0 = vld [vmem:[%s10427_s25 + $0x1728] sm:$0xff]  ;;  %v9442_v3 = vcombine.high %v1080_v61, %v1084_v62  ;;  %v9441_v9 = vcombine.low %v1080_v61, %v1084_v62 }
 0x1dd   : > { %v9444_v4 = vcombine.high %v1081_v63, %v1085_v0  ;;  %v9443_v10 = vcombine.low %v1081_v63, %v1085_v0  ;;  %v1129_v61 = vld [vmem:[%s10427_s25 + $0x1888] sm:$0xff] }
 0x1de   : > { %7190 = vmatpush1.bf16.msra.mxu0 %v9385_v5  ;;  %7559 = vmatpush1.bf16.msra.mxu1 %v9387_v6  ;;  %v1088_v5 = vld [vmem:[%s10427_s25 + $0x1740] sm:$0xff]  ;;  %v1133_v62 = vld [vmem:[%s10427_s25 + $0x18a8] sm:$0xff] }
 0x1df   : > { %7191 = vmatprep.subr.bf16.mxu0 %v9394_v7  ;;  %7560 = vmatprep.subr.bf16.mxu1 %v9396_v8  ;;  %v1092_v6 = vld [vmem:[%s10427_s25 + $0x1760] sm:$0xff]  ;;  %v1089_v7 = vld [vmem:[%s10427_s25 + $0x1748] sm:$0xff] }
 0x1e0   : > { %v1093_v8 = vld [vmem:[%s10427_s25 + $0x1768] sm:$0xff]  ;;  %v9450_v11 = vcombine.high %v1088_v5, %v1092_v6  ;;  %v9449_v54 = vcombine.low %v1088_v5, %v1092_v6 }
 0x1e1   : > { %v9452_v12 = vcombine.high %v1089_v7, %v1093_v8  ;;  %v9451_v21 = vcombine.low %v1089_v7, %v1093_v8  ;;  %v1137_v5 = vld [vmem:[%s10427_s25 + $0x18c8] sm:$0xff]  ;;  %v9491_v8 = vcombine.low %v1129_v61, %v1133_v62 }
 0x1e2   : > { %7192 = vmatpush1.bf16.msra.mxu0 %v9393_v14  ;;  %7561 = vmatpush1.bf16.msra.mxu1 %v9395_v15  ;;  %v1096_v14 = vld [vmem:[%s10427_s25 + $0x1780] sm:$0xff]  ;;  %v1141_v6 = vld [vmem:[%s10427_s25 + $0x18e8] sm:$0xff] }
 0x1e3   : > { %7193 = vmatprep.subr.bf16.mxu0 %v9402_v18  ;;  %7562 = vmatprep.subr.bf16.mxu1 %v9404_v19  ;;  %v1100_v15 = vld [vmem:[%s10427_s25 + $0x17a0] sm:$0xff]  ;;  %v1097_v18 = vld [vmem:[%s10427_s25 + $0x1788] sm:$0xff] }
 0x1e4   : > { %v1101_v19 = vld [vmem:[%s10427_s25 + $0x17a8] sm:$0xff]  ;;  %v9458_v24 = vcombine.high %v1096_v14, %v1100_v15  ;;  %v9457_v16 = vcombine.low %v1096_v14, %v1100_v15 }
 0x1e5   : > { %v9460_v25 = vcombine.high %v1097_v18, %v1101_v19  ;;  %v9459_v31 = vcombine.low %v1097_v18, %v1101_v19  ;;  %v1145_v14 = vld [vmem:[%s10427_s25 + $0x1908] sm:$0xff]  ;;  %v9499_v19 = vcombine.low %v1137_v5, %v1141_v6 }
 0x1e6   : > { %7194 = vmatpush1.bf16.msra.mxu0 %v9401_v60  ;;  %7563 = vmatpush1.bf16.msra.mxu1 %v9403_v27  ;;  %v1104_v60 = vld [vmem:[%s10427_s25 + $0x17c0] sm:$0xff]  ;;  %v1149_v15 = vld [vmem:[%s10427_s25 + $0x1928] sm:$0xff] }
 0x1e7   : > { %7195 = vmatprep.subr.bf16.mxu0 %v9410_v29  ;;  %7564 = vmatprep.subr.bf16.mxu1 %v9412_v30  ;;  %v1108_v27 = vld [vmem:[%s10427_s25 + $0x17e0] sm:$0xff]  ;;  %v1105_v29 = vld [vmem:[%s10427_s25 + $0x17c8] sm:$0xff] }
 0x1e8   : > { %v1109_v30 = vld [vmem:[%s10427_s25 + $0x17e8] sm:$0xff]  ;;  %v9466_v33 = vcombine.high %v1104_v60, %v1108_v27  ;;  %v9465_v41 = vcombine.low %v1104_v60, %v1108_v27 }
 0x1e9   : > { %v9468_v34 = vcombine.high %v1105_v29, %v1109_v30  ;;  %v9467_v42 = vcombine.low %v1105_v29, %v1109_v30  ;;  %v1153_v60 = vld [vmem:[%s10427_s25 + $0x1948] sm:$0xff]  ;;  %v9507_v30 = vcombine.low %v1145_v14, %v1149_v15 }
 0x1ea   : > { %7196 = vmatpush1.bf16.msra.mxu0 %v9409_v35  ;;  %7565 = vmatpush1.bf16.msra.mxu1 %v9411_v36  ;;  %v1112_v35 = vld [vmem:[%s10427_s25 + $0x1800] sm:$0xff]  ;;  %v1157_v27 = vld [vmem:[%s10427_s25 + $0x1968] sm:$0xff] }
 0x1eb   : > { %7197 = vmatprep.subr.bf16.mxu0 %v9418_v38  ;;  %7566 = vmatprep.subr.bf16.mxu1 %v9420_v39  ;;  %v1116_v36 = vld [vmem:[%s10427_s25 + $0x1820] sm:$0xff]  ;;  %v1113_v38 = vld [vmem:[%s10427_s25 + $0x1808] sm:$0xff] }
 0x1ec   : > { %v1117_v39 = vld [vmem:[%s10427_s25 + $0x1828] sm:$0xff]  ;;  %v9474_v43 = vcombine.high %v1112_v35, %v1116_v36  ;;  %v9473_v51 = vcombine.low %v1112_v35, %v1116_v36 }
 0x1ed   : > { %v9476_v44 = vcombine.high %v1113_v38, %v1117_v39  ;;  %v9475_v52 = vcombine.low %v1113_v38, %v1117_v39  ;;  %v1161_v35 = vld [vmem:[%s10427_s25 + $0x1988] sm:$0xff]  ;;  %v9515_v39 = vcombine.low %v1153_v60, %v1157_v27 }
 0x1ee   : > { %7198 = vmatpush1.bf16.msra.mxu0 %v9417_v26  ;;  %7567 = vmatpush1.bf16.msra.mxu1 %v9419_v45  ;;  %v1120_v26 = vld [vmem:[%s10427_s25 + $0x1840] sm:$0xff]  ;;  %v1165_v36 = vld [vmem:[%s10427_s25 + $0x19a8] sm:$0xff] }
 0x1ef   : > { %7199 = vmatprep.subr.bf16.mxu0 %v9426_v47  ;;  %7568 = vmatprep.subr.bf16.mxu1 %v9428_v48  ;;  %v1124_v45 = vld [vmem:[%s10427_s25 + $0x1860] sm:$0xff]  ;;  %v10940_v47 = vcombine.low %v10866_v20, %v10866_v20  ;;  %v1121_v48 = vld [vmem:[%s10427_s25 + $0x1848] sm:$0xff] }
 0x1f0   : > { %v1128_v20 = vld [vmem:[%s10427_s25 + $0x1880] sm:$0xff]  ;;  %v9481_v63 = vcombine.low %v1120_v26, %v1124_v45  ;;  %v9483_v0 = vcombine.low %v1121_v48, %v1125_v49 }
 0x1f2   : > { %7200 = vmatpush1.bf16.msra.mxu0 %v9425_v53  ;;  %7569 = vmatpush1.bf16.msra.mxu1 %v9427_v55  ;;  %v9482_v53 = vcombine.high %v1120_v26, %v1124_v45  ;;  %v9484_v55 = vcombine.high %v1121_v48, %v1125_v49  ;;  %v1169_v26 = vld [vmem:[%s10427_s25 + $0x19c8] sm:$0xff]  ;;  %v9523_v49 = vcombine.low %v1161_v35, %v1165_v36 }
 0x1f3   : > { %7201 = vmatprep.subr.bf16.mxu0 %v9434_v57  ;;  %7570 = vmatprep.subr.bf16.mxu1 %v9436_v59  ;;  %v1132_v57 = vld [vmem:[%s10427_s25 + $0x18a0] sm:$0xff]  ;;  %v10953_v59 = vcombine.high %v10947_v50, %v10947_v50  ;;  %v1173_v45 = vld [vmem:[%s10427_s25 + $0x19e8] sm:$0xff] }
 0x1f4   : > { %v9489_v7 = vcombine.low %v1128_v20, %v1132_v57 }
 0x1f6   : > { %7202 = vmatpush1.bf16.msra.mxu0 %v9433_v40  ;;  %7571 = vmatpush1.bf16.msra.mxu1 %v9435_v1  ;;  %v9490_v40 = vcombine.high %v1128_v20, %v1132_v57  ;;  %v9492_v1 = vcombine.high %v1129_v61, %v1133_v62  ;;  %v1177_v20 = vld [vmem:[%s10427_s25 + $0x1a08] sm:$0xff]  ;;  %v9531_v62 = vcombine.low %v1169_v26, %v1173_v45 }
 0x1f7   : > { %7203 = vmatprep.subr.bf16.mxu0 %v9442_v3  ;;  %7572 = vmatprep.subr.bf16.mxu1 %v9444_v4  ;;  %v1136_v3 = vld [vmem:[%s10427_s25 + $0x18c0] sm:$0xff]  ;;  %v1181_v57 = vld [vmem:[%s10427_s25 + $0x1a28] sm:$0xff] }
 0x1f8   : > { %v1140_v4 = vld [vmem:[%s10427_s25 + $0x18e0] sm:$0xff] }
 0x1f9   : > { %v9497_v18 = vcombine.low %v1136_v3, %v1140_v4 }
 0x1fa   : > { %7204 = vmatpush1.bf16.msra.mxu0 %v9441_v9  ;;  %7573 = vmatpush1.bf16.msra.mxu1 %v9443_v10  ;;  %v9498_v9 = vcombine.high %v1136_v3, %v1140_v4  ;;  %v9500_v10 = vcombine.high %v1137_v5, %v1141_v6  ;;  %v1185_v3 = vld [vmem:[%s10427_s25 + $0x1a48] sm:$0xff]  ;;  %v9539_v6 = vcombine.low %v1177_v20, %v1181_v57 }
 0x1fb   : > { %7205 = vmatprep.subr.bf16.mxu0 %v9450_v11  ;;  %7574 = vmatprep.subr.bf16.mxu1 %v9452_v12  ;;  %v1144_v11 = vld [vmem:[%s10427_s25 + $0x1900] sm:$0xff]  ;;  %v1189_v4 = vld [vmem:[%s10427_s25 + $0x1a68] sm:$0xff] }
 0x1fc   : > { %v1148_v12 = vld [vmem:[%s10427_s25 + $0x1920] sm:$0xff] }
 0x1fd   : > { %v9505_v29 = vcombine.low %v1144_v11, %v1148_v12 }
 0x1fe   : > { %7206 = vmatpush1.bf16.msra.mxu0 %v9449_v54  ;;  %7575 = vmatpush1.bf16.msra.mxu1 %v9451_v21  ;;  %v9506_v54 = vcombine.high %v1144_v11, %v1148_v12  ;;  %v9508_v21 = vcombine.high %v1145_v14, %v1149_v15  ;;  %v1193_v11 = vld [vmem:[%s10427_s25 + $0x1a88] sm:$0xff]  ;;  %v9547_v15 = vcombine.low %v1185_v3, %v1189_v4 }
 0x1ff   : > { %7207 = vmatprep.subr.bf16.mxu0 %v9458_v24  ;;  %7576 = vmatprep.subr.bf16.mxu1 %v9460_v25  ;;  %v1152_v24 = vld [vmem:[%s10427_s25 + $0x1940] sm:$0xff]  ;;  %v1197_v12 = vld [vmem:[%s10427_s25 + $0x1aa8] sm:$0xff] }
 0x200   : > { %v1156_v25 = vld [vmem:[%s10427_s25 + $0x1960] sm:$0xff] }
 0x201   : > { %v9513_v38 = vcombine.low %v1152_v24, %v1156_v25 }
 0x202   : > { %7208 = vmatpush1.bf16.msra.mxu0 %v9457_v16  ;;  %7577 = vmatpush1.bf16.msra.mxu1 %v9459_v31  ;;  %v9514_v16 = vcombine.high %v1152_v24, %v1156_v25  ;;  %v9516_v31 = vcombine.high %v1153_v60, %v1157_v27  ;;  %v1201_v24 = vld [vmem:[%s10427_s25 + $0x1ac8] sm:$0xff]  ;;  %v9555_v27 = vcombine.low %v1193_v11, %v1197_v12 }
 0x203   : > { %7209 = vmatprep.subr.bf16.mxu0 %v9466_v33  ;;  %7578 = vmatprep.subr.bf16.mxu1 %v9468_v34  ;;  %v1160_v33 = vld [vmem:[%s10427_s25 + $0x1980] sm:$0xff]  ;;  %v1205_v25 = vld [vmem:[%s10427_s25 + $0x1ae8] sm:$0xff] }
 0x204   : > { %v1164_v34 = vld [vmem:[%s10427_s25 + $0x19a0] sm:$0xff] }
 0x205   : > { %v9521_v48 = vcombine.low %v1160_v33, %v1164_v34 }
 0x206   : > { %7210 = vmatpush1.bf16.msra.mxu0 %v9465_v41  ;;  %7579 = vmatpush1.bf16.msra.mxu1 %v9467_v42  ;;  %v9522_v41 = vcombine.high %v1160_v33, %v1164_v34  ;;  %v9524_v42 = vcombine.high %v1161_v35, %v1165_v36  ;;  %v1209_v33 = vld [vmem:[%s10427_s25 + $0x1b08] sm:$0xff]  ;;  %v9563_v36 = vcombine.low %v1201_v24, %v1205_v25 }
 0x207   : > { %7220 = vmatprep.subr.bf16.mxu0 %v9474_v43  ;;  %7589 = vmatprep.subr.bf16.mxu1 %v9476_v44  ;;  %v1168_v43 = vld [vmem:[%s10427_s25 + $0x19c0] sm:$0xff]  ;;  %v1213_v34 = vld [vmem:[%s10427_s25 + $0x1b28] sm:$0xff] }
 0x208   : > { %v1172_v44 = vld [vmem:[%s10427_s25 + $0x19e0] sm:$0xff] }
 0x209   : > { %7212 = vmatmul.mubr.bf16.vlgmr.msra.gmra.mrb[0].mxu0 %v10940_v47  ;;  %7581 = vmatmul.mubr.bf16.vlgmr.msra.gmra.mrb[0].mxu1 %v10940_v47  ;;  %v9529_v61 = vcombine.low %v1168_v43, %v1172_v44 }
 0x20a   : > { %7221 = vmatpush1.bf16.msra.mxu0 %v9473_v51  ;;  %7590 = vmatpush1.bf16.msra.mxu1 %v9475_v52  ;;  %v9530_v51 = vcombine.high %v1168_v43, %v1172_v44  ;;  %v9532_v52 = vcombine.high %v1169_v26, %v1173_v45  ;;  %v1217_v43 = vld [vmem:[%s10427_s25 + $0x1b48] sm:$0xff]  ;;  %v9571_v45 = vcombine.low %v1209_v33, %v1213_v34 }
 0x20b   : > { %7222 = vmatprep.subr.bf16.mxu0 %v9482_v53  ;;  %7591 = vmatprep.subr.bf16.mxu1 %v9484_v55  ;;  %v1176_v53 = vld [vmem:[%s10427_s25 + $0x1a00] sm:$0xff]  ;;  %v1221_v44 = vld [vmem:[%s10427_s25 + $0x1b68] sm:$0xff] }
 0x20c   : > { %7252 = vmatprep.mubr.bf16.mxu0 %v10953_v59  ;;  %7621 = vmatprep.mubr.bf16.mxu1 %v10953_v59  ;;  %v1180_v55 = vld [vmem:[%s10427_s25 + $0x1a20] sm:$0xff] }
 0x20d   : > { %v9537_v5 = vcombine.low %v1176_v53, %v1180_v55 }
 0x20e   : > { %7223 = vmatpush1.bf16.msra.mxu0 %v9481_v63  ;;  %7592 = vmatpush1.bf16.msra.mxu1 %v9483_v0  ;;  %v9538_v63 = vcombine.high %v1176_v53, %v1180_v55  ;;  %v9540_v0 = vcombine.high %v1177_v20, %v1181_v57  ;;  %v1225_v53 = vld [vmem:[%s10427_s25 + $0x1b88] sm:$0xff]  ;;  %v9579_v57 = vcombine.low %v1217_v43, %v1221_v44 }
 0x20f   : > { %7224 = vmatprep.subr.bf16.mxu0 %v9490_v40  ;;  %7593 = vmatprep.subr.bf16.mxu1 %v9492_v1  ;;  %v1184_v40 = vld [vmem:[%s10427_s25 + $0x1a40] sm:$0xff]  ;;  %v1229_v55 = vld [vmem:[%s10427_s25 + $0x1ba8] sm:$0xff] }
 0x210   : > { %v1188_v1 = vld [vmem:[%s10427_s25 + $0x1a60] sm:$0xff] }
 0x211   : > { %v9545_v14 = vcombine.low %v1184_v40, %v1188_v1 }
 0x212   : > { %7225 = vmatpush1.bf16.msra.mxu0 %v9489_v7  ;;  %7594 = vmatpush1.bf16.msra.mxu1 %v9491_v8  ;;  %v9546_v7 = vcombine.high %v1184_v40, %v1188_v1  ;;  %v9548_v8 = vcombine.high %v1185_v3, %v1189_v4  ;;  %v1233_v40 = vld [vmem:[%s10427_s25 + $0x1bc8] sm:$0xff]  ;;  %v9587_v4 = vcombine.low %v1225_v53, %v1229_v55 }
 0x213   : > { %7226 = vmatprep.subr.bf16.mxu0 %v9498_v9  ;;  %7595 = vmatprep.subr.bf16.mxu1 %v9500_v10  ;;  %v1192_v9 = vld [vmem:[%s10427_s25 + $0x1a80] sm:$0xff]  ;;  %v1237_v1 = vld [vmem:[%s10427_s25 + $0x1be8] sm:$0xff] }
 0x214   : > { %v1196_v10 = vld [vmem:[%s10427_s25 + $0x1aa0] sm:$0xff] }
 0x215   : > { %v9553_v60 = vcombine.low %v1192_v9, %v1196_v10 }
 0x216   : > { %7227 = vmatpush1.bf16.msra.mxu0 %v9497_v18  ;;  %7596 = vmatpush1.bf16.msra.mxu1 %v9499_v19  ;;  %v9554_v18 = vcombine.high %v1192_v9, %v1196_v10  ;;  %v9556_v19 = vcombine.high %v1193_v11, %v1197_v12  ;;  %v1241_v9 = vld [vmem:[%s10427_s25 + $0x1c08] sm:$0xff]  ;;  %v9595_v12 = vcombine.low %v1233_v40, %v1237_v1 }
 0x217   : > { %7228 = vmatprep.subr.bf16.mxu0 %v9506_v54  ;;  %7597 = vmatprep.subr.bf16.mxu1 %v9508_v21  ;;  %v1200_v54 = vld [vmem:[%s10427_s25 + $0x1ac0] sm:$0xff]  ;;  %v1245_v10 = vld [vmem:[%s10427_s25 + $0x1c28] sm:$0xff] }
 0x218   : > { %v1204_v21 = vld [vmem:[%s10427_s25 + $0x1ae0] sm:$0xff] }
 0x219   : > { %v9561_v35 = vcombine.low %v1200_v54, %v1204_v21 }
 0x21a   : > { %7229 = vmatpush1.bf16.msra.mxu0 %v9505_v29  ;;  %7598 = vmatpush1.bf16.msra.mxu1 %v9507_v30  ;;  %v9562_v29 = vcombine.high %v1200_v54, %v1204_v21  ;;  %v9564_v30 = vcombine.high %v1201_v24, %v1205_v25  ;;  %v11021_v54 = vcombine.low %v10947_v50, %v10947_v50  ;;  %v1249_v21 = vld [vmem:[%s10427_s25 + $0x1c48] sm:$0xff]  ;;  %v11028_v25 = vld [vmem:[%s11762_s0 + $0x38] sm:$0xff]  ;;  %v1256_v50 = vld [vmem:[%s10427_s25 + $0x1c80] sm:$0xff] }
 0x21b   : > { %7230 = vmatprep.subr.bf16.mxu0 %v9514_v16  ;;  %7599 = vmatprep.subr.bf16.mxu1 %v9516_v31  ;;  %v1208_v16 = vld [vmem:[%s10427_s25 + $0x1b00] sm:$0xff]  ;;  %v1253_v24 = vld [vmem:[%s10427_s25 + $0x1c68] sm:$0xff] }
 0x21c   : > { %v1212_v31 = vld [vmem:[%s10427_s25 + $0x1b20] sm:$0xff] }
 0x21d   : > { %v9569_v26 = vcombine.low %v1208_v16, %v1212_v31 }
 0x21e   : > { %7231 = vmatpush1.bf16.msra.mxu0 %v9513_v38  ;;  %7600 = vmatpush1.bf16.msra.mxu1 %v9515_v39  ;;  %v9570_v38 = vcombine.high %v1208_v16, %v1212_v31  ;;  %v9572_v39 = vcombine.high %v1209_v33, %v1213_v34  ;;  %v1260_v16 = vld [vmem:[%s10427_s25 + $0x1ca0] sm:$0xff]  ;;  %v11034_v31 = vcombine.high %v11028_v25, %v11028_v25  ;;  %v1257_v33 = vld [vmem:[%s10427_s25 + $0x1c88] sm:$0xff] }
 0x21f   : > { %7232 = vmatprep.subr.bf16.mxu0 %v9522_v41  ;;  %7601 = vmatprep.subr.bf16.mxu1 %v9524_v42  ;;  %v1216_v41 = vld [vmem:[%s10427_s25 + $0x1b40] sm:$0xff]  ;;  %v1261_v34 = vld [vmem:[%s10427_s25 + $0x1ca8] sm:$0xff] }
 0x220   : > { %v1220_v42 = vld [vmem:[%s10427_s25 + $0x1b60] sm:$0xff] }
 0x221   : > { %v9577_v20 = vcombine.low %v1216_v41, %v1220_v42 }
 0x222   : > { %7233 = vmatpush1.bf16.msra.mxu0 %v9521_v48  ;;  %7602 = vmatpush1.bf16.msra.mxu1 %v9523_v49  ;;  %v9578_v48 = vcombine.high %v1216_v41, %v1220_v42  ;;  %v9580_v49 = vcombine.high %v1217_v43, %v1221_v44  ;;  %v1264_v41 = vld [vmem:[%s10427_s25 + $0x1cc0] sm:$0xff]  ;;  %v1265_v43 = vld [vmem:[%s10427_s25 + $0x1cc8] sm:$0xff] }
 0x223   : > { %7234 = vmatprep.subr.bf16.mxu0 %v9530_v51  ;;  %7603 = vmatprep.subr.bf16.mxu1 %v9532_v52  ;;  %v1224_v51 = vld [vmem:[%s10427_s25 + $0x1b80] sm:$0xff]  ;;  %v1269_v44 = vld [vmem:[%s10427_s25 + $0x1ce8] sm:$0xff] }
 0x224   : > { %v1228_v52 = vld [vmem:[%s10427_s25 + $0x1ba0] sm:$0xff] }
 0x225   : > { %v9585_v3 = vcombine.low %v1224_v51, %v1228_v52  ;;  %v1268_v42 = vld [vmem:[%s10427_s25 + $0x1ce0] sm:$0xff] }
 0x226   : > { %7235 = vmatpush1.bf16.msra.mxu0 %v9529_v61  ;;  %7604 = vmatpush1.bf16.msra.mxu1 %v9531_v62  ;;  %v9586_v61 = vcombine.high %v1224_v51, %v1228_v52  ;;  %v9588_v62 = vcombine.high %v1225_v53, %v1229_v55  ;;  %v1272_v51 = vld [vmem:[%s10427_s25 + $0x1d00] sm:$0xff]  ;;  %v1273_v53 = vld [vmem:[%s10427_s25 + $0x1d08] sm:$0xff] }
 0x227   : > { %7236 = vmatprep.subr.bf16.mxu0 %v9538_v63  ;;  %7605 = vmatprep.subr.bf16.mxu1 %v9540_v0  ;;  %v1232_v63 = vld [vmem:[%s10427_s25 + $0x1bc0] sm:$0xff]  ;;  %v1277_v55 = vld [vmem:[%s10427_s25 + $0x1d28] sm:$0xff] }
 0x228   : > { %v1236_v0 = vld [vmem:[%s10427_s25 + $0x1be0] sm:$0xff] }
 0x229   : > { %v9593_v11 = vcombine.low %v1232_v63, %v1236_v0  ;;  %v1276_v52 = vld [vmem:[%s10427_s25 + $0x1d20] sm:$0xff] }
 0x22a   : > { %7237 = vmatpush1.bf16.msra.mxu0 %v9537_v5  ;;  %7606 = vmatpush1.bf16.msra.mxu1 %v9539_v6  ;;  %v9594_v5 = vcombine.high %v1232_v63, %v1236_v0  ;;  %v9596_v6 = vcombine.high %v1233_v40, %v1237_v1  ;;  %v1280_v63 = vld [vmem:[%s10427_s25 + $0x1d40] sm:$0xff]  ;;  %v1281_v40 = vld [vmem:[%s10427_s25 + $0x1d48] sm:$0xff] }
 0x22b   : > { %7238 = vmatprep.subr.bf16.mxu0 %v9546_v7  ;;  %7607 = vmatprep.subr.bf16.mxu1 %v9548_v8  ;;  %v1240_v7 = vld [vmem:[%s10427_s25 + $0x1c00] sm:$0xff]  ;;  %v1285_v1 = vld [vmem:[%s10427_s25 + $0x1d68] sm:$0xff] }
 0x22c   : > { %v1244_v8 = vld [vmem:[%s10427_s25 + $0x1c20] sm:$0xff] }
 0x22d   : > { %v1284_v0 = vld [vmem:[%s10427_s25 + $0x1d60] sm:$0xff] }
 0x22e   : > { %7239 = vmatpush1.bf16.msra.mxu0 %v9545_v14  ;;  %7608 = vmatpush1.bf16.msra.mxu1 %v9547_v15  ;;  %v9602_v14 = vcombine.high %v1240_v7, %v1244_v8  ;;  %v9604_v15 = vcombine.high %v1241_v9, %v1245_v10 }
 0x22f   : > { %7240 = vmatprep.subr.bf16.mxu0 %v9554_v18  ;;  %7609 = vmatprep.subr.bf16.mxu1 %v9556_v19  ;;  %v1248_v18 = vld [vmem:[%s10427_s25 + $0x1c40] sm:$0xff] }
 0x230   : > { %v1252_v19 = vld [vmem:[%s10427_s25 + $0x1c60] sm:$0xff] }
 0x232   : > { %7241 = vmatpush1.bf16.msra.mxu0 %v9553_v60  ;;  %7610 = vmatpush1.bf16.msra.mxu1 %v9555_v27  ;;  %v9601_v60 = vcombine.low %v1240_v7, %v1244_v8  ;;  %v9603_v27 = vcombine.low %v1241_v9, %v1245_v10  ;;  %v1288_v7 = vld [vmem:[%s10427_s25 + $0x1d80] sm:$0xff]  ;;  %v1289_v9 = vld [vmem:[%s10427_s25 + $0x1d88] sm:$0xff] }
 0x233   : > { %7242 = vmatprep.subr.bf16.mxu0 %v9562_v29  ;;  %7611 = vmatprep.subr.bf16.mxu1 %v9564_v30  ;;  %v9610_v29 = vcombine.high %v1248_v18, %v1252_v19  ;;  %v9612_v30 = vcombine.high %v1249_v21, %v1253_v24  ;;  %v1292_v8 = vld [vmem:[%s10427_s25 + $0x1da0] sm:$0xff]  ;;  %v1293_v10 = vld [vmem:[%s10427_s25 + $0x1da8] sm:$0xff] }
 0x236   : > { %7243 = vmatpush1.bf16.msra.mxu0 %v9561_v35  ;;  %7612 = vmatpush1.bf16.msra.mxu1 %v9563_v36  ;;  %v9609_v35 = vcombine.low %v1248_v18, %v1252_v19  ;;  %v9611_v36 = vcombine.low %v1249_v21, %v1253_v24  ;;  %v1296_v18 = vld [vmem:[%s10427_s25 + $0x1dc0] sm:$0xff]  ;;  %v1297_v21 = vld [vmem:[%s10427_s25 + $0x1dc8] sm:$0xff] }
 0x237   : > { %7244 = vmatprep.subr.bf16.mxu0 %v9570_v38  ;;  %7613 = vmatprep.subr.bf16.mxu1 %v9572_v39  ;;  %v9618_v38 = vcombine.high %v1256_v50, %v1260_v16  ;;  %v9620_v39 = vcombine.high %v1257_v33, %v1261_v34  ;;  %v1300_v19 = vld [vmem:[%s10427_s25 + $0x1de0] sm:$0xff]  ;;  %v1301_v24 = vld [vmem:[%s10427_s25 + $0x1de8] sm:$0xff] }
 0x23a   : > { %7245 = vmatpush1.bf16.msra.mxu0 %v9569_v26  ;;  %7614 = vmatpush1.bf16.msra.mxu1 %v9571_v45  ;;  %v9617_v26 = vcombine.low %v1256_v50, %v1260_v16  ;;  %v9619_v45 = vcombine.low %v1257_v33, %v1261_v34  ;;  %v1304_v50 = vld [vmem:[%s10427_s25 + $0x1e00] sm:$0xff]  ;;  %v1305_v33 = vld [vmem:[%s10427_s25 + $0x1e08] sm:$0xff] }
 0x23b   : > { %7246 = vmatprep.subr.bf16.mxu0 %v9578_v48  ;;  %7615 = vmatprep.subr.bf16.mxu1 %v9580_v49  ;;  %v9626_v48 = vcombine.high %v1264_v41, %v1268_v42  ;;  %v9628_v49 = vcombine.high %v1265_v43, %v1269_v44  ;;  %v1308_v16 = vld [vmem:[%s10427_s25 + $0x1e20] sm:$0xff]  ;;  %v1309_v34 = vld [vmem:[%s10427_s25 + $0x1e28] sm:$0xff] }
 0x23e   : > { %7247 = vmatpush1.bf16.msra.mxu0 %v9577_v20  ;;  %7616 = vmatpush1.bf16.msra.mxu1 %v9579_v57  ;;  %v9625_v20 = vcombine.low %v1264_v41, %v1268_v42  ;;  %v9627_v57 = vcombine.low %v1265_v43, %v1269_v44  ;;  %v1312_v41 = vld [vmem:[%s10427_s25 + $0x1e40] sm:$0xff]  ;;  %v1313_v43 = vld [vmem:[%s10427_s25 + $0x1e48] sm:$0xff] }
 0x23f   : > { %7248 = vmatprep.subr.bf16.mxu0 %v9586_v61  ;;  %7617 = vmatprep.subr.bf16.mxu1 %v9588_v62  ;;  %v9634_v61 = vcombine.high %v1272_v51, %v1276_v52  ;;  %v9636_v62 = vcombine.high %v1273_v53, %v1277_v55  ;;  %v1316_v42 = vld [vmem:[%s10427_s25 + $0x1e60] sm:$0xff]  ;;  %v1317_v44 = vld [vmem:[%s10427_s25 + $0x1e68] sm:$0xff] }
 0x242   : > { %7249 = vmatpush1.bf16.msra.mxu0 %v9585_v3  ;;  %7618 = vmatpush1.bf16.msra.mxu1 %v9587_v4  ;;  %v9633_v3 = vcombine.low %v1272_v51, %v1276_v52  ;;  %v9635_v4 = vcombine.low %v1273_v53, %v1277_v55  ;;  %v1320_v51 = vld [vmem:[%s10427_s25 + $0x1e80] sm:$0xff]  ;;  %v1321_v53 = vld [vmem:[%s10427_s25 + $0x1e88] sm:$0xff] }
 0x243   : > { %7250 = vmatprep.subr.bf16.mxu0 %v9594_v5  ;;  %7619 = vmatprep.subr.bf16.mxu1 %v9596_v6  ;;  %v9642_v5 = vcombine.high %v1280_v63, %v1284_v0  ;;  %v9644_v6 = vcombine.high %v1281_v40, %v1285_v1  ;;  %v1324_v52 = vld [vmem:[%s10427_s25 + $0x1ea0] sm:$0xff]  ;;  %v1325_v55 = vld [vmem:[%s10427_s25 + $0x1ea8] sm:$0xff] }
 0x246   : > { %7251 = vmatpush1.bf16.msra.mxu0 %v9593_v11  ;;  %7620 = vmatpush1.bf16.msra.mxu1 %v9595_v12  ;;  %v9641_v11 = vcombine.low %v1280_v63, %v1284_v0  ;;  %v9643_v12 = vcombine.low %v1281_v40, %v1285_v1  ;;  %v1328_v63 = vld [vmem:[%s10427_s25 + $0x1ec0] sm:$0xff]  ;;  %v1329_v40 = vld [vmem:[%s10427_s25 + $0x1ec8] sm:$0xff] }
 0x247   : > { %7261 = vmatprep.subr.bf16.mxu0 %v9602_v14  ;;  %7630 = vmatprep.subr.bf16.mxu1 %v9604_v15  ;;  %v9650_v14 = vcombine.high %v1288_v7, %v1292_v8  ;;  %v9652_v15 = vcombine.high %v1289_v9, %v1293_v10  ;;  %v1332_v0 = vld [vmem:[%s10427_s25 + $0x1ee0] sm:$0xff]  ;;  %v1333_v1 = vld [vmem:[%s10427_s25 + $0x1ee8] sm:$0xff] }
 0x249   : > { %7253 = vmatmul.mubr.bf16.vlgmr.msra.gmra.mrb[0].mxu0 %v11021_v54  ;;  %7622 = vmatmul.mubr.bf16.vlgmr.msra.gmra.mrb[0].mxu1 %v11021_v54 }
 0x24a   : > { %7262 = vmatpush1.bf16.msra.mxu0 %v9601_v60  ;;  %7631 = vmatpush1.bf16.msra.mxu1 %v9603_v27  ;;  %v9649_v60 = vcombine.low %v1288_v7, %v1292_v8  ;;  %v9651_v27 = vcombine.low %v1289_v9, %v1293_v10  ;;  %v1336_v7 = vld [vmem:[%s10427_s25 + $0x1f00] sm:$0xff]  ;;  %v1337_v9 = vld [vmem:[%s10427_s25 + $0x1f08] sm:$0xff] }
 0x24b   : > { %7263 = vmatprep.subr.bf16.mxu0 %v9610_v29  ;;  %7632 = vmatprep.subr.bf16.mxu1 %v9612_v30  ;;  %v9658_v29 = vcombine.high %v1296_v18, %v1300_v19  ;;  %v9660_v30 = vcombine.high %v1297_v21, %v1301_v24  ;;  %v1340_v8 = vld [vmem:[%s10427_s25 + $0x1f20] sm:$0xff]  ;;  %v1341_v10 = vld [vmem:[%s10427_s25 + $0x1f28] sm:$0xff] }
 0x24c   : > { %7293 = vmatprep.mubr.bf16.mxu0 %v11034_v31  ;;  %7662 = vmatprep.mubr.bf16.mxu1 %v11034_v31 }
 0x24e   : > { %7264 = vmatpush1.bf16.msra.mxu0 %v9609_v35  ;;  %7633 = vmatpush1.bf16.msra.mxu1 %v9611_v36  ;;  %v9657_v35 = vcombine.low %v1296_v18, %v1300_v19  ;;  %v9659_v36 = vcombine.low %v1297_v21, %v1301_v24  ;;  %v1344_v18 = vld [vmem:[%s10427_s25 + $0x1f40] sm:$0xff]  ;;  %v1345_v21 = vld [vmem:[%s10427_s25 + $0x1f48] sm:$0xff] }
 0x24f   : > { %7265 = vmatprep.subr.bf16.mxu0 %v9618_v38  ;;  %7634 = vmatprep.subr.bf16.mxu1 %v9620_v39  ;;  %v9666_v38 = vcombine.high %v1304_v50, %v1308_v16  ;;  %v9668_v39 = vcombine.high %v1305_v33, %v1309_v34  ;;  %v1348_v19 = vld [vmem:[%s10427_s25 + $0x1f60] sm:$0xff]  ;;  %v1349_v24 = vld [vmem:[%s10427_s25 + $0x1f68] sm:$0xff] }
 0x252   : > { %7266 = vmatpush1.bf16.msra.mxu0 %v9617_v26  ;;  %7635 = vmatpush1.bf16.msra.mxu1 %v9619_v45  ;;  %v9665_v26 = vcombine.low %v1304_v50, %v1308_v16  ;;  %v9667_v45 = vcombine.low %v1305_v33, %v1309_v34  ;;  %v1352_v50 = vld [vmem:[%s10427_s25 + $0x1f80] sm:$0xff]  ;;  %v1353_v33 = vld [vmem:[%s10427_s25 + $0x1f88] sm:$0xff] }
 0x253   : > { %7267 = vmatprep.subr.bf16.mxu0 %v9626_v48  ;;  %7636 = vmatprep.subr.bf16.mxu1 %v9628_v49  ;;  %v9674_v48 = vcombine.high %v1312_v41, %v1316_v42  ;;  %v9676_v49 = vcombine.high %v1313_v43, %v1317_v44  ;;  %v1356_v16 = vld [vmem:[%s10427_s25 + $0x1fa0] sm:$0xff]  ;;  %v1357_v34 = vld [vmem:[%s10427_s25 + $0x1fa8] sm:$0xff] }
 0x256   : > { %7268 = vmatpush1.bf16.msra.mxu0 %v9625_v20  ;;  %7637 = vmatpush1.bf16.msra.mxu1 %v9627_v57  ;;  %v9673_v20 = vcombine.low %v1312_v41, %v1316_v42  ;;  %v9675_v57 = vcombine.low %v1313_v43, %v1317_v44  ;;  %v1360_v41 = vld [vmem:[%s10427_s25 + $0x1fc0] sm:$0xff]  ;;  %v1361_v43 = vld [vmem:[%s10427_s25 + $0x1fc8] sm:$0xff] }
 0x257   : > { %7269 = vmatprep.subr.bf16.mxu0 %v9634_v61  ;;  %7638 = vmatprep.subr.bf16.mxu1 %v9636_v62  ;;  %v9682_v61 = vcombine.high %v1320_v51, %v1324_v52  ;;  %v9684_v62 = vcombine.high %v1321_v53, %v1325_v55  ;;  %v1364_v42 = vld [vmem:[%s10427_s25 + $0x1fe0] sm:$0xff]  ;;  %v1365_v44 = vld [vmem:[%s10427_s25 + $0x1fe8] sm:$0xff] }
 0x25a   : > { %7270 = vmatpush1.bf16.msra.mxu0 %v9633_v3  ;;  %7639 = vmatpush1.bf16.msra.mxu1 %v9635_v4  ;;  %v9681_v3 = vcombine.low %v1320_v51, %v1324_v52  ;;  %v9683_v4 = vcombine.low %v1321_v53, %v1325_v55  ;;  %v1368_v51 = vld [vmem:[%s10427_s25 + $0x2000] sm:$0xff]  ;;  %v1369_v53 = vld [vmem:[%s10427_s25 + $0x2008] sm:$0xff] }
 0x25b   : > { %7271 = vmatprep.subr.bf16.mxu0 %v9642_v5  ;;  %7640 = vmatprep.subr.bf16.mxu1 %v9644_v6  ;;  %v9690_v5 = vcombine.high %v1328_v63, %v1332_v0  ;;  %v9692_v6 = vcombine.high %v1329_v40, %v1333_v1  ;;  %v1372_v52 = vld [vmem:[%s10427_s25 + $0x2020] sm:$0xff]  ;;  %v1373_v55 = vld [vmem:[%s10427_s25 + $0x2028] sm:$0xff] }
 0x25e   : > { %7272 = vmatpush1.bf16.msra.mxu0 %v9641_v11  ;;  %7641 = vmatpush1.bf16.msra.mxu1 %v9643_v12  ;;  %v9689_v11 = vcombine.low %v1328_v63, %v1332_v0  ;;  %v9691_v12 = vcombine.low %v1329_v40, %v1333_v1  ;;  %v1376_v63 = vld [vmem:[%s10427_s25 + $0x2040] sm:$0xff]  ;;  %v11102_v40 = vcombine.low %v11028_v25, %v11028_v25  ;;  %v1377_v1 = vld [vmem:[%s10427_s25 + $0x2048] sm:$0xff] }
 0x25f   : > { %7273 = vmatprep.subr.bf16.mxu0 %v9650_v14  ;;  %7642 = vmatprep.subr.bf16.mxu1 %v9652_v15  ;;  %v9698_v14 = vcombine.high %v1336_v7, %v1340_v8  ;;  %v9700_v15 = vcombine.high %v1337_v9, %v1341_v10  ;;  %v1380_v0 = vld [vmem:[%s10427_s25 + $0x2060] sm:$0xff]  ;;  %v1389_v25 = vld [vmem:[%s10427_s25 + $0x20a8] sm:$0xff] }
 0x262   : > { %7274 = vmatpush1.bf16.msra.mxu0 %v9649_v60  ;;  %7643 = vmatpush1.bf16.msra.mxu1 %v9651_v27  ;;  %v9697_v60 = vcombine.low %v1336_v7, %v1340_v8  ;;  %v9699_v27 = vcombine.low %v1337_v9, %v1341_v10  ;;  %v1384_v8 = vld [vmem:[%s10427_s25 + $0x2080] sm:$0xff]  ;;  %v1385_v10 = vld [vmem:[%s10427_s25 + $0x2088] sm:$0xff] }
 0x263   : > { %7275 = vmatprep.subr.bf16.mxu0 %v9658_v29  ;;  %7644 = vmatprep.subr.bf16.mxu1 %v9660_v30  ;;  %v9706_v29 = vcombine.high %v1344_v18, %v1348_v19  ;;  %v9708_v30 = vcombine.high %v1345_v21, %v1349_v24  ;;  %v1388_v9 = vld [vmem:[%s10427_s25 + $0x20a0] sm:$0xff] }
 0x266   : > { %7276 = vmatpush1.bf16.msra.mxu0 %v9657_v35  ;;  %7645 = vmatpush1.bf16.msra.mxu1 %v9659_v36  ;;  %v9705_v35 = vcombine.low %v1344_v18, %v1348_v19  ;;  %v9707_v36 = vcombine.low %v1345_v21, %v1349_v24  ;;  %v1392_v18 = vld [vmem:[%s10427_s25 + $0x20c0] sm:$0xff]  ;;  %v10211_v21 = vmov 0   ;;  %v1393_v24 = vld [vmem:[%s10427_s25 + $0x20c8] sm:$0xff] }
 0x267   : > { %7277 = vmatprep.subr.bf16.mxu0 %v9666_v38  ;;  %7646 = vmatprep.subr.bf16.mxu1 %v9668_v39  ;;  %v9714_v38 = vcombine.high %v1352_v50, %v1356_v16  ;;  %v9716_v39 = vcombine.high %v1353_v33, %v1357_v34  ;;  %v1396_v19 = vld [vmem:[%s10427_s25 + $0x20e0] sm:$0xff] }
 0x26a   : > { %7278 = vmatpush1.bf16.msra.mxu0 %v9665_v26  ;;  %7647 = vmatpush1.bf16.msra.mxu1 %v9667_v45  ;;  %v9713_v26 = vcombine.low %v1352_v50, %v1356_v16  ;;  %v9715_v45 = vcombine.low %v1353_v33, %v1357_v34  ;;  %v1400_v16 = vld [vmem:[%s10427_s25 + $0x2100] sm:$0xff]  ;;  %v1401_v34 = vld [vmem:[%s10427_s25 + $0x2108] sm:$0xff] }
 0x26b   : > { %7279 = vmatprep.subr.bf16.mxu0 %v9674_v48  ;;  %7648 = vmatprep.subr.bf16.mxu1 %v9676_v49  ;;  %v9722_v48 = vcombine.high %v1360_v41, %v1364_v42  ;;  %v9724_v49 = vcombine.high %v1361_v43, %v1365_v44  ;;  %v1404_v33 = vld [vmem:[%s10427_s25 + $0x2120] sm:$0xff] }
 0x26e   : > { %7280 = vmatpush1.bf16.msra.mxu0 %v9673_v20  ;;  %7649 = vmatpush1.bf16.msra.mxu1 %v9675_v57  ;;  %v9721_v20 = vcombine.low %v1360_v41, %v1364_v42  ;;  %v9723_v57 = vcombine.low %v1361_v43, %v1365_v44  ;;  %v1408_v42 = vld [vmem:[%s10427_s25 + $0x2140] sm:$0xff]  ;;  %v1409_v44 = vld [vmem:[%s10427_s25 + $0x2148] sm:$0xff] }
 0x26f   : > { %7281 = vmatprep.subr.bf16.mxu0 %v9682_v61  ;;  %7650 = vmatprep.subr.bf16.mxu1 %v9684_v62  ;;  %v9730_v61 = vcombine.high %v1368_v51, %v1372_v52  ;;  %v9732_v62 = vcombine.high %v1369_v53, %v1373_v55  ;;  %v1412_v43 = vld [vmem:[%s10427_s25 + $0x2160] sm:$0xff] }
 0x272   : > { %7282 = vmatpush1.bf16.msra.mxu0 %v9681_v3  ;;  %7651 = vmatpush1.bf16.msra.mxu1 %v9683_v4  ;;  %v1381_v3 = vld [vmem:[%s10427_s25 + $0x2068] sm:$0xff]  ;;  %v9729_v4 = vcombine.low %v1368_v51, %v1372_v52  ;;  %v1416_v52 = vld [vmem:[%s10427_s25 + $0x2180] sm:$0xff] }
 0x273   : > { %7283 = vmatprep.subr.bf16.mxu0 %v9690_v5  ;;  %7652 = vmatprep.subr.bf16.mxu1 %v9692_v6  ;;  %v9731_v5 = vcombine.low %v1369_v53, %v1373_v55  ;;  %v9738_v6 = vcombine.high %v1376_v63, %v1380_v0  ;;  %v9740_v7 = vcombine.high %v1377_v1, %v1381_v3  ;;  %v1420_v53 = vld [vmem:[%s10427_s25 + $0x21a0] sm:$0xff]  ;;  %v1417_v55 = vld [vmem:[%s10427_s25 + $0x2188] sm:$0xff] }
 0x276   : > { %7284 = vmatpush1.bf16.msra.mxu0 %v9689_v11  ;;  %7653 = vmatpush1.bf16.msra.mxu1 %v9691_v12  ;;  %v9737_v11 = vcombine.low %v1376_v63, %v1380_v0  ;;  %v9739_v12 = vcombine.low %v1377_v1, %v1381_v3  ;;  %v1424_v0 = vld [vmem:[%s10427_s25 + $0x21c0] sm:$0xff]  ;;  %v1425_v3 = vld [vmem:[%s10427_s25 + $0x21c8] sm:$0xff] }
 0x277   : > { %7285 = vmatprep.subr.bf16.mxu0 %v9698_v14  ;;  %7654 = vmatprep.subr.bf16.mxu1 %v9700_v15  ;;  %v9746_v14 = vcombine.high %v1384_v8, %v1388_v9  ;;  %v9748_v15 = vcombine.high %v1385_v10, %v1389_v25  ;;  %v1428_v1 = vld [vmem:[%s10427_s25 + $0x21e0] sm:$0xff] }
 0x27a   : > { %7286 = vmatpush1.bf16.msra.mxu0 %v9697_v60  ;;  %7655 = vmatpush1.bf16.msra.mxu1 %v9699_v27  ;;  %v1397_v60 = vld [vmem:[%s10427_s25 + $0x20e8] sm:$0xff]  ;;  %v9745_v27 = vcombine.low %v1384_v8, %v1388_v9  ;;  %v346_v9 = vld [vmem:[%s10427_s25 + $0x10] sm:$0xff] }
 0x27b   : > { %7287 = vmatprep.subr.bf16.mxu0 %v9706_v29  ;;  %7656 = vmatprep.subr.bf16.mxu1 %v9708_v30  ;;  %v9747_v29 = vcombine.low %v1385_v10, %v1389_v25  ;;  %v9754_v30 = vcombine.high %v1392_v18, %v1396_v19  ;;  %v9756_v50 = vcombine.high %v1393_v24, %v1397_v60  ;;  %v350_v10 = vld [vmem:[%s10427_s25 + $0x30] sm:$0xff]  ;;  %v347_v25 = vld [vmem:[%s10427_s25 + $0x18] sm:$0xff] }
 0x27e   : > { %7288 = vmatpush1.bf16.msra.mxu0 %v9705_v35  ;;  %7657 = vmatpush1.bf16.msra.mxu1 %v9707_v36  ;;  %v1405_v35 = vld [vmem:[%s10427_s25 + $0x2128] sm:$0xff]  ;;  %v9753_v36 = vcombine.low %v1392_v18, %v1396_v19  ;;  %v354_v19 = vld [vmem:[%s10427_s25 + $0x50] sm:$0xff] }
 0x27f   : > { %7289 = vmatprep.subr.bf16.mxu0 %v9714_v38  ;;  %7658 = vmatprep.subr.bf16.mxu1 %v9716_v39  ;;  %v9755_v38 = vcombine.low %v1393_v24, %v1397_v60  ;;  %v9762_v39 = vcombine.high %v1400_v16, %v1404_v33  ;;  %v9764_v41 = vcombine.high %v1401_v34, %v1405_v35  ;;  %v358_v24 = vld [vmem:[%s10427_s25 + $0x70] sm:$0xff]  ;;  %v10038_v60 = vld [vmem:[%s11762_s0 + $0x40] ss:$0 sps:$4 sm:$0xff]  }
 0x282   : > { %7290 = vmatpush1.bf16.msra.mxu0 %v9713_v26  ;;  %7659 = vmatpush1.bf16.msra.mxu1 %v9715_v45  ;;  %v1413_v26 = vld [vmem:[%s10427_s25 + $0x2168] sm:$0xff]  ;;  %v9761_v45 = vcombine.low %v1400_v16, %v1404_v33  ;;  %v8718_v16 = vcombine.high %v354_v19, %v358_v24 }
 0x283   : > { %7291 = vmatprep.subr.bf16.mxu0 %v9722_v48  ;;  %7660 = vmatprep.subr.bf16.mxu1 %v9724_v49  ;;  %v9763_v48 = vcombine.low %v1401_v34, %v1405_v35  ;;  %v9770_v49 = vcombine.high %v1408_v42, %v1412_v43  ;;  %v9772_v51 = vcombine.high %v1409_v44, %v1413_v26  ;;  %v362_v34 = vld [vmem:[%s10427_s25 + $0x90] sm:$0xff] }
 0x284   : > { %v366_v35 = vld [vmem:[%s10427_s25 + $0xb0] sm:$0xff] }
 0x286   : > { %7292 = vmatpush1.bf16.msra.mxu0 %v9721_v20  ;;  %7661 = vmatpush1.bf16.msra.mxu1 %v9723_v57  ;;  %v1421_v20 = vld [vmem:[%s10427_s25 + $0x21a8] sm:$0xff]  ;;  %v9769_v57 = vcombine.low %v1408_v42, %v1412_v43  ;;  %v8726_v42 = vcombine.high %v362_v34, %v366_v35 }
 0x287   : > { %7302 = vmatprep.subr.bf16.mxu0 %v9730_v61  ;;  %7671 = vmatprep.subr.bf16.mxu1 %v9732_v62  ;;  %v9771_v61 = vcombine.low %v1409_v44, %v1413_v26  ;;  %v9778_v62 = vcombine.high %v1416_v52, %v1420_v53  ;;  %v9780_v63 = vcombine.high %v1417_v55, %v1421_v20  ;;  %v370_v44 = vld [vmem:[%s10427_s25 + $0xd0] sm:$0xff] }
 0x288   : > { %v374_v26 = vld [vmem:[%s10427_s25 + $0xf0] sm:$0xff] }
 0x289   : > { %7294 = vmatmul.mubr.bf16.vlgmr.msra.gmra.mrb[0].mxu0 %v11102_v40  ;;  %7663 = vmatmul.mubr.bf16.vlgmr.msra.gmra.mrb[0].mxu1 %v11102_v40 }
 0x28a   : > { %7303 = vmatpush1.bf16.msra.mxu0 %v9729_v4  ;;  %7672 = vmatpush1.bf16.msra.mxu1 %v9731_v5  ;;  %v1429_v4 = vld [vmem:[%s10427_s25 + $0x21e8] sm:$0xff]  ;;  %v9777_v5 = vcombine.low %v1416_v52, %v1420_v53  ;;  %v8734_v52 = vcombine.high %v370_v44, %v374_v26 }
 0x28b   : > { %7304 = vmatprep.subr.bf16.mxu0 %v9738_v6  ;;  %7673 = vmatprep.subr.bf16.mxu1 %v9740_v7  ;;  %v9779_v6 = vcombine.low %v1417_v55, %v1421_v20  ;;  %v9786_v7 = vcombine.high %v1424_v0, %v1428_v1  ;;  %v9788_v8 = vcombine.high %v1425_v3, %v1429_v4  ;;  %v378_v55 = vld [vmem:[%s10427_s25 + $0x110] sm:$0xff] }
 0x28c   : > { %7334 = vmatprep.mubr.bf16.mxu0 %v10211_v21  ;;  %7703 = vmatprep.mubr.bf16.mxu1 %v10211_v21  ;;  %v382_v20 = vld [vmem:[%s10427_s25 + $0x130] sm:$0xff] }
 0x28e   : > { %7305 = vmatpush1.bf16.msra.mxu0 %v9737_v11  ;;  %7674 = vmatpush1.bf16.msra.mxu1 %v9739_v12  ;;  %v351_v11 = vld [vmem:[%s10427_s25 + $0x38] sm:$0xff]  ;;  %v9785_v12 = vcombine.low %v1424_v0, %v1428_v1  ;;  %v386_v1 = vld [vmem:[%s10427_s25 + $0x150] sm:$0xff] }
 0x28f   : > { %7306 = vmatprep.subr.bf16.mxu0 %v9746_v14  ;;  %7675 = vmatprep.subr.bf16.mxu1 %v9748_v15  ;;  %v9787_v14 = vcombine.low %v1425_v3, %v1429_v4  ;;  %v8710_v15 = vcombine.high %v346_v9, %v350_v10  ;;  %v8712_v18 = vcombine.high %v347_v25, %v351_v11  ;;  %v390_v3 = vld [vmem:[%s10427_s25 + $0x170] sm:$0xff]  ;;  %v387_v4 = vld [vmem:[%s10427_s25 + $0x158] sm:$0xff] }
 0x292   : > { %7307 = vmatpush1.bf16.msra.mxu0 %v9745_v27  ;;  %7676 = vmatpush1.bf16.msra.mxu1 %v9747_v29  ;;  %v355_v27 = vld [vmem:[%s10427_s25 + $0x58] sm:$0xff] }
 0x293   : > { %7308 = vmatprep.subr.bf16.mxu0 %v9754_v30  ;;  %7677 = vmatprep.subr.bf16.mxu1 %v9756_v50  ;;  %v359_v29 = vld [vmem:[%s10427_s25 + $0x78] sm:$0xff]  ;;  %v8709_v30 = vcombine.low %v346_v9, %v350_v10  ;;  %v8711_v50 = vcombine.low %v347_v25, %v351_v11  ;;  %v394_v10 = vld [vmem:[%s10427_s25 + $0x190] sm:$0xff] }
 0x294   : > { %v8720_v33 = vcombine.high %v355_v27, %v359_v29  ;;  %v398_v25 = vld [vmem:[%s10427_s25 + $0x1b0] sm:$0xff]  ;;  %v395_v11 = vld [vmem:[%s10427_s25 + $0x198] sm:$0xff] }
 0x296   : > { %7309 = vmatpush1.bf16.msra.mxu0 %v9753_v36  ;;  %7678 = vmatpush1.bf16.msra.mxu1 %v9755_v38  ;;  %v363_v36 = vld [vmem:[%s10427_s25 + $0x98] sm:$0xff] }
 0x297   : > { %7310 = vmatprep.subr.bf16.mxu0 %v9762_v39  ;;  %7679 = vmatprep.subr.bf16.mxu1 %v9764_v41  ;;  %v367_v38 = vld [vmem:[%s10427_s25 + $0xb8] sm:$0xff]  ;;  %v8717_v39 = vcombine.low %v354_v19, %v358_v24  ;;  %v8719_v41 = vcombine.low %v355_v27, %v359_v29  ;;  %v402_v24 = vld [vmem:[%s10427_s25 + $0x1d0] sm:$0xff] }
 0x298   : > { %v8728_v43 = vcombine.high %v363_v36, %v367_v38  ;;  %v403_v27 = vld [vmem:[%s10427_s25 + $0x1d8] sm:$0xff] }
 0x299   : > { %v407_v29 = vld [vmem:[%s10427_s25 + $0x1f8] sm:$0xff] }
 0x29a   : > { %7311 = vmatpush1.bf16.msra.mxu0 %v9761_v45  ;;  %7680 = vmatpush1.bf16.msra.mxu1 %v9763_v48  ;;  %v371_v45 = vld [vmem:[%s10427_s25 + $0xd8] sm:$0xff] }
 0x29b   : > { %7312 = vmatprep.subr.bf16.mxu0 %v9770_v49  ;;  %7681 = vmatprep.subr.bf16.mxu1 %v9772_v51  ;;  %v375_v48 = vld [vmem:[%s10427_s25 + $0xf8] sm:$0xff]  ;;  %v8725_v49 = vcombine.low %v362_v34, %v366_v35  ;;  %v8727_v51 = vcombine.low %v363_v36, %v367_v38  ;;  %v410_v34 = vld [vmem:[%s10427_s25 + $0x210] sm:$0xff] }
 0x29c   : > { %v8736_v53 = vcombine.high %v371_v45, %v375_v48  ;;  %v414_v35 = vld [vmem:[%s10427_s25 + $0x230] sm:$0xff]  ;;  %v411_v36 = vld [vmem:[%s10427_s25 + $0x218] sm:$0xff] }
 0x29d   : > { %v415_v38 = vld [vmem:[%s10427_s25 + $0x238] sm:$0xff] }
 0x29e   : > { %7313 = vmatpush1.bf16.msra.mxu0 %v9769_v57  ;;  %7682 = vmatpush1.bf16.msra.mxu1 %v9771_v61  ;;  %v379_v57 = vld [vmem:[%s10427_s25 + $0x118] sm:$0xff] }
 0x29f   : > { %7314 = vmatprep.subr.bf16.mxu0 %v9778_v62  ;;  %7683 = vmatprep.subr.bf16.mxu1 %v9780_v63  ;;  %v383_v61 = vld [vmem:[%s10427_s25 + $0x138] sm:$0xff]  ;;  %v8733_v62 = vcombine.low %v370_v44, %v374_v26  ;;  %v8742_v63 = vcombine.high %v378_v55, %v382_v20  ;;  %v418_v44 = vld [vmem:[%s10427_s25 + $0x250] sm:$0xff] }
 0x2a0   : > { %v8744_v0 = vcombine.high %v379_v57, %v383_v61  ;;  %v422_v26 = vld [vmem:[%s10427_s25 + $0x270] sm:$0xff] }
 0x2a2   : > { %7315 = vmatpush1.bf16.msra.mxu0 %v9777_v5  ;;  %7684 = vmatpush1.bf16.msra.mxu1 %v9779_v6  ;;  %v391_v5 = vld [vmem:[%s10427_s25 + $0x178] sm:$0xff]  ;;  %v8741_v6 = vcombine.low %v378_v55, %v382_v20  ;;  %v426_v55 = vld [vmem:[%s10427_s25 + $0x290] sm:$0xff] }
 0x2a3   : > { %7316 = vmatprep.subr.bf16.mxu0 %v9786_v7  ;;  %7685 = vmatprep.subr.bf16.mxu1 %v9788_v8  ;;  %v8743_v7 = vcombine.low %v379_v57, %v383_v61  ;;  %v8750_v8 = vcombine.high %v386_v1, %v390_v3  ;;  %v8752_v9 = vcombine.high %v387_v4, %v391_v5  ;;  %v430_v20 = vld [vmem:[%s10427_s25 + $0x2b0] sm:$0xff]  ;;  %v427_v57 = vld [vmem:[%s10427_s25 + $0x298] sm:$0xff] }
 0x2a4   : > { %v431_v61 = vld [vmem:[%s10427_s25 + $0x2b8] sm:$0xff] }
 0x2a6   : > { %7317 = vmatpush1.bf16.msra.mxu0 %v9785_v12  ;;  %7686 = vmatpush1.bf16.msra.mxu1 %v9787_v14  ;;  %v399_v12 = vld [vmem:[%s10427_s25 + $0x1b8] sm:$0xff]  ;;  %v8749_v14 = vcombine.low %v386_v1, %v390_v3  ;;  %v434_v1 = vld [vmem:[%s10427_s25 + $0x2d0] sm:$0xff] }
 0x2a7   : > { %7712 = vmatprep.subr.bf16.mxu0 %v8710_v15  ;;  %8081 = vmatprep.subr.bf16.mxu1 %v8712_v18  ;;  %v8751_v15 = vcombine.low %v387_v4, %v391_v5  ;;  %v8758_v18 = vcombine.high %v394_v10, %v398_v25  ;;  %v8760_v19 = vcombine.high %v395_v11, %v399_v12  ;;  %v438_v3 = vld [vmem:[%s10427_s25 + $0x2f0] sm:$0xff]  ;;  %v435_v4 = vld [vmem:[%s10427_s25 + $0x2d8] sm:$0xff] }
 0x2a8   : > { %v439_v5 = vld [vmem:[%s10427_s25 + $0x2f8] sm:$0xff] }
 0x2a9   : > { %7335 = vmatmul.mubr.bf16.vlgmr.msra.gmra.mrb[0].mxu0 %v10038_v60  ;;  %7704 = vmatmul.mubr.bf16.vlgmr.msra.gmra.mrb[0].mxu1 %v10038_v60  ;;  %v406_v60 = vld [vmem:[%s10427_s25 + $0x1f0] sm:$0xff] }
 0x2aa   : > { %7713 = vmatpush1.bf16.msra.mxu0 %v8709_v30  ;;  %8082 = vmatpush1.bf16.msra.mxu1 %v8711_v50  ;;  %v8757_v30 = vcombine.low %v394_v10, %v398_v25  ;;  %v8759_v50 = vcombine.low %v395_v11, %v399_v12  ;;  %v442_v10 = vld [vmem:[%s10427_s25 + $0x310] sm:$0xff]  ;;  %v443_v11 = vld [vmem:[%s10427_s25 + $0x318] sm:$0xff] }
 0x2ab   : > { %7714 = vmatprep.subr.bf16.mxu0 %v8718_v16  ;;  %8083 = vmatprep.subr.bf16.mxu1 %v8720_v33  ;;  %v8766_v16 = vcombine.high %v402_v24, %v406_v60  ;;  %v8768_v33 = vcombine.high %v403_v27, %v407_v29  ;;  %v446_v25 = vld [vmem:[%s10427_s25 + $0x330] sm:$0xff]  ;;  %v447_v12 = vld [vmem:[%s10427_s25 + $0x338] sm:$0xff] }
 0x2ac   : > { %7744 = vmatprep.mubr.bf16.mxu0 %v10489_v58  ;;  %8113 = vmatprep.mubr.bf16.mxu1 %v10489_v58  ;;  %v8735_v58 = vcombine.low %v371_v45, %v375_v48  ;;  %v419_v45 = vld [vmem:[%s10427_s25 + $0x258] sm:$0xff] }
 0x2ad   : > { %v423_v48 = vld [vmem:[%s10427_s25 + $0x278] sm:$0xff] }
 0x2ae   : > { %7715 = vmatpush1.bf16.msra.mxu0 %v8717_v39  ;;  %8084 = vmatpush1.bf16.msra.mxu1 %v8719_v41  ;;  %v8765_v39 = vcombine.low %v402_v24, %v406_v60  ;;  %v8767_v41 = vcombine.low %v403_v27, %v407_v29  ;;  %v450_v24 = vld [vmem:[%s10427_s25 + $0x350] sm:$0xff]  ;;  %v451_v27 = vld [vmem:[%s10427_s25 + $0x358] sm:$0xff] }
 0x2af   : > { %7716 = vmatprep.subr.bf16.mxu0 %v8726_v42  ;;  %8085 = vmatprep.subr.bf16.mxu1 %v8728_v43  ;;  %v8774_v42 = vcombine.high %v410_v34, %v414_v35  ;;  %v8776_v43 = vcombine.high %v411_v36, %v415_v38  ;;  %v454_v60 = vld [vmem:[%s10427_s25 + $0x370] sm:$0xff]  ;;  %v455_v29 = vld [vmem:[%s10427_s25 + $0x378] sm:$0xff] }
 0x2b2   : > { %7717 = vmatpush1.bf16.msra.mxu0 %v8725_v49  ;;  %8086 = vmatpush1.bf16.msra.mxu1 %v8727_v51  ;;  %v8773_v49 = vcombine.low %v410_v34, %v414_v35  ;;  %v8775_v51 = vcombine.low %v411_v36, %v415_v38  ;;  %v458_v34 = vld [vmem:[%s10427_s25 + $0x390] sm:$0xff]  ;;  %v459_v36 = vld [vmem:[%s10427_s25 + $0x398] sm:$0xff] }
 0x2b3   : > { %7718 = vmatprep.subr.bf16.mxu0 %v8734_v52  ;;  %8087 = vmatprep.subr.bf16.mxu1 %v8736_v53  ;;  %v8782_v52 = vcombine.high %v418_v44, %v422_v26  ;;  %v8784_v53 = vcombine.high %v419_v45, %v423_v48  ;;  %v462_v35 = vld [vmem:[%s10427_s25 + $0x3b0] sm:$0xff]  ;;  %v463_v38 = vld [vmem:[%s10427_s25 + $0x3b8] sm:$0xff] }
 0x2b6   : > { %7719 = vmatpush1.bf16.msra.mxu0 %v8733_v62  ;;  %8088 = vmatpush1.bf16.msra.mxu1 %v8735_v58  ;;  %v8781_v62 = vcombine.low %v418_v44, %v422_v26  ;;  %v8783_v58 = vcombine.low %v419_v45, %v423_v48  ;;  %v466_v44 = vld [vmem:[%s10427_s25 + $0x3d0] sm:$0xff]  ;;  %v467_v45 = vld [vmem:[%s10427_s25 + $0x3d8] sm:$0xff] }
 0x2b7   : > { %7720 = vmatprep.subr.bf16.mxu0 %v8742_v63  ;;  %8089 = vmatprep.subr.bf16.mxu1 %v8744_v0  ;;  %v8790_v63 = vcombine.high %v426_v55, %v430_v20  ;;  %v8792_v0 = vcombine.high %v427_v57, %v431_v61  ;;  %v470_v26 = vld [vmem:[%s10427_s25 + $0x3f0] sm:$0xff]  ;;  %v471_v48 = vld [vmem:[%s10427_s25 + $0x3f8] sm:$0xff] }
 0x2ba   : > { %7721 = vmatpush1.bf16.msra.mxu0 %v8741_v6  ;;  %8090 = vmatpush1.bf16.msra.mxu1 %v8743_v7  ;;  %v8789_v6 = vcombine.low %v426_v55, %v430_v20  ;;  %v8791_v7 = vcombine.low %v427_v57, %v431_v61  ;;  %v474_v55 = vld [vmem:[%s10427_s25 + $0x410] sm:$0xff]  ;;  %v475_v57 = vld [vmem:[%s10427_s25 + $0x418] sm:$0xff] }
 0x2bb   : > { %7722 = vmatprep.subr.bf16.mxu0 %v8750_v8  ;;  %8091 = vmatprep.subr.bf16.mxu1 %v8752_v9  ;;  %v8798_v8 = vcombine.high %v434_v1, %v438_v3  ;;  %v8800_v9 = vcombine.high %v435_v4, %v439_v5  ;;  %v478_v20 = vld [vmem:[%s10427_s25 + $0x430] sm:$0xff]  ;;  %v479_v61 = vld [vmem:[%s10427_s25 + $0x438] sm:$0xff] }
 0x2be   : > { %7723 = vmatpush1.bf16.msra.mxu0 %v8749_v14  ;;  %8092 = vmatpush1.bf16.msra.mxu1 %v8751_v15  ;;  %v8797_v14 = vcombine.low %v434_v1, %v438_v3  ;;  %v8799_v15 = vcombine.low %v435_v4, %v439_v5  ;;  %v482_v1 = vld [vmem:[%s10427_s25 + $0x450] sm:$0xff]  ;;  %v483_v4 = vld [vmem:[%s10427_s25 + $0x458] sm:$0xff] }
 0x2bf   : > { %7724 = vmatprep.subr.bf16.mxu0 %v8758_v18  ;;  %8093 = vmatprep.subr.bf16.mxu1 %v8760_v19  ;;  %v8806_v18 = vcombine.high %v442_v10, %v446_v25  ;;  %v8808_v19 = vcombine.high %v443_v11, %v447_v12  ;;  %v486_v3 = vld [vmem:[%s10427_s25 + $0x470] sm:$0xff]  ;;  %v487_v5 = vld [vmem:[%s10427_s25 + $0x478] sm:$0xff] }
 0x2c2   : > { %7725 = vmatpush1.bf16.msra.mxu0 %v8757_v30  ;;  %8094 = vmatpush1.bf16.msra.mxu1 %v8759_v50  ;;  %v8805_v30 = vcombine.low %v442_v10, %v446_v25  ;;  %v8807_v50 = vcombine.low %v443_v11, %v447_v12  ;;  %v490_v10 = vld [vmem:[%s10427_s25 + $0x490] sm:$0xff]  ;;  %v491_v11 = vld [vmem:[%s10427_s25 + $0x498] sm:$0xff] }
 0x2c3   : > { %7726 = vmatprep.subr.bf16.mxu0 %v8766_v16  ;;  %8095 = vmatprep.subr.bf16.mxu1 %v8768_v33  ;;  %v8814_v16 = vcombine.high %v450_v24, %v454_v60  ;;  %v8816_v33 = vcombine.high %v451_v27, %v455_v29  ;;  %v494_v25 = vld [vmem:[%s10427_s25 + $0x4b0] sm:$0xff]  ;;  %v495_v12 = vld [vmem:[%s10427_s25 + $0x4b8] sm:$0xff] }
 0x2c6   : > { %7727 = vmatpush1.bf16.msra.mxu0 %v8765_v39  ;;  %8096 = vmatpush1.bf16.msra.mxu1 %v8767_v41  ;;  %v8813_v39 = vcombine.low %v450_v24, %v454_v60  ;;  %v8815_v41 = vcombine.low %v451_v27, %v455_v29  ;;  %v498_v24 = vld [vmem:[%s10427_s25 + $0x4d0] sm:$0xff]  ;;  %v499_v27 = vld [vmem:[%s10427_s25 + $0x4d8] sm:$0xff] }
 0x2c7   : > { %7728 = vmatprep.subr.bf16.mxu0 %v8774_v42  ;;  %8097 = vmatprep.subr.bf16.mxu1 %v8776_v43  ;;  %v8822_v42 = vcombine.high %v458_v34, %v462_v35  ;;  %v8824_v43 = vcombine.high %v459_v36, %v463_v38  ;;  %v502_v60 = vld [vmem:[%s10427_s25 + $0x4f0] sm:$0xff]  ;;  %v503_v29 = vld [vmem:[%s10427_s25 + $0x4f8] sm:$0xff] }
 0x2ca   : > { %7729 = vmatpush1.bf16.msra.mxu0 %v8773_v49  ;;  %8098 = vmatpush1.bf16.msra.mxu1 %v8775_v51  ;;  %v8821_v49 = vcombine.low %v458_v34, %v462_v35  ;;  %v8823_v51 = vcombine.low %v459_v36, %v463_v38  ;;  %v510_v34 = vld [vmem:[%s10427_s25 + $0x530] sm:$0xff]  ;;  %v507_v35 = vld [vmem:[%s10427_s25 + $0x518] sm:$0xff]  ;;  %v8861_v38 = vcombine.low %v498_v24, %v502_v60 }
 0x2cb   : > { %7730 = vmatprep.subr.bf16.mxu0 %v8782_v52  ;;  %8099 = vmatprep.subr.bf16.mxu1 %v8784_v53  ;;  %v8830_v52 = vcombine.high %v466_v44, %v470_v26  ;;  %v8832_v53 = vcombine.high %v467_v45, %v471_v48  ;;  %v511_v36 = vld [vmem:[%s10427_s25 + $0x538] sm:$0xff] }
 0x2ce   : > { %7731 = vmatpush1.bf16.msra.mxu0 %v8781_v62  ;;  %8100 = vmatpush1.bf16.msra.mxu1 %v8783_v58  ;;  %v8829_v62 = vcombine.low %v466_v44, %v470_v26  ;;  %v8831_v58 = vcombine.low %v467_v45, %v471_v48  ;;  %v515_v44 = vld [vmem:[%s10427_s25 + $0x558] sm:$0xff]  ;;  %v8871_v48 = vcombine.low %v507_v35, %v511_v36 }
 0x2cf   : > { %7732 = vmatprep.subr.bf16.mxu0 %v8790_v63  ;;  %8101 = vmatprep.subr.bf16.mxu1 %v8792_v0  ;;  %v8838_v63 = vcombine.high %v474_v55, %v478_v20  ;;  %v8840_v0 = vcombine.high %v475_v57, %v479_v61  ;;  %v519_v26 = vld [vmem:[%s10427_s25 + $0x578] sm:$0xff] }
 0x2d2   : > { %7733 = vmatpush1.bf16.msra.mxu0 %v8789_v6  ;;  %8102 = vmatpush1.bf16.msra.mxu1 %v8791_v7  ;;  %v8837_v6 = vcombine.low %v474_v55, %v478_v20  ;;  %v8839_v7 = vcombine.low %v475_v57, %v479_v61  ;;  %v523_v55 = vld [vmem:[%s10427_s25 + $0x598] sm:$0xff]  ;;  %v8879_v61 = vcombine.low %v515_v44, %v519_v26 }
 0x2d3   : > { %7734 = vmatprep.subr.bf16.mxu0 %v8798_v8  ;;  %8103 = vmatprep.subr.bf16.mxu1 %v8800_v9  ;;  %v8846_v8 = vcombine.high %v482_v1, %v486_v3  ;;  %v8848_v9 = vcombine.high %v483_v4, %v487_v5  ;;  %v527_v20 = vld [vmem:[%s10427_s25 + $0x5b8] sm:$0xff] }
 0x2d6   : > { %7735 = vmatpush1.bf16.msra.mxu0 %v8797_v14  ;;  %8104 = vmatpush1.bf16.msra.mxu1 %v8799_v15  ;;  %v8845_v14 = vcombine.low %v482_v1, %v486_v3  ;;  %v8847_v15 = vcombine.low %v483_v4, %v487_v5  ;;  %v531_v1 = vld [vmem:[%s10427_s25 + $0x5d8] sm:$0xff]  ;;  %v8887_v5 = vcombine.low %v523_v55, %v527_v20 }
 0x2d7   : > { %7736 = vmatprep.subr.bf16.mxu0 %v8806_v18  ;;  %8105 = vmatprep.subr.bf16.mxu1 %v8808_v19  ;;  %v8854_v18 = vcombine.high %v490_v10, %v494_v25  ;;  %v8856_v19 = vcombine.high %v491_v11, %v495_v12  ;;  %v535_v3 = vld [vmem:[%s10427_s25 + $0x5f8] sm:$0xff] }
 0x2da   : > { %7737 = vmatpush1.bf16.msra.mxu0 %v8805_v30  ;;  %8106 = vmatpush1.bf16.msra.mxu1 %v8807_v50  ;;  %v8855_v30 = vcombine.low %v491_v11, %v495_v12  ;;  %v8862_v50 = vcombine.high %v498_v24, %v502_v60  ;;  %v8895_v12 = vcombine.low %v531_v1, %v535_v3  ;;  %v547_v24 = vld [vmem:[%s10427_s25 + $0x658] sm:$0xff] }
 0x2db   : > { %7738 = vmatprep.subr.bf16.mxu0 %v8814_v16  ;;  %8107 = vmatprep.subr.bf16.mxu1 %v8816_v33  ;;  %v8864_v16 = vcombine.high %v499_v27, %v503_v29  ;;  %v506_v33 = vld [vmem:[%s10427_s25 + $0x510] sm:$0xff]  ;;  %v551_v60 = vld [vmem:[%s10427_s25 + $0x678] sm:$0xff] }
 0x2dc   : > { %v8869_v45 = vcombine.low %v506_v33, %v510_v34 }
 0x2de   : > { %7739 = vmatpush1.bf16.msra.mxu0 %v8813_v39  ;;  %8108 = vmatpush1.bf16.msra.mxu1 %v8815_v41  ;;  %v8870_v39 = vcombine.high %v506_v33, %v510_v34  ;;  %v8872_v41 = vcombine.high %v507_v35, %v511_v36  ;;  %v555_v33 = vld [vmem:[%s10427_s25 + $0x698] sm:$0xff]  ;;  %v8911_v36 = vcombine.low %v547_v24, %v551_v60 }
 0x2df   : > { %7740 = vmatprep.subr.bf16.mxu0 %v8822_v42  ;;  %8109 = vmatprep.subr.bf16.mxu1 %v8824_v43  ;;  %v514_v42 = vld [vmem:[%s10427_s25 + $0x550] sm:$0xff]  ;;  %v559_v34 = vld [vmem:[%s10427_s25 + $0x6b8] sm:$0xff] }
 0x2e0   : > { %v518_v43 = vld [vmem:[%s10427_s25 + $0x570] sm:$0xff] }
 0x2e1   : > { %v8877_v57 = vcombine.low %v514_v42, %v518_v43 }
 0x2e2   : > { %7741 = vmatpush1.bf16.msra.mxu0 %v8821_v49  ;;  %8110 = vmatpush1.bf16.msra.mxu1 %v8823_v51  ;;  %v8878_v49 = vcombine.high %v514_v42, %v518_v43  ;;  %v8880_v51 = vcombine.high %v515_v44, %v519_v26  ;;  %v563_v42 = vld [vmem:[%s10427_s25 + $0x6d8] sm:$0xff]  ;;  %v8919_v26 = vcombine.low %v555_v33, %v559_v34 }
 0x2e3   : > { %7742 = vmatprep.subr.bf16.mxu0 %v8830_v52  ;;  %8111 = vmatprep.subr.bf16.mxu1 %v8832_v53  ;;  %v522_v52 = vld [vmem:[%s10427_s25 + $0x590] sm:$0xff]  ;;  %v567_v43 = vld [vmem:[%s10427_s25 + $0x6f8] sm:$0xff] }
 0x2e4   : > { %v526_v53 = vld [vmem:[%s10427_s25 + $0x5b0] sm:$0xff] }
 0x2e5   : > { %v8885_v4 = vcombine.low %v522_v52, %v526_v53 }
 0x2e6   : > { %7743 = vmatpush1.bf16.msra.mxu0 %v8829_v62  ;;  %8112 = vmatpush1.bf16.msra.mxu1 %v8831_v58  ;;  %v8886_v62 = vcombine.high %v522_v52, %v526_v53  ;;  %v8888_v58 = vcombine.high %v523_v55, %v527_v20  ;;  %v571_v52 = vld [vmem:[%s10427_s25 + $0x718] sm:$0xff]  ;;  %v8927_v20 = vcombine.low %v563_v42, %v567_v43 }
 0x2e7   : > { %7753 = vmatprep.subr.bf16.mxu0 %v8838_v63  ;;  %8122 = vmatprep.subr.bf16.mxu1 %v8840_v0  ;;  %v530_v63 = vld [vmem:[%s10427_s25 + $0x5d0] sm:$0xff]  ;;  %v575_v53 = vld [vmem:[%s10427_s25 + $0x738] sm:$0xff] }
 0x2e8   : > { %v534_v0 = vld [vmem:[%s10427_s25 + $0x5f0] sm:$0xff] }
 0x2e9   : > { %7745 = vmatmul.mubr.bf16.vlgmr.msra.gmra.mrb[4].mxu0 %v10535_v13  ;;  %8114 = vmatmul.mubr.bf16.vlgmr.msra.gmra.mrb[4].mxu1 %v10535_v13  ;;  %v8853_v13 = vcombine.low %v490_v10, %v494_v25  ;;  %v539_v10 = vld [vmem:[%s10427_s25 + $0x618] sm:$0xff]  ;;  %v8893_v11 = vcombine.low %v530_v63, %v534_v0 }
 0x2ea   : > { %7754 = vmatpush1.bf16.msra.mxu0 %v8837_v6  ;;  %8123 = vmatpush1.bf16.msra.mxu1 %v8839_v7  ;;  %v8894_v6 = vcombine.high %v530_v63, %v534_v0  ;;  %v8896_v7 = vcombine.high %v531_v1, %v535_v3  ;;  %v543_v25 = vld [vmem:[%s10427_s25 + $0x638] sm:$0xff]  ;;  %v8935_v3 = vcombine.low %v571_v52, %v575_v53 }
 0x2eb   : > { %7755 = vmatprep.subr.bf16.mxu0 %v8846_v8  ;;  %8124 = vmatprep.subr.bf16.mxu1 %v8848_v9  ;;  %v538_v8 = vld [vmem:[%s10427_s25 + $0x610] sm:$0xff]  ;;  %v579_v63 = vld [vmem:[%s10427_s25 + $0x758] sm:$0xff] }
 0x2ec   : > { %7785 = vmatprep.mubr.bf16.mxu0 %v10548_v22  ;;  %8154 = vmatprep.mubr.bf16.mxu1 %v10548_v22  ;;  %v8863_v22 = vcombine.low %v499_v27, %v503_v29  ;;  %v542_v9 = vld [vmem:[%s10427_s25 + $0x630] sm:$0xff]  ;;  %v8903_v29 = vcombine.low %v539_v10, %v543_v25  ;;  %v583_v0 = vld [vmem:[%s10427_s25 + $0x778] sm:$0xff] }
 0x2ed   : > { %v8901_v27 = vcombine.low %v538_v8, %v542_v9 }
 0x2ee   : > { %7756 = vmatpush1.bf16.msra.mxu0 %v8845_v14  ;;  %8125 = vmatpush1.bf16.msra.mxu1 %v8847_v15  ;;  %v8902_v14 = vcombine.high %v538_v8, %v542_v9  ;;  %v8904_v15 = vcombine.high %v539_v10, %v543_v25  ;;  %v587_v8 = vld [vmem:[%s10427_s25 + $0x798] sm:$0xff]  ;;  %v8943_v25 = vcombine.low %v579_v63, %v583_v0 }
 0x2ef   : > { %7757 = vmatprep.subr.bf16.mxu0 %v8854_v18  ;;  %8126 = vmatprep.subr.bf16.mxu1 %v8856_v19  ;;  %v546_v18 = vld [vmem:[%s10427_s25 + $0x650] sm:$0xff]  ;;  %v591_v9 = vld [vmem:[%s10427_s25 + $0x7b8] sm:$0xff] }
 0x2f0   : > { %v550_v19 = vld [vmem:[%s10427_s25 + $0x670] sm:$0xff] }
 0x2f1   : > { %v8909_v35 = vcombine.low %v546_v18, %v550_v19 }
 0x2f2   : > { %7758 = vmatpush1.bf16.msra.mxu0 %v8853_v13  ;;  %8127 = vmatpush1.bf16.msra.mxu1 %v8855_v30  ;;  %v8910_v13 = vcombine.high %v546_v18, %v550_v19  ;;  %v8912_v30 = vcombine.high %v547_v24, %v551_v60  ;;  %v595_v18 = vld [vmem:[%s10427_s25 + $0x7d8] sm:$0xff]  ;;  %v8951_v60 = vcombine.low %v587_v8, %v591_v9 }
 0x2f3   : > { %7759 = vmatprep.subr.bf16.mxu0 %v8862_v50  ;;  %8128 = vmatprep.subr.bf16.mxu1 %v8864_v16  ;;  %v554_v50 = vld [vmem:[%s10427_s25 + $0x690] sm:$0xff]  ;;  %v599_v19 = vld [vmem:[%s10427_s25 + $0x7f8] sm:$0xff] }
 0x2f4   : > { %v558_v16 = vld [vmem:[%s10427_s25 + $0x6b0] sm:$0xff] }
 0x2f5   : > { %v8917_v44 = vcombine.low %v554_v50, %v558_v16 }
 0x2f6   : > { %7760 = vmatpush1.bf16.msra.mxu0 %v8861_v38  ;;  %8129 = vmatpush1.bf16.msra.mxu1 %v8863_v22  ;;  %v8918_v38 = vcombine.high %v554_v50, %v558_v16  ;;  %v8920_v22 = vcombine.high %v555_v33, %v559_v34  ;;  %v603_v50 = vld [vmem:[%s10427_s25 + $0x818] sm:$0xff]  ;;  %v8959_v34 = vcombine.low %v595_v18, %v599_v19 }
 0x2f7   : > { %7761 = vmatprep.subr.bf16.mxu0 %v8870_v39  ;;  %8130 = vmatprep.subr.bf16.mxu1 %v8872_v41  ;;  %v562_v39 = vld [vmem:[%s10427_s25 + $0x6d0] sm:$0xff]  ;;  %v607_v16 = vld [vmem:[%s10427_s25 + $0x838] sm:$0xff] }
 0x2f8   : > { %v566_v41 = vld [vmem:[%s10427_s25 + $0x6f0] sm:$0xff] }
 0x2f9   : > { %v8925_v55 = vcombine.low %v562_v39, %v566_v41 }
 0x2fa   : > { %7762 = vmatpush1.bf16.msra.mxu0 %v8869_v45  ;;  %8131 = vmatpush1.bf16.msra.mxu1 %v8871_v48  ;;  %v8926_v45 = vcombine.high %v562_v39, %v566_v41  ;;  %v8928_v48 = vcombine.high %v563_v42, %v567_v43  ;;  %v611_v39 = vld [vmem:[%s10427_s25 + $0x858] sm:$0xff]  ;;  %v8967_v43 = vcombine.low %v603_v50, %v607_v16 }
 0x2fb   : > { %7763 = vmatprep.subr.bf16.mxu0 %v8878_v49  ;;  %8132 = vmatprep.subr.bf16.mxu1 %v8880_v51  ;;  %v570_v49 = vld [vmem:[%s10427_s25 + $0x710] sm:$0xff]  ;;  %v615_v41 = vld [vmem:[%s10427_s25 + $0x878] sm:$0xff] }
 0x2fc   : > { %v574_v51 = vld [vmem:[%s10427_s25 + $0x730] sm:$0xff] }
 0x2fd   : > { %v8933_v1 = vcombine.low %v570_v49, %v574_v51 }
 0x2fe   : > { %7764 = vmatpush1.bf16.msra.mxu0 %v8877_v57  ;;  %8133 = vmatpush1.bf16.msra.mxu1 %v8879_v61  ;;  %v8934_v57 = vcombine.high %v570_v49, %v574_v51  ;;  %v8936_v61 = vcombine.high %v571_v52, %v575_v53  ;;  %v619_v49 = vld [vmem:[%s10427_s25 + $0x898] sm:$0xff]  ;;  %v8975_v53 = vcombine.low %v611_v39, %v615_v41 }
 0x2ff   : > { %7765 = vmatprep.subr.bf16.mxu0 %v8886_v62  ;;  %8134 = vmatprep.subr.bf16.mxu1 %v8888_v58  ;;  %v578_v62 = vld [vmem:[%s10427_s25 + $0x750] sm:$0xff]  ;;  %v623_v51 = vld [vmem:[%s10427_s25 + $0x8b8] sm:$0xff] }
 0x300   : > { %v582_v58 = vld [vmem:[%s10427_s25 + $0x770] sm:$0xff] }
 0x301   : > { %v8941_v10 = vcombine.low %v578_v62, %v582_v58 }
 0x302   : > { %7766 = vmatpush1.bf16.msra.mxu0 %v8885_v4  ;;  %8135 = vmatpush1.bf16.msra.mxu1 %v8887_v5  ;;  %v8942_v4 = vcombine.high %v578_v62, %v582_v58  ;;  %v8944_v5 = vcombine.high %v579_v63, %v583_v0  ;;  %v627_v62 = vld [vmem:[%s10427_s25 + $0x8d8] sm:$0xff]  ;;  %v8983_v63 = vcombine.low %v619_v49, %v623_v51 }
 0x303   : > { %7767 = vmatprep.subr.bf16.mxu0 %v8894_v6  ;;  %8136 = vmatprep.subr.bf16.mxu1 %v8896_v7  ;;  %v586_v6 = vld [vmem:[%s10427_s25 + $0x790] sm:$0xff]  ;;  %v631_v58 = vld [vmem:[%s10427_s25 + $0x8f8] sm:$0xff] }
 0x304   : > { %v590_v7 = vld [vmem:[%s10427_s25 + $0x7b0] sm:$0xff] }
 0x305   : > { %v8949_v24 = vcombine.low %v586_v6, %v590_v7 }
 0x306   : > { %7768 = vmatpush1.bf16.msra.mxu0 %v8893_v11  ;;  %8137 = vmatpush1.bf16.msra.mxu1 %v8895_v12  ;;  %v8950_v11 = vcombine.high %v586_v6, %v590_v7  ;;  %v8952_v12 = vcombine.high %v587_v8, %v591_v9  ;;  %v639_v6 = vld [vmem:[%s10427_s25 + $0x938] sm:$0xff] }
 0x307   : > { %7769 = vmatprep.subr.bf16.mxu0 %v8902_v14  ;;  %8138 = vmatprep.subr.bf16.mxu1 %v8904_v15  ;;  %v594_v14 = vld [vmem:[%s10427_s25 + $0x7d0] sm:$0xff] }
 0x308   : > { %v598_v15 = vld [vmem:[%s10427_s25 + $0x7f0] sm:$0xff] }
 0x309   : > { %v8957_v33 = vcombine.low %v594_v14, %v598_v15 }
 0x30a   : > { %7770 = vmatpush1.bf16.msra.mxu0 %v8901_v27  ;;  %8139 = vmatpush1.bf16.msra.mxu1 %v8903_v29  ;;  %v8958_v27 = vcombine.high %v594_v14, %v598_v15  ;;  %v8960_v29 = vcombine.high %v595_v18, %v599_v19 }
 0x30b   : > { %7771 = vmatprep.subr.bf16.mxu0 %v8910_v13  ;;  %8140 = vmatprep.subr.bf16.mxu1 %v8912_v30  ;;  %v602_v13 = vld [vmem:[%s10427_s25 + $0x810] sm:$0xff] }
 0x30c   : > { %v606_v30 = vld [vmem:[%s10427_s25 + $0x830] sm:$0xff] }
 0x30d   : > { %v8965_v42 = vcombine.low %v602_v13, %v606_v30 }
 0x30e   : > { %7772 = vmatpush1.bf16.msra.mxu0 %v8909_v35  ;;  %8141 = vmatpush1.bf16.msra.mxu1 %v8911_v36  ;;  %v8966_v35 = vcombine.high %v602_v13, %v606_v30  ;;  %v8968_v36 = vcombine.high %v603_v50, %v607_v16 }
 0x30f   : > { %7773 = vmatprep.subr.bf16.mxu0 %v8918_v38  ;;  %8142 = vmatprep.subr.bf16.mxu1 %v8920_v22  ;;  %v610_v38 = vld [vmem:[%s10427_s25 + $0x850] sm:$0xff] }
 0x310   : > { %v614_v22 = vld [vmem:[%s10427_s25 + $0x870] sm:$0xff] }
 0x311   : > { %v8973_v52 = vcombine.low %v610_v38, %v614_v22 }
 0x312   : > { %7774 = vmatpush1.bf16.msra.mxu0 %v8917_v44  ;;  %8143 = vmatpush1.bf16.msra.mxu1 %v8919_v26  ;;  %v8974_v44 = vcombine.high %v610_v38, %v614_v22  ;;  %v8976_v26 = vcombine.high %v611_v39, %v615_v41 }
 0x313   : > { %7775 = vmatprep.subr.bf16.mxu0 %v8926_v45  ;;  %8144 = vmatprep.subr.bf16.mxu1 %v8928_v48  ;;  %v618_v45 = vld [vmem:[%s10427_s25 + $0x890] sm:$0xff] }
 0x314   : > { %v622_v48 = vld [vmem:[%s10427_s25 + $0x8b0] sm:$0xff] }
 0x316   : > { %7776 = vmatpush1.bf16.msra.mxu0 %v8925_v55  ;;  %8145 = vmatpush1.bf16.msra.mxu1 %v8927_v20  ;;  %v8982_v55 = vcombine.high %v618_v45, %v622_v48  ;;  %v8984_v20 = vcombine.high %v619_v49, %v623_v51 }
 0x317   : > { %7777 = vmatprep.subr.bf16.mxu0 %v8934_v57  ;;  %8146 = vmatprep.subr.bf16.mxu1 %v8936_v61  ;;  %v626_v57 = vld [vmem:[%s10427_s25 + $0x8d0] sm:$0xff] }
 0x318   : > { %v630_v61 = vld [vmem:[%s10427_s25 + $0x8f0] sm:$0xff] }
 0x319   : > { %v8990_v0 = vcombine.high %v626_v57, %v630_v61  ;;  %v8989_v7 = vcombine.low %v626_v57, %v630_v61 }
 0x31a   : > { %7778 = vmatpush1.bf16.msra.mxu0 %v8933_v1  ;;  %8147 = vmatpush1.bf16.msra.mxu1 %v8935_v3  ;;  %v8992_v1 = vcombine.high %v627_v62, %v631_v58  ;;  %v634_v3 = vld [vmem:[%s10427_s25 + $0x910] sm:$0xff] }
 0x31b   : > { %7779 = vmatprep.subr.bf16.mxu0 %v8942_v4  ;;  %8148 = vmatprep.subr.bf16.mxu1 %v8944_v5  ;;  %v638_v4 = vld [vmem:[%s10427_s25 + $0x930] sm:$0xff]  ;;  %v635_v5 = vld [vmem:[%s10427_s25 + $0x918] sm:$0xff] }
 0x31c   : > { %v8998_v8 = vcombine.high %v634_v3, %v638_v4  ;;  %v9000_v9 = vcombine.high %v635_v5, %v639_v6  ;;  %v8997_v14 = vcombine.low %v634_v3, %v638_v4  ;;  %v8999_v15 = vcombine.low %v635_v5, %v639_v6 }
 0x31e   : > { %7780 = vmatpush1.bf16.msra.mxu0 %v8941_v10  ;;  %8149 = vmatpush1.bf16.msra.mxu1 %v8943_v25  ;;  %v642_v10 = vld [vmem:[%s10427_s25 + $0x950] sm:$0xff] }
 0x31f   : > { %7781 = vmatprep.subr.bf16.mxu0 %v8950_v11  ;;  %8150 = vmatprep.subr.bf16.mxu1 %v8952_v12  ;;  %v646_v25 = vld [vmem:[%s10427_s25 + $0x970] sm:$0xff]  ;;  %v643_v11 = vld [vmem:[%s10427_s25 + $0x958] sm:$0xff] }
 0x320   : > { %v647_v12 = vld [vmem:[%s10427_s25 + $0x978] sm:$0xff]  ;;  %v9006_v18 = vcombine.high %v642_v10, %v646_v25  ;;  %v9005_v13 = vcombine.low %v642_v10, %v646_v25 }
 0x321   : > { %v9008_v19 = vcombine.high %v643_v11, %v647_v12  ;;  %v9007_v30 = vcombine.low %v643_v11, %v647_v12 }
 0x322   : > { %7782 = vmatpush1.bf16.msra.mxu0 %v8949_v24  ;;  %8151 = vmatpush1.bf16.msra.mxu1 %v8951_v60  ;;  %v650_v24 = vld [vmem:[%s10427_s25 + $0x990] sm:$0xff] }
 0x323   : > { %7783 = vmatprep.subr.bf16.mxu0 %v8958_v27  ;;  %8152 = vmatprep.subr.bf16.mxu1 %v8960_v29  ;;  %v654_v60 = vld [vmem:[%s10427_s25 + $0x9b0] sm:$0xff]  ;;  %v651_v27 = vld [vmem:[%s10427_s25 + $0x998] sm:$0xff] }
 0x324   : > { %v655_v29 = vld [vmem:[%s10427_s25 + $0x9b8] sm:$0xff]  ;;  %v9014_v50 = vcombine.high %v650_v24, %v654_v60  ;;  %v9013_v38 = vcombine.low %v650_v24, %v654_v60 }
 0x325   : > { %v9016_v16 = vcombine.high %v651_v27, %v655_v29  ;;  %v9015_v22 = vcombine.low %v651_v27, %v655_v29 }
 0x326   : > { %7784 = vmatpush1.bf16.msra.mxu0 %v8957_v33  ;;  %8153 = vmatpush1.bf16.msra.mxu1 %v8959_v34  ;;  %v658_v33 = vld [vmem:[%s10427_s25 + $0x9d0] sm:$0xff] }
 0x327   : > { %7794 = vmatprep.subr.bf16.mxu0 %v8966_v35  ;;  %8163 = vmatprep.subr.bf16.mxu1 %v8968_v36  ;;  %v662_v34 = vld [vmem:[%s10427_s25 + $0x9f0] sm:$0xff]  ;;  %v659_v35 = vld [vmem:[%s10427_s25 + $0x9d8] sm:$0xff] }
 0x328   : > { %v663_v36 = vld [vmem:[%s10427_s25 + $0x9f8] sm:$0xff]  ;;  %v9022_v39 = vcombine.high %v658_v33, %v662_v34 }
 0x329   : > { %7786 = vmatmul.mubr.bf16.vlgmr.msra.gmra.mrb[4].mxu0 %v10616_v23  ;;  %8155 = vmatmul.mubr.bf16.vlgmr.msra.gmra.mrb[4].mxu1 %v10616_v23  ;;  %v8981_v23 = vcombine.low %v618_v45, %v622_v48  ;;  %v9024_v41 = vcombine.high %v659_v35, %v663_v36  ;;  %v9021_v45 = vcombine.low %v658_v33, %v662_v34 }
 0x32a   : > { %7795 = vmatpush1.bf16.msra.mxu0 %v8965_v42  ;;  %8164 = vmatpush1.bf16.msra.mxu1 %v8967_v43  ;;  %v666_v42 = vld [vmem:[%s10427_s25 + $0xa10] sm:$0xff]  ;;  %v9023_v48 = vcombine.low %v659_v35, %v663_v36 }
 0x32b   : > { %7796 = vmatprep.subr.bf16.mxu0 %v8974_v44  ;;  %8165 = vmatprep.subr.bf16.mxu1 %v8976_v26  ;;  %v670_v43 = vld [vmem:[%s10427_s25 + $0xa30] sm:$0xff]  ;;  %v667_v44 = vld [vmem:[%s10427_s25 + $0xa18] sm:$0xff] }
 0x32c   : > { %7826 = vmatprep.mubr.bf16.mxu0 %v10629_v32  ;;  %8195 = vmatprep.mubr.bf16.mxu1 %v10629_v32  ;;  %v8991_v32 = vcombine.low %v627_v62, %v631_v58  ;;  %v671_v26 = vld [vmem:[%s10427_s25 + $0xa38] sm:$0xff]  ;;  %v9030_v49 = vcombine.high %v666_v42, %v670_v43  ;;  %v9029_v57 = vcombine.low %v666_v42, %v670_v43 }
 0x32d   : > { %v9032_v51 = vcombine.high %v667_v44, %v671_v26  ;;  %v9031_v61 = vcombine.low %v667_v44, %v671_v26 }
 0x32e   : > { %7797 = vmatpush1.bf16.msra.mxu0 %v8973_v52  ;;  %8166 = vmatpush1.bf16.msra.mxu1 %v8975_v53  ;;  %v674_v52 = vld [vmem:[%s10427_s25 + $0xa50] sm:$0xff] }
 0x32f   : > { %7798 = vmatprep.subr.bf16.mxu0 %v8982_v55  ;;  %8167 = vmatprep.subr.bf16.mxu1 %v8984_v20  ;;  %v678_v53 = vld [vmem:[%s10427_s25 + $0xa70] sm:$0xff]  ;;  %v675_v55 = vld [vmem:[%s10427_s25 + $0xa58] sm:$0xff] }
 0x330   : > { %v679_v20 = vld [vmem:[%s10427_s25 + $0xa78] sm:$0xff]  ;;  %v9038_v62 = vcombine.high %v674_v52, %v678_v53  ;;  %v9037_v3 = vcombine.low %v674_v52, %v678_v53 }
 0x331   : > { %v9040_v58 = vcombine.high %v675_v55, %v679_v20  ;;  %v9039_v4 = vcombine.low %v675_v55, %v679_v20 }
 0x332   : > { %7799 = vmatpush1.bf16.msra.mxu0 %v8981_v23  ;;  %8168 = vmatpush1.bf16.msra.mxu1 %v8983_v63  ;;  %v682_v23 = vld [vmem:[%s10427_s25 + $0xa90] sm:$0xff] }
 0x333   : > { %7800 = vmatprep.subr.bf16.mxu0 %v8990_v0  ;;  %8169 = vmatprep.subr.bf16.mxu1 %v8992_v1  ;;  %v686_v63 = vld [vmem:[%s10427_s25 + $0xab0] sm:$0xff]  ;;  %v683_v0 = vld [vmem:[%s10427_s25 + $0xa98] sm:$0xff] }
 0x334   : > { %v687_v1 = vld [vmem:[%s10427_s25 + $0xab8] sm:$0xff]  ;;  %v9046_v5 = vcombine.high %v682_v23, %v686_v63  ;;  %v9045_v10 = vcombine.low %v682_v23, %v686_v63 }
 0x335   : > { %v9048_v6 = vcombine.high %v683_v0, %v687_v1  ;;  %v9047_v25 = vcombine.low %v683_v0, %v687_v1 }
 0x336   : > { %7801 = vmatpush1.bf16.msra.mxu0 %v8989_v7  ;;  %8170 = vmatpush1.bf16.msra.mxu1 %v8991_v32  ;;  %v690_v7 = vld [vmem:[%s10427_s25 + $0xad0] sm:$0xff] }
 0x337   : > { %7802 = vmatprep.subr.bf16.mxu0 %v8998_v8  ;;  %8171 = vmatprep.subr.bf16.mxu1 %v9000_v9  ;;  %v694_v32 = vld [vmem:[%s10427_s25 + $0xaf0] sm:$0xff]  ;;  %v691_v8 = vld [vmem:[%s10427_s25 + $0xad8] sm:$0xff] }
 0x338   : > { %v695_v9 = vld [vmem:[%s10427_s25 + $0xaf8] sm:$0xff]  ;;  %v9054_v11 = vcombine.high %v690_v7, %v694_v32  ;;  %v9053_v24 = vcombine.low %v690_v7, %v694_v32 }
 0x339   : > { %v9056_v12 = vcombine.high %v691_v8, %v695_v9  ;;  %v9055_v60 = vcombine.low %v691_v8, %v695_v9 }
 0x33a   : > { %7803 = vmatpush1.bf16.msra.mxu0 %v8997_v14  ;;  %8172 = vmatpush1.bf16.msra.mxu1 %v8999_v15  ;;  %v698_v14 = vld [vmem:[%s10427_s25 + $0xb10] sm:$0xff] }
 0x33b   : > { %7804 = vmatprep.subr.bf16.mxu0 %v9006_v18  ;;  %8173 = vmatprep.subr.bf16.mxu1 %v9008_v19  ;;  %v702_v15 = vld [vmem:[%s10427_s25 + $0xb30] sm:$0xff]  ;;  %v699_v18 = vld [vmem:[%s10427_s25 + $0xb18] sm:$0xff] }
 0x33c   : > { %v703_v19 = vld [vmem:[%s10427_s25 + $0xb38] sm:$0xff]  ;;  %v9062_v27 = vcombine.high %v698_v14, %v702_v15  ;;  %v9061_v33 = vcombine.low %v698_v14, %v702_v15 }
 0x33d   : > { %v9064_v29 = vcombine.high %v699_v18, %v703_v19  ;;  %v9063_v34 = vcombine.low %v699_v18, %v703_v19 }
 0x33e   : > { %7805 = vmatpush1.bf16.msra.mxu0 %v9005_v13  ;;  %8174 = vmatpush1.bf16.msra.mxu1 %v9007_v30  ;;  %v706_v13 = vld [vmem:[%s10427_s25 + $0xb50] sm:$0xff] }
 0x33f   : > { %7806 = vmatprep.subr.bf16.mxu0 %v9014_v50  ;;  %8175 = vmatprep.subr.bf16.mxu1 %v9016_v16  ;;  %v710_v30 = vld [vmem:[%s10427_s25 + $0xb70] sm:$0xff]  ;;  %v707_v50 = vld [vmem:[%s10427_s25 + $0xb58] sm:$0xff] }
 0x340   : > { %v711_v16 = vld [vmem:[%s10427_s25 + $0xb78] sm:$0xff]  ;;  %v9070_v35 = vcombine.high %v706_v13, %v710_v30  ;;  %v9069_v42 = vcombine.low %v706_v13, %v710_v30  ;;  %v1434_v13 = vlaneseq }
 0x341   : > { %v9072_v36 = vcombine.high %v707_v50, %v711_v16  ;;  %v9071_v43 = vcombine.low %v707_v50, %v711_v16 }
 0x342   : > { %7807 = vmatpush1.bf16.msra.mxu0 %v9013_v38  ;;  %8176 = vmatpush1.bf16.msra.mxu1 %v9015_v22  ;;  %v714_v38 = vld [vmem:[%s10427_s25 + $0xb90] sm:$0xff] }
 0x343   : > { %7808 = vmatprep.subr.bf16.mxu0 %v9022_v39  ;;  %8177 = vmatprep.subr.bf16.mxu1 %v9024_v41  ;;  %v718_v22 = vld [vmem:[%s10427_s25 + $0xbb0] sm:$0xff]  ;;  %v715_v39 = vld [vmem:[%s10427_s25 + $0xb98] sm:$0xff] }
 0x344   : > { %v719_v41 = vld [vmem:[%s10427_s25 + $0xbb8] sm:$0xff]  ;;  %v9078_v44 = vcombine.high %v714_v38, %v718_v22  ;;  %v9077_v52 = vcombine.low %v714_v38, %v718_v22  ;;  %v11363_v38 = vshrl.u32 %v1434_v13, 7 }
 0x345   : > { %v9080_v26 = vcombine.high %v715_v39, %v719_v41  ;;  %v9079_v53 = vcombine.low %v715_v39, %v719_v41 }
 0x346   : > { %7809 = vmatpush1.bf16.msra.mxu0 %v9021_v45  ;;  %8178 = vmatpush1.bf16.msra.mxu1 %v9023_v48  ;;  %v722_v45 = vld [vmem:[%s10427_s25 + $0xbd0] sm:$0xff] }
 0x347   : > { %7810 = vmatprep.subr.bf16.mxu0 %v9030_v49  ;;  %8179 = vmatprep.subr.bf16.mxu1 %v9032_v51  ;;  %v726_v48 = vld [vmem:[%s10427_s25 + $0xbf0] sm:$0xff]  ;;  %v723_v49 = vld [vmem:[%s10427_s25 + $0xbd8] sm:$0xff] }
 0x348   : > { %v727_v51 = vld [vmem:[%s10427_s25 + $0xbf8] sm:$0xff]  ;;  %v9086_v55 = vcombine.high %v722_v45, %v726_v48  ;;  %v9085_v23 = vcombine.low %v722_v45, %v726_v48 }
 0x349   : > { %v9088_v20 = vcombine.high %v723_v49, %v727_v51  ;;  %v9087_v63 = vcombine.low %v723_v49, %v727_v51  ;;  %v775_v45 = vld [vmem:[%s10427_s25 + $0xd78] sm:$0xff]  ;;  %v1432_v49 = vld [vmem:[%s10435_s7] sm:$0xff]  ;;  %v1444_v51 = vsub.s32 2, %v11363_v38 }
 0x34a   : > { %7811 = vmatpush1.bf16.msra.mxu0 %v9029_v57  ;;  %8180 = vmatpush1.bf16.msra.mxu1 %v9031_v61  ;;  %v730_v57 = vld [vmem:[%s10427_s25 + $0xc10] sm:$0xff] }
 0x34b   : > { %7812 = vmatprep.subr.bf16.mxu0 %v9038_v62  ;;  %8181 = vmatprep.subr.bf16.mxu1 %v9040_v58  ;;  %v734_v61 = vld [vmem:[%s10427_s25 + $0xc30] sm:$0xff]  ;;  %v731_v62 = vld [vmem:[%s10427_s25 + $0xc18] sm:$0xff] }
 0x34c   : > { %v735_v58 = vld [vmem:[%s10427_s25 + $0xc38] sm:$0xff]  ;;  %v9094_v0 = vcombine.high %v730_v57, %v734_v61  ;;  %v9093_v7 = vcombine.low %v730_v57, %v734_v61  ;;  %v778_v61 = vld [vmem:[%s10427_s25 + $0xd90] sm:$0xff] }
 0x34d   : > { %v9096_v1 = vcombine.high %v731_v62, %v735_v58  ;;  %v9095_v32 = vcombine.low %v731_v62, %v735_v58  ;;  %v782_v62 = vld [vmem:[%s10427_s25 + $0xdb0] sm:$0xff] }
 0x34e   : > { %7813 = vmatpush1.bf16.msra.mxu0 %v9037_v3  ;;  %8182 = vmatpush1.bf16.msra.mxu1 %v9039_v4  ;;  %v738_v3 = vld [vmem:[%s10427_s25 + $0xc50] sm:$0xff] }
 0x34f   : > { %7814 = vmatprep.subr.bf16.mxu0 %v9046_v5  ;;  %8183 = vmatprep.subr.bf16.mxu1 %v9048_v6  ;;  %v742_v4 = vld [vmem:[%s10427_s25 + $0xc70] sm:$0xff]  ;;  %v739_v5 = vld [vmem:[%s10427_s25 + $0xc58] sm:$0xff] }
 0x350   : > { %v743_v6 = vld [vmem:[%s10427_s25 + $0xc78] sm:$0xff]  ;;  %v9102_v8 = vcombine.high %v738_v3, %v742_v4  ;;  %v9101_v14 = vcombine.low %v738_v3, %v742_v4 }
 0x351   : > { %v9104_v9 = vcombine.high %v739_v5, %v743_v6  ;;  %v9103_v15 = vcombine.low %v739_v5, %v743_v6 }
 0x352   : > { %7815 = vmatpush1.bf16.msra.mxu0 %v9045_v10  ;;  %8184 = vmatpush1.bf16.msra.mxu1 %v9047_v25  ;;  %v746_v10 = vld [vmem:[%s10427_s25 + $0xc90] sm:$0xff] }
 0x353   : > { %7816 = vmatprep.subr.bf16.mxu0 %v9054_v11  ;;  %8185 = vmatprep.subr.bf16.mxu1 %v9056_v12  ;;  %v750_v25 = vld [vmem:[%s10427_s25 + $0xcb0] sm:$0xff]  ;;  %v747_v11 = vld [vmem:[%s10427_s25 + $0xc98] sm:$0xff] }
 0x354   : > { %v751_v12 = vld [vmem:[%s10427_s25 + $0xcb8] sm:$0xff]  ;;  %v9110_v18 = vcombine.high %v746_v10, %v750_v25 }
 0x355   : > { %v9112_v19 = vcombine.high %v747_v11, %v751_v12  ;;  %v9111_v30 = vcombine.low %v747_v11, %v751_v12  ;;  %v787_v11 = vld [vmem:[%s10427_s25 + $0xdd8] sm:$0xff] }
 0x356   : > { %7817 = vmatpush1.bf16.msra.mxu0 %v9053_v24  ;;  %8186 = vmatpush1.bf16.msra.mxu1 %v9055_v60  ;;  %v754_v24 = vld [vmem:[%s10427_s25 + $0xcd0] sm:$0xff]  ;;  %v791_v12 = vld [vmem:[%s10427_s25 + $0xdf8] sm:$0xff] }
 0x357   : > { %7818 = vmatprep.subr.bf16.mxu0 %v9062_v27  ;;  %8187 = vmatprep.subr.bf16.mxu1 %v9064_v29  ;;  %v758_v60 = vld [vmem:[%s10427_s25 + $0xcf0] sm:$0xff]  ;;  %v755_v27 = vld [vmem:[%s10427_s25 + $0xcd8] sm:$0xff] }
 0x358   : > { %v759_v29 = vld [vmem:[%s10427_s25 + $0xcf8] sm:$0xff]  ;;  %v9118_v50 = vcombine.high %v754_v24, %v758_v60 }
 0x359   : > { %v9120_v16 = vcombine.high %v755_v27, %v759_v29  ;;  %v9119_v22 = vcombine.low %v755_v27, %v759_v29 }
 0x35a   : > { %7819 = vmatpush1.bf16.msra.mxu0 %v9061_v33  ;;  %8188 = vmatpush1.bf16.msra.mxu1 %v9063_v34  ;;  %v762_v33 = vld [vmem:[%s10427_s25 + $0xd10] sm:$0xff] }
 0x35b   : > { %7820 = vmatprep.subr.bf16.mxu0 %v9070_v35  ;;  %8189 = vmatprep.subr.bf16.mxu1 %v9072_v36  ;;  %v766_v34 = vld [vmem:[%s10427_s25 + $0xd30] sm:$0xff]  ;;  %v763_v35 = vld [vmem:[%s10427_s25 + $0xd18] sm:$0xff] }
 0x35c   : > { %v767_v36 = vld [vmem:[%s10427_s25 + $0xd38] sm:$0xff]  ;;  %v9126_v39 = vcombine.high %v762_v33, %v766_v34  ;;  %v9125_v48 = vcombine.low %v762_v33, %v766_v34 }
 0x35d   : > { %v9128_v41 = vcombine.high %v763_v35, %v767_v36 }
 0x35e   : > { %7821 = vmatpush1.bf16.msra.mxu0 %v9069_v42  ;;  %8190 = vmatpush1.bf16.msra.mxu1 %v9071_v43  ;;  %v770_v42 = vld [vmem:[%s10427_s25 + $0xd50] sm:$0xff] }
 0x35f   : > { %7822 = vmatprep.subr.bf16.mxu0 %v9078_v44  ;;  %8191 = vmatprep.subr.bf16.mxu1 %v9080_v26  ;;  %v774_v43 = vld [vmem:[%s10427_s25 + $0xd70] sm:$0xff]  ;;  %v1436_v44 = vsub.s32 0, %v11363_v38  ;;  %v771_v26 = vld [vmem:[%s10427_s25 + $0xd58] sm:$0xff] }
 0x360   : > { %v9136_v57 = vcombine.high %v771_v26, %v775_v45  ;;  %v9133_v4 = vcombine.low %v770_v42, %v774_v43  ;;  %v9135_v6 = vcombine.low %v771_v26, %v775_v45  ;;  %v795_v45 = vld [vmem:[%s10427_s25 + $0xe18] sm:$0xff] }
 0x361   : > { %v1437_v58 = vrot.slane %v1432_v49, %v1436_v44 }
 0x362   : > { %7823 = vmatpush1.bf16.msra.mxu0 %v9077_v52  ;;  %8192 = vmatpush1.bf16.msra.mxu1 %v9079_v53  ;;  %v1440_v52 = vsub.s32 1, %v11363_v38  ;;  %v9127_v53 = vcombine.low %v763_v35, %v767_v36 }
 0x363   : > { %7824 = vmatprep.subr.bf16.mxu0 %v9086_v55  ;;  %8193 = vmatprep.subr.bf16.mxu1 %v9088_v20  ;;  %v1448_v55 = vsub.s32 3, %v11363_v38  ;;  %v9134_v20 = vcombine.high %v770_v42, %v774_v43 }
 0x364   : > { %v1441_v3 = vrot.slane %v1432_v49, %v1440_v52 }
 0x365   : > { %v1449_v5 = vrot.slane %v1432_v49, %v1448_v55 }
 0x366   : > { %7825 = vmatpush1.bf16.msra.mxu0 %v9085_v23  ;;  %8194 = vmatpush1.bf16.msra.mxu1 %v9087_v63  ;;  %v8475_v23 = vld [vmem:[%s10448_s24] sm:$0xff] }
 0x367   : > { %7835 = vmatprep.subr.bf16.mxu0 %v9094_v0  ;;  %8204 = vmatprep.subr.bf16.mxu1 %v9096_v1  ;;  %v779_v63 = vld [vmem:[%s10427_s25 + $0xd98] sm:$0xff]  ;;  %v1445_v1 = vrot.slane %v1432_v49, %v1444_v51 }
 0x368   : > { %v783_v0 = vld [vmem:[%s10427_s25 + $0xdb8] sm:$0xff] }
 0x369   : > { %7827 = vmatmul.mubr.bf16.vlgmr.msra.gmra.mrb[4].mxu0 %v10697_v37  ;;  %8196 = vmatmul.mubr.bf16.vlgmr.msra.gmra.mrb[4].mxu1 %v10697_v37  ;;  %v9109_v37 = vcombine.low %v746_v10, %v750_v25  ;;  %v8480_v10 = vrot.slane %v8475_v23, %v1436_v44  ;;  %v9144_v25 = vcombine.high %v779_v63, %v783_v0 }
 0x36a   : > { %7836 = vmatpush1.bf16.msra.mxu0 %v9093_v7  ;;  %8205 = vmatpush1.bf16.msra.mxu1 %v9095_v32  ;;  %v9142_v7 = vcombine.high %v778_v61, %v782_v62  ;;  %v786_v32 = vld [vmem:[%s10427_s25 + $0xdd0] sm:$0xff]  ;;  %v8492_v44 = vrot.slane %v8475_v23, %v1448_v55 }
 0x36b   : > { %7837 = vmatprep.subr.bf16.mxu0 %v9102_v8  ;;  %8206 = vmatprep.subr.bf16.mxu1 %v9104_v9  ;;  %v790_v8 = vld [vmem:[%s10427_s25 + $0xdf0] sm:$0xff] }
 0x36c   : > { %7867 = vmatprep.mubr.bf16.mxu0 %v10710_v46  ;;  %8236 = vmatprep.mubr.bf16.mxu1 %v10710_v46  ;;  %v9117_v46 = vcombine.low %v754_v24, %v758_v60  ;;  %v8484_v24 = vrot.slane %v8475_v23, %v1440_v52  ;;  %v9141_v60 = vcombine.low %v778_v61, %v782_v62 }
 0x36e   : > { %7838 = vmatpush1.bf16.msra.mxu0 %v9101_v14  ;;  %8207 = vmatpush1.bf16.msra.mxu1 %v9103_v15 }
 0x36f   : > { %7839 = vmatprep.subr.bf16.mxu0 %v9110_v18  ;;  %8208 = vmatprep.subr.bf16.mxu1 %v9112_v19  ;;  %v8488_v18 = vrot.slane %v8475_v23, %v1444_v51  ;;  %v806_v23 = vld [vmem:[%s10427_s25 + $0xe70] sm:$0xff] }
 0x372   : > { %7840 = vmatpush1.bf16.msra.mxu0 %v9109_v37  ;;  %8209 = vmatpush1.bf16.msra.mxu1 %v9111_v30  ;;  %v9143_v30 = vcombine.low %v779_v63, %v783_v0 }
 0x373   : > { %7841 = vmatprep.subr.bf16.mxu0 %v9118_v50  ;;  %8210 = vmatprep.subr.bf16.mxu1 %v9120_v16  ;;  %v9150_v50 = vcombine.high %v786_v32, %v790_v8  ;;  %v794_v16 = vld [vmem:[%s10427_s25 + $0xe10] sm:$0xff] }
 0x376   : > { %7842 = vmatpush1.bf16.msra.mxu0 %v9117_v46  ;;  %8211 = vmatpush1.bf16.msra.mxu1 %v9119_v22  ;;  %v9152_v46 = vcombine.high %v787_v11, %v791_v12  ;;  %v798_v22 = vld [vmem:[%s10427_s25 + $0xe30] sm:$0xff] }
 0x377   : > { %7843 = vmatprep.subr.bf16.mxu0 %v9126_v39  ;;  %8212 = vmatprep.subr.bf16.mxu1 %v9128_v41  ;;  %v9158_v61 = vcombine.high %v794_v16, %v798_v22 }
 0x37a   : > { %7844 = vmatpush1.bf16.msra.mxu0 %v9125_v48  ;;  %8213 = vmatpush1.bf16.msra.mxu1 %v9127_v53  ;;  %v799_v48 = vld [vmem:[%s10427_s25 + $0xe38] sm:$0xff]  ;;  %v9149_v53 = vcombine.low %v786_v32, %v790_v8 }
 0x37b   : > { %7845 = vmatprep.subr.bf16.mxu0 %v9134_v20  ;;  %8214 = vmatprep.subr.bf16.mxu1 %v9136_v57  ;;  %v9151_v57 = vcombine.low %v787_v11, %v791_v12  ;;  %v9160_v55 = vcombine.high %v795_v45, %v799_v48  ;;  %v815_v11 = vld [vmem:[%s10427_s25 + $0xeb8] sm:$0xff] }
 0x37c   : > { %v7336_v9 = vpop.f32.mrb[0].mxu0  ;;  %v7705_v15 = vpop.f32.mrb[0].mxu1 }
 0x37d   : > { %v9798_v14 = vadd.f32 %v7336_v9, %v1437_v58  ;;  %v7338_v19 = vpop.f32.mrb[1].mxu0  ;;  %v9800_v27 = vadd.f32 %v7705_v15, %v1445_v1  ;;  %v7707_v13 = vpop.f32.mrb[1].mxu1  ;;  %v802_v58 = vld [vmem:[%s10427_s25 + $0xe50] sm:$0xff]  ;;  %v803_v1 = vld [vmem:[%s10427_s25 + $0xe58] sm:$0xff] }
 0x37e   : > { %v9799_v29 = vadd.f32 %v7338_v19, %v1441_v3  ;;  %v7340_v37 = vpop.f32.mrb[2].mxu0  ;;  %7846 = vmatpush1.bf16.msra.mxu0 %v9133_v4  ;;  %v9801_v34 = vadd.f32 %v7707_v13, %v1449_v5  ;;  %v7709_v35 = vpop.f32.mrb[2].mxu1  ;;  %8215 = vmatpush1.bf16.msra.mxu1 %v9135_v6  ;;  %v807_v3 = vld [vmem:[%s10427_s25 + $0xe78] sm:$0xff]  ;;  %v9157_v4 = vcombine.low %v794_v16, %v798_v22  ;;  %v810_v9 = vld [vmem:[%s10427_s25 + $0xe90] sm:$0xff] }
 0x37f   : > { %vm8450_vm1 = vcmp.gt.f32.partialorder %v9798_v14, 0.0  ;;  %v8458_v33 = vmul.f32 0.2, %v9798_v14  ;;  %v7341_v36 = vpop.f32.mrb[3].mxu0  ;;  %7847 = vmatprep.subr.bf16.mxu0 %v9142_v7  ;;  %vm8452_vm2 = vcmp.gt.f32.partialorder %v9800_v27, 0.0  ;;  %8216 = vmatprep.subr.bf16.mxu1 %v9144_v25  ;;  %v7710_v26 = vpop.f32.mrb[3].mxu1  ;;  %v9159_v5 = vcombine.low %v795_v45, %v799_v48 }
 0x380   : > { %v8460_v39 = vmul.f32 0.2, %v9800_v27  ;;  %vm8451_vm3 = vcmp.gt.f32.partialorder %v9799_v29, 0.0  ;;  %v8459_v41 = vmul.f32 0.2, %v9799_v29  ;;  %vm8453_vm4 = vcmp.gt.f32.partialorder %v9801_v34, 0.0 }
 0x381   : > { %v8466_v42 = vsel %vm8450_vm1, %v9798_v14, %v8458_v33  ;;  %v8461_v43 = vmul.f32 0.2, %v9801_v34  ;;  %v9166_v7 = vcombine.high %v802_v58, %v806_v23  ;;  %v9168_v8 = vcombine.high %v803_v1, %v807_v3  ;;  %v811_v25 = vld [vmem:[%s10427_s25 + $0xe98] sm:$0xff]  ;;  %v826_v16 = vld [vmem:[%s10427_s25 + $0xf10] sm:$0xff] }
 0x382   : > { %v8517_v49 = vmul.f32 %v8480_v10, %v8466_v42  ;;  %v8468_v51 = vsel %vm8452_vm2, %v9800_v27, %v8460_v39  ;;  %v8467_v52 = vsel %vm8451_vm3, %v9799_v29, %v8459_v41  ;;  %7848 = vmatpush1.bf16.msra.mxu0 %v9141_v60  ;;  %8217 = vmatpush1.bf16.msra.mxu1 %v9143_v30  ;;  %v814_v10 = vld [vmem:[%s10427_s25 + $0xeb0] sm:$0xff]  ;;  %v819_v27 = vld [vmem:[%s10427_s25 + $0xed8] sm:$0xff] }
 0x383   : > { %v8518_v20 = vmul.f32 %v8484_v24, %v8467_v52  ;;  %7849 = vmatprep.subr.bf16.mxu0 %v9150_v50  ;;  %v8469_v62 = vsel %vm8453_vm4, %v9801_v34, %v8461_v43  ;;  %8218 = vmatprep.subr.bf16.mxu1 %v9152_v46  ;;  %v8519_v63 = vmul.f32 %v8488_v18, %v8468_v51  ;;  %v818_v24 = vld [vmem:[%s10427_s25 + $0xed0] sm:$0xff]  ;;  %v823_v29 = vld [vmem:[%s10427_s25 + $0xef8] sm:$0xff] }
 0x384   : > { %v8520_v6 = vmul.f32 %v8492_v44, %v8469_v62  ;;  %v9165_v14 = vcombine.low %v802_v58, %v806_v23  ;;  %v9167_v15 = vcombine.low %v803_v1, %v807_v3  ;;  %v9174_v18 = vcombine.high %v810_v9, %v814_v10  ;;  %v822_v60 = vld [vmem:[%s10427_s25 + $0xef0] sm:$0xff]  ;;  %v827_v34 = vld [vmem:[%s10427_s25 + $0xf18] sm:$0xff] }
 0x385   : > { %v8525_v0 = vadd.f32 %v8518_v20, %v8517_v49  ;;  %v9176_v19 = vcombine.high %v811_v25, %v815_v11  ;;  %v9173_v13 = vcombine.low %v810_v9, %v814_v10  ;;  %v9175_v37 = vcombine.low %v811_v25, %v815_v11  ;;  %v830_v33 = vld [vmem:[%s10427_s25 + $0xf30] sm:$0xff]  ;;  %v831_v35 = vld [vmem:[%s10427_s25 + $0xf38] sm:$0xff] }
 0x386   : > { %7850 = vmatpush1.bf16.msra.mxu0 %v9149_v53  ;;  %8219 = vmatpush1.bf16.msra.mxu1 %v9151_v57  ;;  %v9182_v30 = vcombine.high %v818_v24, %v822_v60  ;;  %v9184_v50 = vcombine.high %v819_v27, %v823_v29  ;;  %v9181_v36 = vcombine.low %v818_v24, %v822_v60  ;;  %v834_v41 = vld [vmem:[%s10427_s25 + $0xf50] sm:$0xff]  ;;  %v835_v43 = vld [vmem:[%s10427_s25 + $0xf58] sm:$0xff] }
 0x387   : > { %7851 = vmatprep.subr.bf16.mxu0 %v9158_v61  ;;  %v8526_v32 = vadd.f32 %v8525_v0, %v8519_v63  ;;  %8220 = vmatprep.subr.bf16.mxu1 %v9160_v55  ;;  %v9183_v46 = vcombine.low %v819_v27, %v823_v29  ;;  %v9190_v22 = vcombine.high %v826_v16, %v830_v33  ;;  %v838_v42 = vld [vmem:[%s10427_s25 + $0xf70] sm:$0xff]  ;;  %v839_v44 = vld [vmem:[%s10427_s25 + $0xf78] sm:$0xff] }
 0x388   : > { %v9192_v39 = vcombine.high %v827_v34, %v831_v35  ;;  %v9189_v26 = vcombine.low %v826_v16, %v830_v33  ;;  %v9191_v45 = vcombine.low %v827_v34, %v831_v35  ;;  %v9198_v48 = vcombine.high %v834_v41, %v838_v42  ;;  %v842_v51 = vld [vmem:[%s10427_s25 + $0xf90] sm:$0xff]  ;;  %v843_v53 = vld [vmem:[%s10427_s25 + $0xf98] sm:$0xff] }
 0x389   : > { %v11396_v12 = vadd.f32 %v8526_v32, %v8520_v6  ;;  %v9200_v49 = vcombine.high %v835_v43, %v839_v44  ;;  %v846_v52 = vld [vmem:[%s10427_s25 + $0xfb0] sm:$0xff]  ;;  %v847_v20 = vld [vmem:[%s10427_s25 + $0xfb8] sm:$0xff]  ;;  %v9197_v57 = vcombine.low %v834_v41, %v838_v42  ;;  %v9199_v61 = vcombine.low %v835_v43, %v839_v44 }
 0x38a   : > { %7852 = vmatpush1.bf16.msra.mxu0 %v9157_v4  ;;  %8221 = vmatpush1.bf16.msra.mxu1 %v9159_v5  ;;  %v9206_v62 = vcombine.high %v842_v51, %v846_v52  ;;  %v9208_v55 = vcombine.high %v843_v53, %v847_v20  ;;  %v850_v58 = vld [vmem:[%s10427_s25 + $0xfd0] sm:$0xff]  ;;  %v851_v63 = vld [vmem:[%s10427_s25 + $0xfd8] sm:$0xff]  ;;  %v9205_v1 = vcombine.low %v842_v51, %v846_v52 }
 0x38b   : > { %7853 = vmatprep.subr.bf16.mxu0 %v9166_v7  ;;  %8222 = vmatprep.subr.bf16.mxu1 %v9168_v8  ;;  %v854_v23 = vld [vmem:[%s10427_s25 + $0xff0] sm:$0xff]  ;;  %v855_v0 = vld [vmem:[%s10427_s25 + $0xff8] sm:$0xff]  ;;  %v9207_v3 = vcombine.low %v843_v53, %v847_v20 }
 0x38c   : > { %v9214_v4 = vcombine.high %v850_v58, %v854_v23  ;;  %v9216_v5 = vcombine.high %v851_v63, %v855_v0  ;;  %v858_v6 = vld [vmem:[%s10427_s25 + $0x1010] sm:$0xff]  ;;  %v859_v32 = vld [vmem:[%s10427_s25 + $0x1018] sm:$0xff]  ;;  %v9213_v9 = vcombine.low %v850_v58, %v854_v23  ;;  %v9215_v10 = vcombine.low %v851_v63, %v855_v0 }
 0x38d   : > { %v862_v7 = vld [vmem:[%s10427_s25 + $0x1030] sm:$0xff]  ;;  %v863_v8 = vld [vmem:[%s10427_s25 + $0x1038] sm:$0xff] }
 0x38e   : > { %7854 = vmatpush1.bf16.msra.mxu0 %v9165_v14  ;;  %8223 = vmatpush1.bf16.msra.mxu1 %v9167_v15  ;;  %v9222_v25 = vcombine.high %v858_v6, %v862_v7  ;;  %v9224_v11 = vcombine.high %v859_v32, %v863_v8  ;;  %v866_v14 = vld [vmem:[%s10427_s25 + $0x1050] sm:$0xff]  ;;  %v9221_v24 = vcombine.low %v858_v6, %v862_v7 }
 0x38f   : > { %7855 = vmatprep.subr.bf16.mxu0 %v9174_v18  ;;  %8224 = vmatprep.subr.bf16.mxu1 %v9176_v19  ;;  %v870_v15 = vld [vmem:[%s10427_s25 + $0x1070] sm:$0xff]  ;;  %v867_v18 = vld [vmem:[%s10427_s25 + $0x1058] sm:$0xff]  ;;  %v9223_v60 = vcombine.low %v859_v32, %v863_v8 }
 0x390   : > { %v871_v19 = vld [vmem:[%s10427_s25 + $0x1078] sm:$0xff]  ;;  %v9230_v27 = vcombine.high %v866_v14, %v870_v15  ;;  %v9229_v16 = vcombine.low %v866_v14, %v870_v15  ;;  %v890_v44 = vld [vmem:[%s10427_s25 + $0x1110] sm:$0xff] }
 0x391   : > { %v9232_v29 = vcombine.high %v867_v18, %v871_v19  ;;  %v9231_v33 = vcombine.low %v867_v18, %v871_v19  ;;  %v898_v53 = vld [vmem:[%s10427_s25 + $0x1150] sm:$0xff] }
 0x392   : > { %7856 = vmatpush1.bf16.msra.mxu0 %v9173_v13  ;;  %8225 = vmatpush1.bf16.msra.mxu1 %v9175_v37  ;;  %v874_v13 = vld [vmem:[%s10427_s25 + $0x1090] sm:$0xff] }
 0x393   : > { %7857 = vmatprep.subr.bf16.mxu0 %v9182_v30  ;;  %8226 = vmatprep.subr.bf16.mxu1 %v9184_v50  ;;  %v878_v37 = vld [vmem:[%s10427_s25 + $0x10b0] sm:$0xff]  ;;  %v875_v30 = vld [vmem:[%s10427_s25 + $0x1098] sm:$0xff] }
 0x394   : > { %v879_v50 = vld [vmem:[%s10427_s25 + $0x10b8] sm:$0xff]  ;;  %v9238_v34 = vcombine.high %v874_v13, %v878_v37  ;;  %v902_v20 = vld [vmem:[%s10427_s25 + $0x1170] sm:$0xff] }
 0x395   : > { %v9240_v35 = vcombine.high %v875_v30, %v879_v50  ;;  %v9239_v41 = vcombine.low %v875_v30, %v879_v50  ;;  %v9262_v58 = vcombine.high %v898_v53, %v902_v20  ;;  %v906_v63 = vld [vmem:[%s10427_s25 + $0x1190] sm:$0xff] }
 0x396   : > { %7858 = vmatpush1.bf16.msra.mxu0 %v9181_v36  ;;  %8227 = vmatpush1.bf16.msra.mxu1 %v9183_v46  ;;  %v882_v36 = vld [vmem:[%s10427_s25 + $0x10d0] sm:$0xff] }
 0x397   : > { %7859 = vmatprep.subr.bf16.mxu0 %v9190_v22  ;;  %8228 = vmatprep.subr.bf16.mxu1 %v9192_v39  ;;  %v886_v46 = vld [vmem:[%s10427_s25 + $0x10f0] sm:$0xff]  ;;  %v883_v22 = vld [vmem:[%s10427_s25 + $0x10d8] sm:$0xff] }
 0x398   : > { %v887_v39 = vld [vmem:[%s10427_s25 + $0x10f8] sm:$0xff]  ;;  %v9246_v42 = vcombine.high %v882_v36, %v886_v46  ;;  %v910_v0 = vld [vmem:[%s10427_s25 + $0x11b0] sm:$0xff] }
 0x399   : > { %v9248_v43 = vcombine.high %v883_v22, %v887_v39  ;;  %v9270_v6 = vcombine.high %v906_v63, %v910_v0  ;;  %v914_v32 = vld [vmem:[%s10427_s25 + $0x11d0] sm:$0xff] }
 0x39a   : > { %7860 = vmatpush1.bf16.msra.mxu0 %v9189_v26  ;;  %8229 = vmatpush1.bf16.msra.mxu1 %v9191_v45  ;;  %v894_v26 = vld [vmem:[%s10427_s25 + $0x1130] sm:$0xff]  ;;  %v891_v45 = vld [vmem:[%s10427_s25 + $0x1118] sm:$0xff] }
 0x39b   : > { %7861 = vmatprep.subr.bf16.mxu0 %v9198_v48  ;;  %8230 = vmatprep.subr.bf16.mxu1 %v9200_v49  ;;  %v895_v48 = vld [vmem:[%s10427_s25 + $0x1138] sm:$0xff]  ;;  %v9245_v49 = vcombine.low %v882_v36, %v886_v46  ;;  %v9254_v51 = vcombine.high %v890_v44, %v894_v26  ;;  %v918_v8 = vld [vmem:[%s10427_s25 + $0x11f0] sm:$0xff] }
 0x39c   : > { %v9256_v52 = vcombine.high %v891_v45, %v895_v48  ;;  %v9278_v14 = vcombine.high %v914_v32, %v918_v8  ;;  %v922_v18 = vld [vmem:[%s10427_s25 + $0x1210] sm:$0xff] }
 0x39d   : > { %v926_v19 = vld [vmem:[%s10427_s25 + $0x1230] sm:$0xff] }
 0x39e   : > { %7862 = vmatpush1.bf16.msra.mxu0 %v9197_v57  ;;  %8231 = vmatpush1.bf16.msra.mxu1 %v9199_v61  ;;  %v899_v57 = vld [vmem:[%s10427_s25 + $0x1158] sm:$0xff]  ;;  %v930_v30 = vld [vmem:[%s10427_s25 + $0x1250] sm:$0xff] }
 0x39f   : > { %7863 = vmatprep.subr.bf16.mxu0 %v9206_v62  ;;  %8232 = vmatprep.subr.bf16.mxu1 %v9208_v55  ;;  %v903_v61 = vld [vmem:[%s10427_s25 + $0x1178] sm:$0xff]  ;;  %v9253_v62 = vcombine.low %v890_v44, %v894_v26  ;;  %v9255_v55 = vcombine.low %v891_v45, %v895_v48  ;;  %v934_v50 = vld [vmem:[%s10427_s25 + $0x1270] sm:$0xff] }
 0x3a0   : > { %v9264_v23 = vcombine.high %v899_v57, %v903_v61  ;;  %v9294_v36 = vcombine.high %v930_v30, %v934_v50  ;;  %v946_v45 = vld [vmem:[%s10427_s25 + $0x12d0] sm:$0xff] }
 0x3a1   : > { %v950_v48 = vld [vmem:[%s10427_s25 + $0x12f0] sm:$0xff] }
 0x3a2   : > { %7864 = vmatpush1.bf16.msra.mxu0 %v9205_v1  ;;  %8233 = vmatpush1.bf16.msra.mxu1 %v9207_v3  ;;  %v907_v1 = vld [vmem:[%s10427_s25 + $0x1198] sm:$0xff] }
 0x3a3   : > { %7865 = vmatprep.subr.bf16.mxu0 %v9214_v4  ;;  %8234 = vmatprep.subr.bf16.mxu1 %v9216_v5  ;;  %v911_v3 = vld [vmem:[%s10427_s25 + $0x11b8] sm:$0xff]  ;;  %v9261_v4 = vcombine.low %v898_v53, %v902_v20  ;;  %v9263_v5 = vcombine.low %v899_v57, %v903_v61  ;;  %v9310_v53 = vcombine.high %v946_v45, %v950_v48  ;;  %v954_v57 = vld [vmem:[%s10427_s25 + $0x1310] sm:$0xff] }
 0x3a4   : > { %v9272_v7 = vcombine.high %v907_v1, %v911_v3  ;;  %v958_v61 = vld [vmem:[%s10427_s25 + $0x1330] sm:$0xff] }
 0x3a6   : > { %7866 = vmatpush1.bf16.msra.mxu0 %v9213_v9  ;;  %8235 = vmatpush1.bf16.msra.mxu1 %v9215_v10  ;;  %v915_v9 = vld [vmem:[%s10427_s25 + $0x11d8] sm:$0xff] }
 0x3a7   : > { %7876 = vmatprep.subr.bf16.mxu0 %v9222_v25  ;;  %8245 = vmatprep.subr.bf16.mxu1 %v9224_v11  ;;  %v919_v10 = vld [vmem:[%s10427_s25 + $0x11f8] sm:$0xff]  ;;  %v9269_v25 = vcombine.low %v906_v63, %v910_v0  ;;  %v9271_v11 = vcombine.low %v907_v1, %v911_v3  ;;  %v9318_v63 = vcombine.high %v954_v57, %v958_v61  ;;  %v962_v1 = vld [vmem:[%s10427_s25 + $0x1350] sm:$0xff] }
 0x3a8   : > { %v9280_v15 = vcombine.high %v915_v9, %v919_v10  ;;  %v966_v3 = vld [vmem:[%s10427_s25 + $0x1370] sm:$0xff] }
 0x3a9   : > { %7868 = vmatmul.mubr.bf16.vlgmr.msra.gmra.mrb[4].mxu0 %v10778_v56  ;;  %8237 = vmatmul.mubr.bf16.vlgmr.msra.gmra.mrb[4].mxu1 %v10778_v56  ;;  %v9237_v56 = vcombine.low %v874_v13, %v878_v37  ;;  %v9286_v13 = vcombine.high %v922_v18, %v926_v19 }
 0x3aa   : > { %7877 = vmatpush1.bf16.msra.mxu0 %v9221_v24  ;;  %8246 = vmatpush1.bf16.msra.mxu1 %v9223_v60  ;;  %v923_v24 = vld [vmem:[%s10427_s25 + $0x1218] sm:$0xff] }
 0x3ab   : > { %7878 = vmatprep.subr.bf16.mxu0 %v9230_v27  ;;  %8247 = vmatprep.subr.bf16.mxu1 %v9232_v29  ;;  %v927_v60 = vld [vmem:[%s10427_s25 + $0x1238] sm:$0xff]  ;;  %v9277_v27 = vcombine.low %v914_v32, %v918_v8  ;;  %v9279_v29 = vcombine.low %v915_v9, %v919_v10  ;;  %v9326_v32 = vcombine.high %v962_v1, %v966_v3  ;;  %v970_v9 = vld [vmem:[%s10427_s25 + $0x1390] sm:$0xff] }
 0x3ac   : > { %7908 = vmatprep.mubr.bf16.mxu0 %v10791_v2  ;;  %8277 = vmatprep.mubr.bf16.mxu1 %v10791_v2  ;;  %v9247_v2 = vcombine.low %v883_v22, %v887_v39  ;;  %v9288_v37 = vcombine.high %v923_v24, %v927_v60  ;;  %v938_v22 = vld [vmem:[%s10427_s25 + $0x1290] sm:$0xff] }
 0x3ad   : > { %v942_v39 = vld [vmem:[%s10427_s25 + $0x12b0] sm:$0xff] }
 0x3ae   : > { %7879 = vmatpush1.bf16.msra.mxu0 %v9229_v16  ;;  %8248 = vmatpush1.bf16.msra.mxu1 %v9231_v33  ;;  %v931_v16 = vld [vmem:[%s10427_s25 + $0x1258] sm:$0xff]  ;;  %v9302_v44 = vcombine.high %v938_v22, %v942_v39  ;;  %v974_v10 = vld [vmem:[%s10427_s25 + $0x13b0] sm:$0xff] }
 0x3af   : > { %7880 = vmatprep.subr.bf16.mxu0 %v9238_v34  ;;  %8249 = vmatprep.subr.bf16.mxu1 %v9240_v35  ;;  %v935_v33 = vld [vmem:[%s10427_s25 + $0x1278] sm:$0xff]  ;;  %v9285_v34 = vcombine.low %v922_v18, %v926_v19  ;;  %v9287_v35 = vcombine.low %v923_v24, %v927_v60  ;;  %v9334_v18 = vcombine.high %v970_v9, %v974_v10  ;;  %v978_v24 = vld [vmem:[%s10427_s25 + $0x13d0] sm:$0xff] }
 0x3b0   : > { %v9296_v46 = vcombine.high %v931_v16, %v935_v33  ;;  %v982_v60 = vld [vmem:[%s10427_s25 + $0x13f0] sm:$0xff] }
 0x3b2   : > { %7881 = vmatpush1.bf16.msra.mxu0 %v9237_v56  ;;  %8250 = vmatpush1.bf16.msra.mxu1 %v9239_v41  ;;  %v939_v56 = vld [vmem:[%s10427_s25 + $0x1298] sm:$0xff] }
 0x3b3   : > { %7882 = vmatprep.subr.bf16.mxu0 %v9246_v42  ;;  %8251 = vmatprep.subr.bf16.mxu1 %v9248_v43  ;;  %v943_v41 = vld [vmem:[%s10427_s25 + $0x12b8] sm:$0xff]  ;;  %v9293_v42 = vcombine.low %v930_v30, %v934_v50  ;;  %v9295_v43 = vcombine.low %v931_v16, %v935_v33  ;;  %v9342_v30 = vcombine.high %v978_v24, %v982_v60  ;;  %v986_v16 = vld [vmem:[%s10427_s25 + $0x1410] sm:$0xff] }
 0x3b4   : > { %v9304_v26 = vcombine.high %v939_v56, %v943_v41  ;;  %v990_v33 = vld [vmem:[%s10427_s25 + $0x1430] sm:$0xff] }
 0x3b6   : > { %7883 = vmatpush1.bf16.msra.mxu0 %v9245_v49  ;;  %8252 = vmatpush1.bf16.msra.mxu1 %v9247_v2  ;;  %v947_v49 = vld [vmem:[%s10427_s25 + $0x12d8] sm:$0xff] }
 0x3b7   : > { %7884 = vmatprep.subr.bf16.mxu0 %v9254_v51  ;;  %8253 = vmatprep.subr.bf16.mxu1 %v9256_v52  ;;  %v951_v2 = vld [vmem:[%s10427_s25 + $0x12f8] sm:$0xff]  ;;  %v9301_v51 = vcombine.low %v938_v22, %v942_v39  ;;  %v9303_v52 = vcombine.low %v939_v56, %v943_v41  ;;  %v9350_v22 = vcombine.high %v986_v16, %v990_v33  ;;  %v994_v56 = vld [vmem:[%s10427_s25 + $0x1450] sm:$0xff] }
 0x3b8   : > { %v9312_v20 = vcombine.high %v947_v49, %v951_v2  ;;  %v998_v41 = vld [vmem:[%s10427_s25 + $0x1470] sm:$0xff] }
 0x3ba   : > { %7885 = vmatpush1.bf16.msra.mxu0 %v9253_v62  ;;  %8254 = vmatpush1.bf16.msra.mxu1 %v9255_v55  ;;  %v955_v62 = vld [vmem:[%s10427_s25 + $0x1318] sm:$0xff] }
 0x3bb   : > { %7886 = vmatprep.subr.bf16.mxu0 %v9262_v58  ;;  %8255 = vmatprep.subr.bf16.mxu1 %v9264_v23  ;;  %v959_v55 = vld [vmem:[%s10427_s25 + $0x1338] sm:$0xff]  ;;  %v9309_v58 = vcombine.low %v946_v45, %v950_v48  ;;  %v9311_v23 = vcombine.low %v947_v49, %v951_v2  ;;  %v9358_v45 = vcombine.high %v994_v56, %v998_v41  ;;  %v1002_v49 = vld [vmem:[%s10427_s25 + $0x1490] sm:$0xff] }
 0x3bc   : > { %v9320_v0 = vcombine.high %v955_v62, %v959_v55  ;;  %v1006_v2 = vld [vmem:[%s10427_s25 + $0x14b0] sm:$0xff] }
 0x3be   : > { %7887 = vmatpush1.bf16.msra.mxu0 %v9261_v4  ;;  %8256 = vmatpush1.bf16.msra.mxu1 %v9263_v5  ;;  %v963_v4 = vld [vmem:[%s10427_s25 + $0x1358] sm:$0xff] }
 0x3bf   : > { %7888 = vmatprep.subr.bf16.mxu0 %v9270_v6  ;;  %8257 = vmatprep.subr.bf16.mxu1 %v9272_v7  ;;  %v967_v5 = vld [vmem:[%s10427_s25 + $0x1378] sm:$0xff]  ;;  %v9317_v6 = vcombine.low %v954_v57, %v958_v61  ;;  %v9319_v7 = vcombine.low %v955_v62, %v959_v55  ;;  %v9366_v57 = vcombine.high %v1002_v49, %v1006_v2  ;;  %v1010_v62 = vld [vmem:[%s10427_s25 + $0x14d0] sm:$0xff] }
 0x3c0   : > { %v9328_v8 = vcombine.high %v963_v4, %v967_v5  ;;  %v1014_v55 = vld [vmem:[%s10427_s25 + $0x14f0] sm:$0xff] }
 0x3c2   : > { %7889 = vmatpush1.bf16.msra.mxu0 %v9269_v25  ;;  %8258 = vmatpush1.bf16.msra.mxu1 %v9271_v11  ;;  %v971_v25 = vld [vmem:[%s10427_s25 + $0x1398] sm:$0xff] }
 0x3c3   : > { %7890 = vmatprep.subr.bf16.mxu0 %v9278_v14  ;;  %8259 = vmatprep.subr.bf16.mxu1 %v9280_v15  ;;  %v975_v11 = vld [vmem:[%s10427_s25 + $0x13b8] sm:$0xff]  ;;  %v9325_v14 = vcombine.low %v962_v1, %v966_v3  ;;  %v9327_v15 = vcombine.low %v963_v4, %v967_v5  ;;  %v1018_v3 = vld [vmem:[%s10427_s25 + $0x1510] sm:$0xff] }
 0x3c4   : > { %v9336_v19 = vcombine.high %v971_v25, %v975_v11  ;;  %v1022_v4 = vld [vmem:[%s10427_s25 + $0x1530] sm:$0xff]  ;;  %v1019_v5 = vld [vmem:[%s10427_s25 + $0x1518] sm:$0xff] }
 0x3c6   : > { %7891 = vmatpush1.bf16.msra.mxu0 %v9277_v27  ;;  %8260 = vmatpush1.bf16.msra.mxu1 %v9279_v29  ;;  %v979_v27 = vld [vmem:[%s10427_s25 + $0x13d8] sm:$0xff] }
 0x3c7   : > { %7892 = vmatprep.subr.bf16.mxu0 %v9286_v13  ;;  %8261 = vmatprep.subr.bf16.mxu1 %v9288_v37  ;;  %v983_v29 = vld [vmem:[%s10427_s25 + $0x13f8] sm:$0xff]  ;;  %v9333_v13 = vcombine.low %v970_v9, %v974_v10  ;;  %v9335_v37 = vcombine.low %v971_v25, %v975_v11  ;;  %v1026_v9 = vld [vmem:[%s10427_s25 + $0x1550] sm:$0xff] }
 0x3c8   : > { %v9344_v50 = vcombine.high %v979_v27, %v983_v29  ;;  %v1030_v10 = vld [vmem:[%s10427_s25 + $0x1570] sm:$0xff]  ;;  %v1027_v25 = vld [vmem:[%s10427_s25 + $0x1558] sm:$0xff] }
 0x3c9   : > { %v1031_v11 = vld [vmem:[%s10427_s25 + $0x1578] sm:$0xff] }
 0x3ca   : > { %7893 = vmatpush1.bf16.msra.mxu0 %v9285_v34  ;;  %8262 = vmatpush1.bf16.msra.mxu1 %v9287_v35  ;;  %v987_v34 = vld [vmem:[%s10427_s25 + $0x1418] sm:$0xff] }
 0x3cb   : > { %7894 = vmatprep.subr.bf16.mxu0 %v9294_v36  ;;  %8263 = vmatprep.subr.bf16.mxu1 %v9296_v46  ;;  %v991_v35 = vld [vmem:[%s10427_s25 + $0x1438] sm:$0xff]  ;;  %v9341_v36 = vcombine.low %v978_v24, %v982_v60  ;;  %v9343_v46 = vcombine.low %v979_v27, %v983_v29  ;;  %v1034_v24 = vld [vmem:[%s10427_s25 + $0x1590] sm:$0xff] }
 0x3cc   : > { %v9352_v39 = vcombine.high %v987_v34, %v991_v35  ;;  %v1038_v60 = vld [vmem:[%s10427_s25 + $0x15b0] sm:$0xff]  ;;  %v1035_v27 = vld [vmem:[%s10427_s25 + $0x1598] sm:$0xff] }
 0x3cd   : > { %v1039_v29 = vld [vmem:[%s10427_s25 + $0x15b8] sm:$0xff] }
 0x3ce   : > { %7895 = vmatpush1.bf16.msra.mxu0 %v9293_v42  ;;  %8264 = vmatpush1.bf16.msra.mxu1 %v9295_v43  ;;  %v995_v42 = vld [vmem:[%s10427_s25 + $0x1458] sm:$0xff] }
 0x3cf   : > { %7896 = vmatprep.subr.bf16.mxu0 %v9302_v44  ;;  %8265 = vmatprep.subr.bf16.mxu1 %v9304_v26  ;;  %v999_v43 = vld [vmem:[%s10427_s25 + $0x1478] sm:$0xff]  ;;  %v9349_v44 = vcombine.low %v986_v16, %v990_v33  ;;  %v9351_v26 = vcombine.low %v987_v34, %v991_v35  ;;  %v1042_v16 = vld [vmem:[%s10427_s25 + $0x15d0] sm:$0xff] }
 0x3d0   : > { %v9360_v48 = vcombine.high %v995_v42, %v999_v43  ;;  %v1046_v33 = vld [vmem:[%s10427_s25 + $0x15f0] sm:$0xff]  ;;  %v1043_v34 = vld [vmem:[%s10427_s25 + $0x15d8] sm:$0xff] }
 0x3d1   : > { %v1047_v35 = vld [vmem:[%s10427_s25 + $0x15f8] sm:$0xff] }
 0x3d2   : > { %7897 = vmatpush1.bf16.msra.mxu0 %v9301_v51  ;;  %8266 = vmatpush1.bf16.msra.mxu1 %v9303_v52  ;;  %v1003_v51 = vld [vmem:[%s10427_s25 + $0x1498] sm:$0xff] }
 0x3d3   : > { %7898 = vmatprep.subr.bf16.mxu0 %v9310_v53  ;;  %8267 = vmatprep.subr.bf16.mxu1 %v9312_v20  ;;  %v1007_v52 = vld [vmem:[%s10427_s25 + $0x14b8] sm:$0xff]  ;;  %v9357_v53 = vcombine.low %v994_v56, %v998_v41  ;;  %v9359_v20 = vcombine.low %v995_v42, %v999_v43  ;;  %v1050_v56 = vld [vmem:[%s10427_s25 + $0x1610] sm:$0xff] }
 0x3d4   : > { %v9368_v61 = vcombine.high %v1003_v51, %v1007_v52  ;;  %v1054_v41 = vld [vmem:[%s10427_s25 + $0x1630] sm:$0xff]  ;;  %v1051_v42 = vld [vmem:[%s10427_s25 + $0x1618] sm:$0xff] }
 0x3d5   : > { %v1055_v43 = vld [vmem:[%s10427_s25 + $0x1638] sm:$0xff] }
 0x3d6   : > { %7899 = vmatpush1.bf16.msra.mxu0 %v9309_v58  ;;  %8268 = vmatpush1.bf16.msra.mxu1 %v9311_v23  ;;  %v1011_v58 = vld [vmem:[%s10427_s25 + $0x14d8] sm:$0xff] }
 0x3d7   : > { %7900 = vmatprep.subr.bf16.mxu0 %v9318_v63  ;;  %8269 = vmatprep.subr.bf16.mxu1 %v9320_v0  ;;  %v1015_v23 = vld [vmem:[%s10427_s25 + $0x14f8] sm:$0xff]  ;;  %v9367_v63 = vcombine.low %v1003_v51, %v1007_v52  ;;  %v9374_v0 = vcombine.high %v1010_v62, %v1014_v55 }
 0x3d8   : > { %v9376_v1 = vcombine.high %v1011_v58, %v1015_v23  ;;  %v1059_v51 = vld [vmem:[%s10427_s25 + $0x1658] sm:$0xff] }
 0x3d9   : > { %v1063_v52 = vld [vmem:[%s10427_s25 + $0x1678] sm:$0xff] }
 0x3da   : > { %7901 = vmatpush1.bf16.msra.mxu0 %v9317_v6  ;;  %8270 = vmatpush1.bf16.msra.mxu1 %v9319_v7  ;;  %v1023_v6 = vld [vmem:[%s10427_s25 + $0x1538] sm:$0xff]  ;;  %v9373_v7 = vcombine.low %v1010_v62, %v1014_v55  ;;  %v1066_v62 = vld [vmem:[%s10427_s25 + $0x1690] sm:$0xff] }
 0x3db   : > { %7902 = vmatprep.subr.bf16.mxu0 %v9326_v32  ;;  %8271 = vmatprep.subr.bf16.mxu1 %v9328_v8  ;;  %v9382_v32 = vcombine.high %v1018_v3, %v1022_v4  ;;  %v9384_v8 = vcombine.high %v1019_v5, %v1023_v6  ;;  %v1070_v55 = vld [vmem:[%s10427_s25 + $0x16b0] sm:$0xff] }
 0x3de   : > { %7903 = vmatpush1.bf16.msra.mxu0 %v9325_v14  ;;  %8272 = vmatpush1.bf16.msra.mxu1 %v9327_v15  ;;  %v9381_v14 = vcombine.low %v1018_v3, %v1022_v4  ;;  %v9383_v15 = vcombine.low %v1019_v5, %v1023_v6  ;;  %v1074_v3 = vld [vmem:[%s10427_s25 + $0x16d0] sm:$0xff]  ;;  %v1075_v5 = vld [vmem:[%s10427_s25 + $0x16d8] sm:$0xff] }
 0x3df   : > { %7904 = vmatprep.subr.bf16.mxu0 %v9334_v18  ;;  %8273 = vmatprep.subr.bf16.mxu1 %v9336_v19  ;;  %v9390_v18 = vcombine.high %v1026_v9, %v1030_v10  ;;  %v9392_v19 = vcombine.high %v1027_v25, %v1031_v11  ;;  %v1078_v4 = vld [vmem:[%s10427_s25 + $0x16f0] sm:$0xff]  ;;  %v1079_v6 = vld [vmem:[%s10427_s25 + $0x16f8] sm:$0xff] }
 0x3e2   : > { %7905 = vmatpush1.bf16.msra.mxu0 %v9333_v13  ;;  %8274 = vmatpush1.bf16.msra.mxu1 %v9335_v37  ;;  %v9389_v13 = vcombine.low %v1026_v9, %v1030_v10  ;;  %v9391_v37 = vcombine.low %v1027_v25, %v1031_v11  ;;  %v1082_v9 = vld [vmem:[%s10427_s25 + $0x1710] sm:$0xff]  ;;  %v1083_v25 = vld [vmem:[%s10427_s25 + $0x1718] sm:$0xff] }
 0x3e3   : > { %7906 = vmatprep.subr.bf16.mxu0 %v9342_v30  ;;  %8275 = vmatprep.subr.bf16.mxu1 %v9344_v50  ;;  %v9398_v30 = vcombine.high %v1034_v24, %v1038_v60  ;;  %v9400_v50 = vcombine.high %v1035_v27, %v1039_v29  ;;  %v1086_v10 = vld [vmem:[%s10427_s25 + $0x1730] sm:$0xff]  ;;  %v1087_v11 = vld [vmem:[%s10427_s25 + $0x1738] sm:$0xff] }
 0x3e6   : > { %7907 = vmatpush1.bf16.msra.mxu0 %v9341_v36  ;;  %8276 = vmatpush1.bf16.msra.mxu1 %v9343_v46  ;;  %v9397_v36 = vcombine.low %v1034_v24, %v1038_v60  ;;  %v9399_v46 = vcombine.low %v1035_v27, %v1039_v29  ;;  %v1090_v24 = vld [vmem:[%s10427_s25 + $0x1750] sm:$0xff]  ;;  %v1091_v27 = vld [vmem:[%s10427_s25 + $0x1758] sm:$0xff] }
 0x3e7   : > { %7917 = vmatprep.subr.bf16.mxu0 %v9350_v22  ;;  %8286 = vmatprep.subr.bf16.mxu1 %v9352_v39  ;;  %v9406_v22 = vcombine.high %v1042_v16, %v1046_v33  ;;  %v9408_v39 = vcombine.high %v1043_v34, %v1047_v35  ;;  %v1094_v60 = vld [vmem:[%s10427_s25 + $0x1770] sm:$0xff]  ;;  %v1095_v29 = vld [vmem:[%s10427_s25 + $0x1778] sm:$0xff] }
 0x3e9   : > { %7909 = vmatmul.mubr.bf16.vlgmr.msra.gmra.mrb[4].mxu0 %v10859_v17  ;;  %8278 = vmatmul.mubr.bf16.vlgmr.msra.gmra.mrb[4].mxu1 %v10859_v17  ;;  %v9365_v17 = vcombine.low %v1002_v49, %v1006_v2  ;;  %v1058_v49 = vld [vmem:[%s10427_s25 + $0x1650] sm:$0xff] }
 0x3ea   : > { %7918 = vmatpush1.bf16.msra.mxu0 %v9349_v44  ;;  %8287 = vmatpush1.bf16.msra.mxu1 %v9351_v26  ;;  %v9405_v44 = vcombine.low %v1042_v16, %v1046_v33  ;;  %v9407_v26 = vcombine.low %v1043_v34, %v1047_v35  ;;  %v1062_v2 = vld [vmem:[%s10427_s25 + $0x1670] sm:$0xff]  ;;  %v1099_v34 = vld [vmem:[%s10427_s25 + $0x1798] sm:$0xff] }
 0x3eb   : > { %7919 = vmatprep.subr.bf16.mxu0 %v9358_v45  ;;  %8288 = vmatprep.subr.bf16.mxu1 %v9360_v48  ;;  %v9414_v45 = vcombine.high %v1050_v56, %v1054_v41  ;;  %v9416_v48 = vcombine.high %v1051_v42, %v1055_v43  ;;  %v1098_v16 = vld [vmem:[%s10427_s25 + $0x1790] sm:$0xff]  ;;  %v1103_v35 = vld [vmem:[%s10427_s25 + $0x17b8] sm:$0xff] }
 0x3ec   : > { %7949 = vmatprep.mubr.bf16.mxu0 %v10872_v28  ;;  %8318 = vmatprep.mubr.bf16.mxu1 %v10872_v28  ;;  %v9375_v28 = vcombine.low %v1011_v58, %v1015_v23  ;;  %v1067_v58 = vld [vmem:[%s10427_s25 + $0x1698] sm:$0xff]  ;;  %v1102_v33 = vld [vmem:[%s10427_s25 + $0x17b0] sm:$0xff] }
 0x3ed   : > { %v1071_v23 = vld [vmem:[%s10427_s25 + $0x16b8] sm:$0xff] }
 0x3ee   : > { %7920 = vmatpush1.bf16.msra.mxu0 %v9357_v53  ;;  %8289 = vmatpush1.bf16.msra.mxu1 %v9359_v20  ;;  %v9413_v53 = vcombine.low %v1050_v56, %v1054_v41  ;;  %v9415_v20 = vcombine.low %v1051_v42, %v1055_v43  ;;  %v1106_v56 = vld [vmem:[%s10427_s25 + $0x17d0] sm:$0xff]  ;;  %v1107_v42 = vld [vmem:[%s10427_s25 + $0x17d8] sm:$0xff] }
 0x3ef   : > { %7921 = vmatprep.subr.bf16.mxu0 %v9366_v57  ;;  %8290 = vmatprep.subr.bf16.mxu1 %v9368_v61  ;;  %v9422_v57 = vcombine.high %v1058_v49, %v1062_v2  ;;  %v9424_v61 = vcombine.high %v1059_v51, %v1063_v52  ;;  %v1110_v41 = vld [vmem:[%s10427_s25 + $0x17f0] sm:$0xff]  ;;  %v1111_v43 = vld [vmem:[%s10427_s25 + $0x17f8] sm:$0xff] }
 0x3f2   : > { %7922 = vmatpush1.bf16.msra.mxu0 %v9365_v17  ;;  %8291 = vmatpush1.bf16.msra.mxu1 %v9367_v63  ;;  %v9421_v17 = vcombine.low %v1058_v49, %v1062_v2  ;;  %v9423_v63 = vcombine.low %v1059_v51, %v1063_v52  ;;  %v1114_v49 = vld [vmem:[%s10427_s25 + $0x1810] sm:$0xff]  ;;  %v1115_v51 = vld [vmem:[%s10427_s25 + $0x1818] sm:$0xff] }
 0x3f3   : > { %7923 = vmatprep.subr.bf16.mxu0 %v9374_v0  ;;  %8292 = vmatprep.subr.bf16.mxu1 %v9376_v1  ;;  %v9430_v0 = vcombine.high %v1066_v62, %v1070_v55  ;;  %v9432_v1 = vcombine.high %v1067_v58, %v1071_v23  ;;  %v1118_v2 = vld [vmem:[%s10427_s25 + $0x1830] sm:$0xff]  ;;  %v1119_v52 = vld [vmem:[%s10427_s25 + $0x1838] sm:$0xff] }
 0x3f6   : > { %7924 = vmatpush1.bf16.msra.mxu0 %v9373_v7  ;;  %8293 = vmatpush1.bf16.msra.mxu1 %v9375_v28  ;;  %v9429_v7 = vcombine.low %v1066_v62, %v1070_v55  ;;  %v9431_v28 = vcombine.low %v1067_v58, %v1071_v23  ;;  %v1122_v62 = vld [vmem:[%s10427_s25 + $0x1850] sm:$0xff]  ;;  %v1123_v58 = vld [vmem:[%s10427_s25 + $0x1858] sm:$0xff] }
 0x3f7   : > { %7925 = vmatprep.subr.bf16.mxu0 %v9382_v32  ;;  %8294 = vmatprep.subr.bf16.mxu1 %v9384_v8  ;;  %v9438_v32 = vcombine.high %v1074_v3, %v1078_v4  ;;  %v9440_v8 = vcombine.high %v1075_v5, %v1079_v6  ;;  %v1126_v55 = vld [vmem:[%s10427_s25 + $0x1870] sm:$0xff]  ;;  %v1127_v23 = vld [vmem:[%s10427_s25 + $0x1878] sm:$0xff] }
 0x3fa   : > { %7926 = vmatpush1.bf16.msra.mxu0 %v9381_v14  ;;  %8295 = vmatpush1.bf16.msra.mxu1 %v9383_v15  ;;  %v9437_v14 = vcombine.low %v1074_v3, %v1078_v4  ;;  %v9439_v15 = vcombine.low %v1075_v5, %v1079_v6  ;;  %v1130_v3 = vld [vmem:[%s10427_s25 + $0x1890] sm:$0xff]  ;;  %v1131_v5 = vld [vmem:[%s10427_s25 + $0x1898] sm:$0xff] }
 0x3fb   : > { %7927 = vmatprep.subr.bf16.mxu0 %v9390_v18  ;;  %8296 = vmatprep.subr.bf16.mxu1 %v9392_v19  ;;  %v9446_v18 = vcombine.high %v1082_v9, %v1086_v10  ;;  %v9448_v19 = vcombine.high %v1083_v25, %v1087_v11  ;;  %v1134_v4 = vld [vmem:[%s10427_s25 + $0x18b0] sm:$0xff]  ;;  %v1135_v6 = vld [vmem:[%s10427_s25 + $0x18b8] sm:$0xff] }
 0x3fe   : > { %7928 = vmatpush1.bf16.msra.mxu0 %v9389_v13  ;;  %8297 = vmatpush1.bf16.msra.mxu1 %v9391_v37  ;;  %v9445_v13 = vcombine.low %v1082_v9, %v1086_v10  ;;  %v9447_v37 = vcombine.low %v1083_v25, %v1087_v11  ;;  %v1138_v9 = vld [vmem:[%s10427_s25 + $0x18d0] sm:$0xff]  ;;  %v1139_v25 = vld [vmem:[%s10427_s25 + $0x18d8] sm:$0xff] }
 0x3ff   : > { %7929 = vmatprep.subr.bf16.mxu0 %v9398_v30  ;;  %8298 = vmatprep.subr.bf16.mxu1 %v9400_v50  ;;  %v9454_v30 = vcombine.high %v1090_v24, %v1094_v60  ;;  %v9456_v50 = vcombine.high %v1091_v27, %v1095_v29  ;;  %v1142_v10 = vld [vmem:[%s10427_s25 + $0x18f0] sm:$0xff]  ;;  %v1143_v11 = vld [vmem:[%s10427_s25 + $0x18f8] sm:$0xff] }
 0x402   : > { %7930 = vmatpush1.bf16.msra.mxu0 %v9397_v36  ;;  %8299 = vmatpush1.bf16.msra.mxu1 %v9399_v46  ;;  %v9453_v36 = vcombine.low %v1090_v24, %v1094_v60  ;;  %v9455_v46 = vcombine.low %v1091_v27, %v1095_v29  ;;  %v1150_v24 = vld [vmem:[%s10427_s25 + $0x1930] sm:$0xff]  ;;  %v1147_v60 = vld [vmem:[%s10427_s25 + $0x1918] sm:$0xff]  ;;  %v9501_v29 = vcombine.low %v1138_v9, %v1142_v10 }
 0x403   : > { %7931 = vmatprep.subr.bf16.mxu0 %v9406_v22  ;;  %8300 = vmatprep.subr.bf16.mxu1 %v9408_v39  ;;  %v9462_v22 = vcombine.high %v1098_v16, %v1102_v33  ;;  %v9464_v39 = vcombine.high %v1099_v34, %v1103_v35  ;;  %v1151_v27 = vld [vmem:[%s10427_s25 + $0x1938] sm:$0xff] }
 0x406   : > { %7932 = vmatpush1.bf16.msra.mxu0 %v9405_v44  ;;  %8301 = vmatpush1.bf16.msra.mxu1 %v9407_v26  ;;  %v9461_v44 = vcombine.low %v1098_v16, %v1102_v33  ;;  %v9463_v26 = vcombine.low %v1099_v34, %v1103_v35  ;;  %v1155_v16 = vld [vmem:[%s10427_s25 + $0x1958] sm:$0xff]  ;;  %v9511_v35 = vcombine.low %v1147_v60, %v1151_v27 }
 0x407   : > { %7933 = vmatprep.subr.bf16.mxu0 %v9414_v45  ;;  %8302 = vmatprep.subr.bf16.mxu1 %v9416_v48  ;;  %v9470_v45 = vcombine.high %v1106_v56, %v1110_v41  ;;  %v9472_v48 = vcombine.high %v1107_v42, %v1111_v43  ;;  %v1159_v33 = vld [vmem:[%s10427_s25 + $0x1978] sm:$0xff] }
 0x40a   : > { %7934 = vmatpush1.bf16.msra.mxu0 %v9413_v53  ;;  %8303 = vmatpush1.bf16.msra.mxu1 %v9415_v20  ;;  %v9469_v53 = vcombine.low %v1106_v56, %v1110_v41  ;;  %v9471_v20 = vcombine.low %v1107_v42, %v1111_v43  ;;  %v1163_v56 = vld [vmem:[%s10427_s25 + $0x1998] sm:$0xff]  ;;  %v9519_v43 = vcombine.low %v1155_v16, %v1159_v33 }
 0x40b   : > { %7935 = vmatprep.subr.bf16.mxu0 %v9422_v57  ;;  %8304 = vmatprep.subr.bf16.mxu1 %v9424_v61  ;;  %v9478_v57 = vcombine.high %v1114_v49, %v1118_v2  ;;  %v9480_v61 = vcombine.high %v1115_v51, %v1119_v52  ;;  %v1167_v41 = vld [vmem:[%s10427_s25 + $0x19b8] sm:$0xff] }
 0x40e   : > { %7936 = vmatpush1.bf16.msra.mxu0 %v9421_v17  ;;  %8305 = vmatpush1.bf16.msra.mxu1 %v9423_v63  ;;  %v9477_v17 = vcombine.low %v1114_v49, %v1118_v2  ;;  %v9479_v63 = vcombine.low %v1115_v51, %v1119_v52  ;;  %v1171_v49 = vld [vmem:[%s10427_s25 + $0x19d8] sm:$0xff]  ;;  %v9527_v52 = vcombine.low %v1163_v56, %v1167_v41 }
 0x40f   : > { %7937 = vmatprep.subr.bf16.mxu0 %v9430_v0  ;;  %8306 = vmatprep.subr.bf16.mxu1 %v9432_v1  ;;  %v9486_v0 = vcombine.high %v1122_v62, %v1126_v55  ;;  %v9488_v1 = vcombine.high %v1123_v58, %v1127_v23  ;;  %v1175_v2 = vld [vmem:[%s10427_s25 + $0x19f8] sm:$0xff] }
 0x412   : > { %7938 = vmatpush1.bf16.msra.mxu0 %v9429_v7  ;;  %8307 = vmatpush1.bf16.msra.mxu1 %v9431_v28  ;;  %v9485_v7 = vcombine.low %v1122_v62, %v1126_v55  ;;  %v9487_v28 = vcombine.low %v1123_v58, %v1127_v23  ;;  %v1179_v62 = vld [vmem:[%s10427_s25 + $0x1a18] sm:$0xff]  ;;  %v9535_v23 = vcombine.low %v1171_v49, %v1175_v2 }
 0x413   : > { %7939 = vmatprep.subr.bf16.mxu0 %v9438_v32  ;;  %8308 = vmatprep.subr.bf16.mxu1 %v9440_v8  ;;  %v9494_v32 = vcombine.high %v1130_v3, %v1134_v4  ;;  %v9496_v8 = vcombine.high %v1131_v5, %v1135_v6  ;;  %v1183_v55 = vld [vmem:[%s10427_s25 + $0x1a38] sm:$0xff] }
 0x416   : > { %7940 = vmatpush1.bf16.msra.mxu0 %v9437_v14  ;;  %8309 = vmatpush1.bf16.msra.mxu1 %v9439_v15  ;;  %v9495_v14 = vcombine.low %v1131_v5, %v1135_v6  ;;  %v9502_v15 = vcombine.high %v1138_v9, %v1142_v10  ;;  %v9543_v6 = vcombine.low %v1179_v62, %v1183_v55  ;;  %v1195_v9 = vld [vmem:[%s10427_s25 + $0x1a98] sm:$0xff] }
 0x417   : > { %7941 = vmatprep.subr.bf16.mxu0 %v9446_v18  ;;  %8310 = vmatprep.subr.bf16.mxu1 %v9448_v19  ;;  %v9504_v18 = vcombine.high %v1139_v25, %v1143_v11  ;;  %v1146_v19 = vld [vmem:[%s10427_s25 + $0x1910] sm:$0xff]  ;;  %v1199_v10 = vld [vmem:[%s10427_s25 + $0x1ab8] sm:$0xff] }
 0x418   : > { %v9509_v34 = vcombine.low %v1146_v19, %v1150_v24 }
 0x41a   : > { %7942 = vmatpush1.bf16.msra.mxu0 %v9445_v13  ;;  %8311 = vmatpush1.bf16.msra.mxu1 %v9447_v37  ;;  %v9510_v13 = vcombine.high %v1146_v19, %v1150_v24  ;;  %v9512_v37 = vcombine.high %v1147_v60, %v1151_v27  ;;  %v1203_v19 = vld [vmem:[%s10427_s25 + $0x1ad8] sm:$0xff]  ;;  %v9559_v27 = vcombine.low %v1195_v9, %v1199_v10 }
 0x41b   : > { %7943 = vmatprep.subr.bf16.mxu0 %v9454_v30  ;;  %8312 = vmatprep.subr.bf16.mxu1 %v9456_v50  ;;  %v1154_v30 = vld [vmem:[%s10427_s25 + $0x1950] sm:$0xff]  ;;  %v1207_v24 = vld [vmem:[%s10427_s25 + $0x1af8] sm:$0xff] }
 0x41c   : > { %v1158_v50 = vld [vmem:[%s10427_s25 + $0x1970] sm:$0xff] }
 0x41d   : > { %v9517_v42 = vcombine.low %v1154_v30, %v1158_v50 }
 0x41e   : > { %7944 = vmatpush1.bf16.msra.mxu0 %v9453_v36  ;;  %8313 = vmatpush1.bf16.msra.mxu1 %v9455_v46  ;;  %v9518_v36 = vcombine.high %v1154_v30, %v1158_v50  ;;  %v9520_v46 = vcombine.high %v1155_v16, %v1159_v33  ;;  %v1211_v30 = vld [vmem:[%s10427_s25 + $0x1b18] sm:$0xff]  ;;  %v9567_v33 = vcombine.low %v1203_v19, %v1207_v24 }
 0x41f   : > { %7945 = vmatprep.subr.bf16.mxu0 %v9462_v22  ;;  %8314 = vmatprep.subr.bf16.mxu1 %v9464_v39  ;;  %v1162_v22 = vld [vmem:[%s10427_s25 + $0x1990] sm:$0xff]  ;;  %v1215_v50 = vld [vmem:[%s10427_s25 + $0x1b38] sm:$0xff] }
 0x420   : > { %v1166_v39 = vld [vmem:[%s10427_s25 + $0x19b0] sm:$0xff] }
 0x421   : > { %v9525_v51 = vcombine.low %v1162_v22, %v1166_v39 }
 0x422   : > { %7946 = vmatpush1.bf16.msra.mxu0 %v9461_v44  ;;  %8315 = vmatpush1.bf16.msra.mxu1 %v9463_v26  ;;  %v9526_v44 = vcombine.high %v1162_v22, %v1166_v39  ;;  %v9528_v26 = vcombine.high %v1163_v56, %v1167_v41  ;;  %v1219_v22 = vld [vmem:[%s10427_s25 + $0x1b58] sm:$0xff]  ;;  %v9575_v41 = vcombine.low %v1211_v30, %v1215_v50 }
 0x423   : > { %7947 = vmatprep.subr.bf16.mxu0 %v9470_v45  ;;  %8316 = vmatprep.subr.bf16.mxu1 %v9472_v48  ;;  %v1170_v45 = vld [vmem:[%s10427_s25 + $0x19d0] sm:$0xff]  ;;  %v1223_v39 = vld [vmem:[%s10427_s25 + $0x1b78] sm:$0xff] }
 0x424   : > { %v1174_v48 = vld [vmem:[%s10427_s25 + $0x19f0] sm:$0xff] }
 0x425   : > { %v9533_v58 = vcombine.low %v1170_v45, %v1174_v48 }
 0x426   : > { %7948 = vmatpush1.bf16.msra.mxu0 %v9469_v53  ;;  %8317 = vmatpush1.bf16.msra.mxu1 %v9471_v20  ;;  %v9534_v53 = vcombine.high %v1170_v45, %v1174_v48  ;;  %v9536_v20 = vcombine.high %v1171_v49, %v1175_v2  ;;  %v1227_v45 = vld [vmem:[%s10427_s25 + $0x1b98] sm:$0xff]  ;;  %v9583_v2 = vcombine.low %v1219_v22, %v1223_v39 }
 0x427   : > { %7958 = vmatprep.subr.bf16.mxu0 %v9478_v57  ;;  %8327 = vmatprep.subr.bf16.mxu1 %v9480_v61  ;;  %v1178_v57 = vld [vmem:[%s10427_s25 + $0x1a10] sm:$0xff]  ;;  %v1231_v48 = vld [vmem:[%s10427_s25 + $0x1bb8] sm:$0xff] }
 0x428   : > { %v1182_v61 = vld [vmem:[%s10427_s25 + $0x1a30] sm:$0xff] }
 0x429   : > { %7950 = vmatmul.mubr.bf16.vlgmr.msra.gmra.mrb[4].mxu0 %v10940_v47  ;;  %8319 = vmatmul.mubr.bf16.vlgmr.msra.gmra.mrb[4].mxu1 %v10940_v47  ;;  %v9493_v47 = vcombine.low %v1130_v3, %v1134_v4  ;;  %v1187_v3 = vld [vmem:[%s10427_s25 + $0x1a58] sm:$0xff]  ;;  %v9541_v5 = vcombine.low %v1178_v57, %v1182_v61 }
 0x42a   : > { %7959 = vmatpush1.bf16.msra.mxu0 %v9477_v17  ;;  %8328 = vmatpush1.bf16.msra.mxu1 %v9479_v63  ;;  %v9542_v17 = vcombine.high %v1178_v57, %v1182_v61  ;;  %v9544_v63 = vcombine.high %v1179_v62, %v1183_v55  ;;  %v1191_v4 = vld [vmem:[%s10427_s25 + $0x1a78] sm:$0xff]  ;;  %v9591_v55 = vcombine.low %v1227_v45, %v1231_v48 }
 0x42b   : > { %7960 = vmatprep.subr.bf16.mxu0 %v9486_v0  ;;  %8329 = vmatprep.subr.bf16.mxu1 %v9488_v1  ;;  %v1186_v0 = vld [vmem:[%s10427_s25 + $0x1a50] sm:$0xff]  ;;  %v1235_v57 = vld [vmem:[%s10427_s25 + $0x1bd8] sm:$0xff] }
 0x42c   : > { %7990 = vmatprep.mubr.bf16.mxu0 %v10953_v59  ;;  %8359 = vmatprep.mubr.bf16.mxu1 %v10953_v59  ;;  %v9503_v59 = vcombine.low %v1139_v25, %v1143_v11  ;;  %v1190_v1 = vld [vmem:[%s10427_s25 + $0x1a70] sm:$0xff]  ;;  %v9551_v11 = vcombine.low %v1187_v3, %v1191_v4  ;;  %v1239_v61 = vld [vmem:[%s10427_s25 + $0x1bf8] sm:$0xff] }
 0x42d   : > { %v9549_v25 = vcombine.low %v1186_v0, %v1190_v1 }
 0x42e   : > { %7961 = vmatpush1.bf16.msra.mxu0 %v9485_v7  ;;  %8330 = vmatpush1.bf16.msra.mxu1 %v9487_v28  ;;  %v9550_v7 = vcombine.high %v1186_v0, %v1190_v1  ;;  %v9552_v28 = vcombine.high %v1187_v3, %v1191_v4  ;;  %v1243_v0 = vld [vmem:[%s10427_s25 + $0x1c18] sm:$0xff]  ;;  %v9599_v4 = vcombine.low %v1235_v57, %v1239_v61 }
 0x42f   : > { %7962 = vmatprep.subr.bf16.mxu0 %v9494_v32  ;;  %8331 = vmatprep.subr.bf16.mxu1 %v9496_v8  ;;  %v1194_v32 = vld [vmem:[%s10427_s25 + $0x1a90] sm:$0xff]  ;;  %v1247_v1 = vld [vmem:[%s10427_s25 + $0x1c38] sm:$0xff] }
 0x430   : > { %v1198_v8 = vld [vmem:[%s10427_s25 + $0x1ab0] sm:$0xff] }
 0x431   : > { %v9557_v60 = vcombine.low %v1194_v32, %v1198_v8 }
 0x432   : > { %7963 = vmatpush1.bf16.msra.mxu0 %v9493_v47  ;;  %8332 = vmatpush1.bf16.msra.mxu1 %v9495_v14  ;;  %v9558_v47 = vcombine.high %v1194_v32, %v1198_v8  ;;  %v9560_v14 = vcombine.high %v1195_v9, %v1199_v10  ;;  %v1251_v32 = vld [vmem:[%s10427_s25 + $0x1c58] sm:$0xff]  ;;  %v9607_v10 = vcombine.low %v1243_v0, %v1247_v1 }
 0x433   : > { %7964 = vmatprep.subr.bf16.mxu0 %v9502_v15  ;;  %8333 = vmatprep.subr.bf16.mxu1 %v9504_v18  ;;  %v1202_v15 = vld [vmem:[%s10427_s25 + $0x1ad0] sm:$0xff]  ;;  %v1255_v8 = vld [vmem:[%s10427_s25 + $0x1c78] sm:$0xff] }
 0x434   : > { %v1206_v18 = vld [vmem:[%s10427_s25 + $0x1af0] sm:$0xff] }
 0x435   : > { %v9565_v16 = vcombine.low %v1202_v15, %v1206_v18 }
 0x436   : > { %7965 = vmatpush1.bf16.msra.mxu0 %v9501_v29  ;;  %8334 = vmatpush1.bf16.msra.mxu1 %v9503_v59  ;;  %v9566_v29 = vcombine.high %v1202_v15, %v1206_v18  ;;  %v9568_v59 = vcombine.high %v1203_v19, %v1207_v24  ;;  %v1259_v15 = vld [vmem:[%s10427_s25 + $0x1c98] sm:$0xff]  ;;  %v9615_v24 = vcombine.low %v1251_v32, %v1255_v8 }
 0x437   : > { %7966 = vmatprep.subr.bf16.mxu0 %v9510_v13  ;;  %8335 = vmatprep.subr.bf16.mxu1 %v9512_v37  ;;  %v1210_v13 = vld [vmem:[%s10427_s25 + $0x1b10] sm:$0xff]  ;;  %v1263_v18 = vld [vmem:[%s10427_s25 + $0x1cb8] sm:$0xff] }
 0x438   : > { %v1214_v37 = vld [vmem:[%s10427_s25 + $0x1b30] sm:$0xff] }
 0x439   : > { %v9573_v56 = vcombine.low %v1210_v13, %v1214_v37 }
 0x43a   : > { %7967 = vmatpush1.bf16.msra.mxu0 %v9509_v34  ;;  %8336 = vmatpush1.bf16.msra.mxu1 %v9511_v35  ;;  %v9574_v34 = vcombine.high %v1210_v13, %v1214_v37  ;;  %v9576_v35 = vcombine.high %v1211_v30, %v1215_v50  ;;  %v1267_v13 = vld [vmem:[%s10427_s25 + $0x1cd8] sm:$0xff]  ;;  %v9623_v30 = vcombine.low %v1259_v15, %v1263_v18 }
 0x43b   : > { %7968 = vmatprep.subr.bf16.mxu0 %v9518_v36  ;;  %8337 = vmatprep.subr.bf16.mxu1 %v9520_v46  ;;  %v1218_v36 = vld [vmem:[%s10427_s25 + $0x1b50] sm:$0xff]  ;;  %v1271_v37 = vld [vmem:[%s10427_s25 + $0x1cf8] sm:$0xff] }
 0x43c   : > { %v1222_v46 = vld [vmem:[%s10427_s25 + $0x1b70] sm:$0xff] }
 0x43d   : > { %v9581_v49 = vcombine.low %v1218_v36, %v1222_v46 }
 0x43e   : > { %7969 = vmatpush1.bf16.msra.mxu0 %v9517_v42  ;;  %8338 = vmatpush1.bf16.msra.mxu1 %v9519_v43  ;;  %v9582_v42 = vcombine.high %v1218_v36, %v1222_v46  ;;  %v9584_v43 = vcombine.high %v1219_v22, %v1223_v39  ;;  %v1279_v36 = vld [vmem:[%s10427_s25 + $0x1d38] sm:$0xff] }
 0x43f   : > { %7970 = vmatprep.subr.bf16.mxu0 %v9526_v44  ;;  %8339 = vmatprep.subr.bf16.mxu1 %v9528_v26  ;;  %v1226_v44 = vld [vmem:[%s10427_s25 + $0x1b90] sm:$0xff] }
 0x440   : > { %v1230_v26 = vld [vmem:[%s10427_s25 + $0x1bb0] sm:$0xff] }
 0x441   : > { %v9589_v62 = vcombine.low %v1226_v44, %v1230_v26 }
 0x442   : > { %7971 = vmatpush1.bf16.msra.mxu0 %v9525_v51  ;;  %8340 = vmatpush1.bf16.msra.mxu1 %v9527_v52  ;;  %v9590_v51 = vcombine.high %v1226_v44, %v1230_v26  ;;  %v9592_v52 = vcombine.high %v1227_v45, %v1231_v48 }
 0x443   : > { %7972 = vmatprep.subr.bf16.mxu0 %v9534_v53  ;;  %8341 = vmatprep.subr.bf16.mxu1 %v9536_v20  ;;  %v1234_v53 = vld [vmem:[%s10427_s25 + $0x1bd0] sm:$0xff] }
 0x444   : > { %v1238_v20 = vld [vmem:[%s10427_s25 + $0x1bf0] sm:$0xff] }
 0x445   : > { %v9597_v3 = vcombine.low %v1234_v53, %v1238_v20 }
 0x446   : > { %7973 = vmatpush1.bf16.msra.mxu0 %v9533_v58  ;;  %8342 = vmatpush1.bf16.msra.mxu1 %v9535_v23  ;;  %v9598_v58 = vcombine.high %v1234_v53, %v1238_v20  ;;  %v9600_v23 = vcombine.high %v1235_v57, %v1239_v61 }
 0x447   : > { %7974 = vmatprep.subr.bf16.mxu0 %v9542_v17  ;;  %8343 = vmatprep.subr.bf16.mxu1 %v9544_v63  ;;  %v1242_v17 = vld [vmem:[%s10427_s25 + $0x1c10] sm:$0xff] }
 0x448   : > { %v1246_v63 = vld [vmem:[%s10427_s25 + $0x1c30] sm:$0xff] }
 0x449   : > { %v9605_v9 = vcombine.low %v1242_v17, %v1246_v63 }
 0x44a   : > { %7975 = vmatpush1.bf16.msra.mxu0 %v9541_v5  ;;  %8344 = vmatpush1.bf16.msra.mxu1 %v9543_v6  ;;  %v9606_v5 = vcombine.high %v1242_v17, %v1246_v63  ;;  %v9608_v6 = vcombine.high %v1243_v0, %v1247_v1 }
 0x44b   : > { %7976 = vmatprep.subr.bf16.mxu0 %v9550_v7  ;;  %8345 = vmatprep.subr.bf16.mxu1 %v9552_v28  ;;  %v1250_v7 = vld [vmem:[%s10427_s25 + $0x1c50] sm:$0xff] }
 0x44c   : > { %v1254_v28 = vld [vmem:[%s10427_s25 + $0x1c70] sm:$0xff] }
 0x44d   : > { %v9613_v19 = vcombine.low %v1250_v7, %v1254_v28 }
 0x44e   : > { %7977 = vmatpush1.bf16.msra.mxu0 %v9549_v25  ;;  %8346 = vmatpush1.bf16.msra.mxu1 %v9551_v11  ;;  %v9614_v25 = vcombine.high %v1250_v7, %v1254_v28  ;;  %v9616_v11 = vcombine.high %v1251_v32, %v1255_v8 }
 0x44f   : > { %7978 = vmatprep.subr.bf16.mxu0 %v9558_v47  ;;  %8347 = vmatprep.subr.bf16.mxu1 %v9560_v14  ;;  %v1258_v47 = vld [vmem:[%s10427_s25 + $0x1c90] sm:$0xff] }
 0x450   : > { %v1262_v14 = vld [vmem:[%s10427_s25 + $0x1cb0] sm:$0xff] }
 0x452   : > { %7979 = vmatpush1.bf16.msra.mxu0 %v9557_v60  ;;  %8348 = vmatpush1.bf16.msra.mxu1 %v9559_v27  ;;  %v9622_v60 = vcombine.high %v1258_v47, %v1262_v14  ;;  %v9624_v27 = vcombine.high %v1259_v15, %v1263_v18 }
 0x453   : > { %7980 = vmatprep.subr.bf16.mxu0 %v9566_v29  ;;  %8349 = vmatprep.subr.bf16.mxu1 %v9568_v59  ;;  %v1266_v29 = vld [vmem:[%s10427_s25 + $0x1cd0] sm:$0xff] }
 0x454   : > { %v1270_v59 = vld [vmem:[%s10427_s25 + $0x1cf0] sm:$0xff] }
 0x455   : > { %v9630_v50 = vcombine.high %v1266_v29, %v1270_v59  ;;  %v9629_v46 = vcombine.low %v1266_v29, %v1270_v59 }
 0x456   : > { %7981 = vmatpush1.bf16.msra.mxu0 %v9565_v16  ;;  %8350 = vmatpush1.bf16.msra.mxu1 %v9567_v33  ;;  %v9632_v16 = vcombine.high %v1267_v13, %v1271_v37  ;;  %v1274_v33 = vld [vmem:[%s10427_s25 + $0x1d10] sm:$0xff] }
 0x457   : > { %7982 = vmatprep.subr.bf16.mxu0 %v9574_v34  ;;  %8351 = vmatprep.subr.bf16.mxu1 %v9576_v35  ;;  %v1278_v34 = vld [vmem:[%s10427_s25 + $0x1d30] sm:$0xff]  ;;  %v1275_v35 = vld [vmem:[%s10427_s25 + $0x1d18] sm:$0xff] }
 0x458   : > { %v9638_v22 = vcombine.high %v1274_v33, %v1278_v34  ;;  %v9640_v39 = vcombine.high %v1275_v35, %v1279_v36  ;;  %v9637_v44 = vcombine.low %v1274_v33, %v1278_v34  ;;  %v9639_v26 = vcombine.low %v1275_v35, %v1279_v36 }
 0x45a   : > { %7983 = vmatpush1.bf16.msra.mxu0 %v9573_v56  ;;  %8352 = vmatpush1.bf16.msra.mxu1 %v9575_v41  ;;  %v1282_v56 = vld [vmem:[%s10427_s25 + $0x1d50] sm:$0xff] }
 0x45b   : > { %7984 = vmatprep.subr.bf16.mxu0 %v9582_v42  ;;  %8353 = vmatprep.subr.bf16.mxu1 %v9584_v43  ;;  %v1286_v41 = vld [vmem:[%s10427_s25 + $0x1d70] sm:$0xff]  ;;  %v1283_v42 = vld [vmem:[%s10427_s25 + $0x1d58] sm:$0xff] }
 0x45c   : > { %v1287_v43 = vld [vmem:[%s10427_s25 + $0x1d78] sm:$0xff]  ;;  %v9646_v45 = vcombine.high %v1282_v56, %v1286_v41  ;;  %v9645_v53 = vcombine.low %v1282_v56, %v1286_v41 }
 0x45d   : > { %v9648_v48 = vcombine.high %v1283_v42, %v1287_v43  ;;  %v9647_v20 = vcombine.low %v1283_v42, %v1287_v43 }
 0x45e   : > { %7985 = vmatpush1.bf16.msra.mxu0 %v9581_v49  ;;  %8354 = vmatpush1.bf16.msra.mxu1 %v9583_v2  ;;  %v1290_v49 = vld [vmem:[%s10427_s25 + $0x1d90] sm:$0xff] }
 0x45f   : > { %7986 = vmatprep.subr.bf16.mxu0 %v9590_v51  ;;  %8355 = vmatprep.subr.bf16.mxu1 %v9592_v52  ;;  %v1294_v2 = vld [vmem:[%s10427_s25 + $0x1db0] sm:$0xff]  ;;  %v1291_v51 = vld [vmem:[%s10427_s25 + $0x1d98] sm:$0xff] }
 0x460   : > { %v1295_v52 = vld [vmem:[%s10427_s25 + $0x1db8] sm:$0xff]  ;;  %v9654_v57 = vcombine.high %v1290_v49, %v1294_v2  ;;  %v9653_v17 = vcombine.low %v1290_v49, %v1294_v2 }
 0x461   : > { %v9656_v61 = vcombine.high %v1291_v51, %v1295_v52  ;;  %v9655_v63 = vcombine.low %v1291_v51, %v1295_v52 }
 0x462   : > { %7987 = vmatpush1.bf16.msra.mxu0 %v9589_v62  ;;  %8356 = vmatpush1.bf16.msra.mxu1 %v9591_v55  ;;  %v1298_v62 = vld [vmem:[%s10427_s25 + $0x1dd0] sm:$0xff] }
 0x463   : > { %7988 = vmatprep.subr.bf16.mxu0 %v9598_v58  ;;  %8357 = vmatprep.subr.bf16.mxu1 %v9600_v23  ;;  %v1302_v55 = vld [vmem:[%s10427_s25 + $0x1df0] sm:$0xff]  ;;  %v1299_v58 = vld [vmem:[%s10427_s25 + $0x1dd8] sm:$0xff] }
 0x464   : > { %v1303_v23 = vld [vmem:[%s10427_s25 + $0x1df8] sm:$0xff]  ;;  %v9662_v0 = vcombine.high %v1298_v62, %v1302_v55  ;;  %v9661_v7 = vcombine.low %v1298_v62, %v1302_v55 }
 0x465   : > { %v9664_v1 = vcombine.high %v1299_v58, %v1303_v23  ;;  %v9663_v28 = vcombine.low %v1299_v58, %v1303_v23 }
 0x466   : > { %7989 = vmatpush1.bf16.msra.mxu0 %v9597_v3  ;;  %8358 = vmatpush1.bf16.msra.mxu1 %v9599_v4  ;;  %v1306_v3 = vld [vmem:[%s10427_s25 + $0x1e10] sm:$0xff] }
 0x467   : > { %7999 = vmatprep.subr.bf16.mxu0 %v9606_v5  ;;  %8368 = vmatprep.subr.bf16.mxu1 %v9608_v6  ;;  %v1310_v4 = vld [vmem:[%s10427_s25 + $0x1e30] sm:$0xff]  ;;  %v1307_v5 = vld [vmem:[%s10427_s25 + $0x1e18] sm:$0xff] }
 0x468   : > { %v1311_v6 = vld [vmem:[%s10427_s25 + $0x1e38] sm:$0xff]  ;;  %v9670_v32 = vcombine.high %v1306_v3, %v1310_v4 }
 0x469   : > { %7991 = vmatmul.mubr.bf16.vlgmr.msra.gmra.mrb[4].mxu0 %v11021_v54  ;;  %8360 = vmatmul.mubr.bf16.vlgmr.msra.gmra.mrb[4].mxu1 %v11021_v54  ;;  %v9621_v54 = vcombine.low %v1258_v47, %v1262_v14  ;;  %v9672_v8 = vcombine.high %v1307_v5, %v1311_v6  ;;  %v9669_v47 = vcombine.low %v1306_v3, %v1310_v4 }
 0x46a   : > { %8000 = vmatpush1.bf16.msra.mxu0 %v9605_v9  ;;  %8369 = vmatpush1.bf16.msra.mxu1 %v9607_v10  ;;  %v1314_v9 = vld [vmem:[%s10427_s25 + $0x1e50] sm:$0xff]  ;;  %v9671_v14 = vcombine.low %v1307_v5, %v1311_v6 }
 0x46b   : > { %8001 = vmatprep.subr.bf16.mxu0 %v9614_v25  ;;  %8370 = vmatprep.subr.bf16.mxu1 %v9616_v11  ;;  %v1318_v10 = vld [vmem:[%s10427_s25 + $0x1e70] sm:$0xff]  ;;  %v1315_v25 = vld [vmem:[%s10427_s25 + $0x1e58] sm:$0xff] }
 0x46c   : > { %8031 = vmatprep.mubr.bf16.mxu0 %v11034_v31  ;;  %8400 = vmatprep.mubr.bf16.mxu1 %v11034_v31  ;;  %v9631_v31 = vcombine.low %v1267_v13, %v1271_v37  ;;  %v1319_v11 = vld [vmem:[%s10427_s25 + $0x1e78] sm:$0xff]  ;;  %v9678_v15 = vcombine.high %v1314_v9, %v1318_v10  ;;  %v9677_v29 = vcombine.low %v1314_v9, %v1318_v10 }
 0x46d   : > { %v9680_v18 = vcombine.high %v1315_v25, %v1319_v11  ;;  %v9679_v59 = vcombine.low %v1315_v25, %v1319_v11 }
 0x46e   : > { %8002 = vmatpush1.bf16.msra.mxu0 %v9613_v19  ;;  %8371 = vmatpush1.bf16.msra.mxu1 %v9615_v24  ;;  %v1322_v19 = vld [vmem:[%s10427_s25 + $0x1e90] sm:$0xff] }
 0x46f   : > { %8003 = vmatprep.subr.bf16.mxu0 %v9622_v60  ;;  %8372 = vmatprep.subr.bf16.mxu1 %v9624_v27  ;;  %v1326_v24 = vld [vmem:[%s10427_s25 + $0x1eb0] sm:$0xff]  ;;  %v1323_v60 = vld [vmem:[%s10427_s25 + $0x1e98] sm:$0xff] }
 0x470   : > { %v1327_v27 = vld [vmem:[%s10427_s25 + $0x1eb8] sm:$0xff]  ;;  %v9686_v13 = vcombine.high %v1322_v19, %v1326_v24  ;;  %v9685_v33 = vcombine.low %v1322_v19, %v1326_v24 }
 0x471   : > { %v9688_v37 = vcombine.high %v1323_v60, %v1327_v27  ;;  %v9687_v34 = vcombine.low %v1323_v60, %v1327_v27 }
 0x472   : > { %8004 = vmatpush1.bf16.msra.mxu0 %v9621_v54  ;;  %8373 = vmatpush1.bf16.msra.mxu1 %v9623_v30  ;;  %v1330_v54 = vld [vmem:[%s10427_s25 + $0x1ed0] sm:$0xff] }
 0x473   : > { %8005 = vmatprep.subr.bf16.mxu0 %v9630_v50  ;;  %8374 = vmatprep.subr.bf16.mxu1 %v9632_v16  ;;  %v1334_v30 = vld [vmem:[%s10427_s25 + $0x1ef0] sm:$0xff]  ;;  %v1331_v50 = vld [vmem:[%s10427_s25 + $0x1ed8] sm:$0xff] }
 0x474   : > { %v1335_v16 = vld [vmem:[%s10427_s25 + $0x1ef8] sm:$0xff]  ;;  %v9694_v35 = vcombine.high %v1330_v54, %v1334_v30  ;;  %v9693_v56 = vcombine.low %v1330_v54, %v1334_v30 }
 0x475   : > { %v9696_v36 = vcombine.high %v1331_v50, %v1335_v16  ;;  %v9695_v41 = vcombine.low %v1331_v50, %v1335_v16 }
 0x476   : > { %8006 = vmatpush1.bf16.msra.mxu0 %v9629_v46  ;;  %8375 = vmatpush1.bf16.msra.mxu1 %v9631_v31  ;;  %v1338_v46 = vld [vmem:[%s10427_s25 + $0x1f10] sm:$0xff] }
 0x477   : > { %8007 = vmatprep.subr.bf16.mxu0 %v9638_v22  ;;  %8376 = vmatprep.subr.bf16.mxu1 %v9640_v39  ;;  %v1342_v31 = vld [vmem:[%s10427_s25 + $0x1f30] sm:$0xff]  ;;  %v1339_v22 = vld [vmem:[%s10427_s25 + $0x1f18] sm:$0xff] }
 0x478   : > { %v1343_v39 = vld [vmem:[%s10427_s25 + $0x1f38] sm:$0xff]  ;;  %v9702_v42 = vcombine.high %v1338_v46, %v1342_v31  ;;  %v9701_v49 = vcombine.low %v1338_v46, %v1342_v31 }
 0x479   : > { %v9704_v43 = vcombine.high %v1339_v22, %v1343_v39  ;;  %v9703_v2 = vcombine.low %v1339_v22, %v1343_v39  ;;  %v1402_v39 = vld [vmem:[%s10427_s25 + $0x2110] sm:$0xff] }
 0x47a   : > { %8008 = vmatpush1.bf16.msra.mxu0 %v9637_v44  ;;  %8377 = vmatpush1.bf16.msra.mxu1 %v9639_v26  ;;  %v1346_v44 = vld [vmem:[%s10427_s25 + $0x1f50] sm:$0xff] }
 0x47b   : > { %8009 = vmatprep.subr.bf16.mxu0 %v9646_v45  ;;  %8378 = vmatprep.subr.bf16.mxu1 %v9648_v48  ;;  %v1350_v26 = vld [vmem:[%s10427_s25 + $0x1f70] sm:$0xff]  ;;  %v1347_v45 = vld [vmem:[%s10427_s25 + $0x1f58] sm:$0xff] }
 0x47c   : > { %v1351_v48 = vld [vmem:[%s10427_s25 + $0x1f78] sm:$0xff]  ;;  %v9710_v51 = vcombine.high %v1346_v44, %v1350_v26  ;;  %v9709_v62 = vcombine.low %v1346_v44, %v1350_v26 }
 0x47d   : > { %v9712_v52 = vcombine.high %v1347_v45, %v1351_v48  ;;  %v9711_v55 = vcombine.low %v1347_v45, %v1351_v48  ;;  %v1410_v45 = vld [vmem:[%s10427_s25 + $0x2150] sm:$0xff] }
 0x47e   : > { %8010 = vmatpush1.bf16.msra.mxu0 %v9645_v53  ;;  %8379 = vmatpush1.bf16.msra.mxu1 %v9647_v20  ;;  %v1354_v53 = vld [vmem:[%s10427_s25 + $0x1f90] sm:$0xff] }
 0x47f   : > { %8011 = vmatprep.subr.bf16.mxu0 %v9654_v57  ;;  %8380 = vmatprep.subr.bf16.mxu1 %v9656_v61  ;;  %v1358_v20 = vld [vmem:[%s10427_s25 + $0x1fb0] sm:$0xff]  ;;  %v1355_v57 = vld [vmem:[%s10427_s25 + $0x1f98] sm:$0xff] }
 0x480   : > { %v1359_v61 = vld [vmem:[%s10427_s25 + $0x1fb8] sm:$0xff]  ;;  %v9718_v58 = vcombine.high %v1354_v53, %v1358_v20  ;;  %v9717_v3 = vcombine.low %v1354_v53, %v1358_v20  ;;  %v1414_v48 = vld [vmem:[%s10427_s25 + $0x2170] sm:$0xff] }
 0x481   : > { %v9720_v23 = vcombine.high %v1355_v57, %v1359_v61  ;;  %v9719_v4 = vcombine.low %v1355_v57, %v1359_v61  ;;  %v9774_v53 = vcombine.high %v1410_v45, %v1414_v48  ;;  %v1418_v57 = vld [vmem:[%s10427_s25 + $0x2190] sm:$0xff] }
 0x482   : > { %8012 = vmatpush1.bf16.msra.mxu0 %v9653_v17  ;;  %8381 = vmatpush1.bf16.msra.mxu1 %v9655_v63  ;;  %v1362_v17 = vld [vmem:[%s10427_s25 + $0x1fd0] sm:$0xff] }
 0x483   : > { %8013 = vmatprep.subr.bf16.mxu0 %v9662_v0  ;;  %8382 = vmatprep.subr.bf16.mxu1 %v9664_v1  ;;  %v1366_v63 = vld [vmem:[%s10427_s25 + $0x1ff0] sm:$0xff]  ;;  %v1363_v0 = vld [vmem:[%s10427_s25 + $0x1fd8] sm:$0xff] }
 0x484   : > { %v1367_v1 = vld [vmem:[%s10427_s25 + $0x1ff8] sm:$0xff]  ;;  %v9726_v5 = vcombine.high %v1362_v17, %v1366_v63  ;;  %v9725_v9 = vcombine.low %v1362_v17, %v1366_v63  ;;  %v1422_v61 = vld [vmem:[%s10427_s25 + $0x21b0] sm:$0xff] }
 0x485   : > { %v9728_v6 = vcombine.high %v1363_v0, %v1367_v1  ;;  %v9727_v10 = vcombine.low %v1363_v0, %v1367_v1  ;;  %v9782_v17 = vcombine.high %v1418_v57, %v1422_v61  ;;  %v1426_v0 = vld [vmem:[%s10427_s25 + $0x21d0] sm:$0xff] }
 0x486   : > { %8014 = vmatpush1.bf16.msra.mxu0 %v9661_v7  ;;  %8383 = vmatpush1.bf16.msra.mxu1 %v9663_v28  ;;  %v1370_v7 = vld [vmem:[%s10427_s25 + $0x2010] sm:$0xff] }
 0x487   : > { %8015 = vmatprep.subr.bf16.mxu0 %v9670_v32  ;;  %8384 = vmatprep.subr.bf16.mxu1 %v9672_v8  ;;  %v1374_v28 = vld [vmem:[%s10427_s25 + $0x2030] sm:$0xff]  ;;  %v1371_v32 = vld [vmem:[%s10427_s25 + $0x2018] sm:$0xff] }
 0x488   : > { %v1375_v8 = vld [vmem:[%s10427_s25 + $0x2038] sm:$0xff]  ;;  %v9734_v25 = vcombine.high %v1370_v7, %v1374_v28  ;;  %v9733_v19 = vcombine.low %v1370_v7, %v1374_v28  ;;  %v1430_v1 = vld [vmem:[%s10427_s25 + $0x21f0] sm:$0xff] }
 0x489   : > { %v9736_v11 = vcombine.high %v1371_v32, %v1375_v8  ;;  %v9735_v24 = vcombine.low %v1371_v32, %v1375_v8  ;;  %v9790_v7 = vcombine.high %v1426_v0, %v1430_v1  ;;  %v9789_v32 = vcombine.low %v1426_v0, %v1430_v1 }
 0x48a   : > { %8016 = vmatpush1.bf16.msra.mxu0 %v9669_v47  ;;  %8385 = vmatpush1.bf16.msra.mxu1 %v9671_v14  ;;  %v1378_v47 = vld [vmem:[%s10427_s25 + $0x2050] sm:$0xff] }
 0x48b   : > { %8017 = vmatprep.subr.bf16.mxu0 %v9678_v15  ;;  %8386 = vmatprep.subr.bf16.mxu1 %v9680_v18  ;;  %v1382_v14 = vld [vmem:[%s10427_s25 + $0x2070] sm:$0xff]  ;;  %v1379_v15 = vld [vmem:[%s10427_s25 + $0x2058] sm:$0xff] }
 0x48c   : > { %v1383_v18 = vld [vmem:[%s10427_s25 + $0x2078] sm:$0xff]  ;;  %v9742_v60 = vcombine.high %v1378_v47, %v1382_v14  ;;  %v9741_v54 = vcombine.low %v1378_v47, %v1382_v14  ;;  %v1464_v47 = vsub.s32 7, %v11363_v38  ;;  %v10040_v14 = vld [vmem:[%s10435_s7] sm:$0xff] }
 0x48d   : > { %v9744_v27 = vcombine.high %v1379_v15, %v1383_v18  ;;  %v9743_v30 = vcombine.low %v1379_v15, %v1383_v18 }
 0x48e   : > { %8018 = vmatpush1.bf16.msra.mxu0 %v9677_v29  ;;  %8387 = vmatpush1.bf16.msra.mxu1 %v9679_v59  ;;  %v1386_v29 = vld [vmem:[%s10427_s25 + $0x2090] sm:$0xff] }
 0x48f   : > { %8019 = vmatprep.subr.bf16.mxu0 %v9686_v13  ;;  %8388 = vmatprep.subr.bf16.mxu1 %v9688_v37  ;;  %v1390_v59 = vld [vmem:[%s10427_s25 + $0x20b0] sm:$0xff]  ;;  %v1387_v13 = vld [vmem:[%s10427_s25 + $0x2098] sm:$0xff] }
 0x490   : > { %v1391_v37 = vld [vmem:[%s10427_s25 + $0x20b8] sm:$0xff]  ;;  %v9750_v50 = vcombine.high %v1386_v29, %v1390_v59 }
 0x491   : > { %v9752_v16 = vcombine.high %v1387_v13, %v1391_v37  ;;  %v9751_v46 = vcombine.low %v1387_v13, %v1391_v37  ;;  %v10041_v13 = vld [vmem:[%s10448_s24] sm:$0xff] }
 0x492   : > { %8020 = vmatpush1.bf16.msra.mxu0 %v9685_v33  ;;  %8389 = vmatpush1.bf16.msra.mxu1 %v9687_v34  ;;  %v1394_v33 = vld [vmem:[%s10427_s25 + $0x20d0] sm:$0xff] }
 0x493   : > { %8021 = vmatprep.subr.bf16.mxu0 %v9694_v35  ;;  %8390 = vmatprep.subr.bf16.mxu1 %v9696_v36  ;;  %v1398_v34 = vld [vmem:[%s10427_s25 + $0x20f0] sm:$0xff]  ;;  %v1395_v35 = vld [vmem:[%s10427_s25 + $0x20d8] sm:$0xff] }
 0x494   : > { %v1399_v36 = vld [vmem:[%s10427_s25 + $0x20f8] sm:$0xff]  ;;  %v9758_v31 = vcombine.high %v1394_v33, %v1398_v34 }
 0x495   : > { %v9760_v22 = vcombine.high %v1395_v35, %v1399_v36 }
 0x496   : > { %8022 = vmatpush1.bf16.msra.mxu0 %v9693_v56  ;;  %8391 = vmatpush1.bf16.msra.mxu1 %v9695_v41  ;;  %v1406_v56 = vld [vmem:[%s10427_s25 + $0x2130] sm:$0xff]  ;;  %v1403_v41 = vld [vmem:[%s10427_s25 + $0x2118] sm:$0xff] }
 0x497   : > { %8023 = vmatprep.subr.bf16.mxu0 %v9702_v42  ;;  %8392 = vmatprep.subr.bf16.mxu1 %v9704_v43  ;;  %v1407_v42 = vld [vmem:[%s10427_s25 + $0x2138] sm:$0xff]  ;;  %v9757_v43 = vcombine.low %v1394_v33, %v1398_v34  ;;  %v9766_v44 = vcombine.high %v1402_v39, %v1406_v56 }
 0x498   : > { %v9768_v26 = vcombine.high %v1403_v41, %v1407_v42 }
 0x49a   : > { %8024 = vmatpush1.bf16.msra.mxu0 %v9701_v49  ;;  %8393 = vmatpush1.bf16.msra.mxu1 %v9703_v2  ;;  %v1411_v49 = vld [vmem:[%s10427_s25 + $0x2158] sm:$0xff] }
 0x49b   : > { %8025 = vmatprep.subr.bf16.mxu0 %v9710_v51  ;;  %8394 = vmatprep.subr.bf16.mxu1 %v9712_v52  ;;  %v1415_v2 = vld [vmem:[%s10427_s25 + $0x2178] sm:$0xff]  ;;  %v9765_v51 = vcombine.low %v1402_v39, %v1406_v56  ;;  %v9767_v52 = vcombine.low %v1403_v41, %v1407_v42 }
 0x49c   : > { %v9776_v20 = vcombine.high %v1411_v49, %v1415_v2 }
 0x49e   : > { %8026 = vmatpush1.bf16.msra.mxu0 %v9709_v62  ;;  %8395 = vmatpush1.bf16.msra.mxu1 %v9711_v55  ;;  %v1419_v62 = vld [vmem:[%s10427_s25 + $0x2198] sm:$0xff] }
 0x49f   : > { %8027 = vmatprep.subr.bf16.mxu0 %v9718_v58  ;;  %8396 = vmatprep.subr.bf16.mxu1 %v9720_v23  ;;  %v1423_v55 = vld [vmem:[%s10427_s25 + $0x21b8] sm:$0xff]  ;;  %v9773_v58 = vcombine.low %v1410_v45, %v1414_v48  ;;  %v9775_v23 = vcombine.low %v1411_v49, %v1415_v2 }
 0x4a0   : > { %v9784_v63 = vcombine.high %v1419_v62, %v1423_v55 }
 0x4a2   : > { %8028 = vmatpush1.bf16.msra.mxu0 %v9717_v3  ;;  %8397 = vmatpush1.bf16.msra.mxu1 %v9719_v4  ;;  %v1427_v3 = vld [vmem:[%s10427_s25 + $0x21d8] sm:$0xff] }
 0x4a3   : > { %8029 = vmatprep.subr.bf16.mxu0 %v9726_v5  ;;  %8398 = vmatprep.subr.bf16.mxu1 %v9728_v6  ;;  %v1431_v4 = vld [vmem:[%s10427_s25 + $0x21f8] sm:$0xff]  ;;  %v9781_v5 = vcombine.low %v1418_v57, %v1422_v61  ;;  %v9783_v6 = vcombine.low %v1419_v62, %v1423_v55 }
 0x4a4   : > { %v9792_v28 = vcombine.high %v1427_v3, %v1431_v4  ;;  %v9791_v8 = vcombine.low %v1427_v3, %v1431_v4 }
 0x4a6   : > { %8030 = vmatpush1.bf16.msra.mxu0 %v9725_v9  ;;  %8399 = vmatpush1.bf16.msra.mxu1 %v9727_v10  ;;  %v10039_v9 = vld [vmem:[%s11762_s0 + $0x40] ss:$0 sps:$4 sm:$0xff]   ;;  %v1452_v10 = vsub.s32 4, %v11363_v38 }
 0x4a7   : > { %8040 = vmatprep.subr.bf16.mxu0 %v9734_v25  ;;  %8409 = vmatprep.subr.bf16.mxu1 %v9736_v11  ;;  %v1460_v25 = vsub.s32 6, %v11363_v38  ;;  %v1456_v11 = vsub.s32 5, %v11363_v38 }
 0x4a8   : > { %v1453_v15 = vrot.slane %v10040_v14, %v1452_v10  ;;  %v8496_v37 = vrot.slane %v10041_v13, %v1452_v10 }
 0x4a9   : > { %8032 = vmatmul.mubr.bf16.vlgmr.msra.gmra.mrb[4].mxu0 %v11102_v40  ;;  %8401 = vmatmul.mubr.bf16.vlgmr.msra.gmra.mrb[4].mxu1 %v11102_v40  ;;  %v9749_v40 = vcombine.low %v1386_v29, %v1390_v59  ;;  %v1461_v18 = vrot.slane %v10040_v14, %v1460_v25  ;;  %v8500_v34 = vrot.slane %v10041_v13, %v1456_v11 }
 0x4aa   : > { %8041 = vmatpush1.bf16.msra.mxu0 %v9733_v19  ;;  %8410 = vmatpush1.bf16.msra.mxu1 %v9735_v24  ;;  %v1457_v19 = vrot.slane %v10040_v14, %v1456_v11  ;;  %v1465_v24 = vrot.slane %v10040_v14, %v1464_v47  ;;  %v8504_v42 = vrot.slane %v10041_v13, %v1460_v25 }
 0x4ab   : > { %8042 = vmatprep.subr.bf16.mxu0 %v9742_v60  ;;  %8411 = vmatprep.subr.bf16.mxu1 %v9744_v27 }
 0x4ac   : > { %8072 = vmatprep.mubr.bf16.mxu0 %v10211_v21  ;;  %8441 = vmatprep.mubr.bf16.mxu1 %v10211_v21  ;;  %v9759_v21 = vcombine.low %v1395_v35, %v1399_v36 }
 0x4ae   : > { %8043 = vmatpush1.bf16.msra.mxu0 %v9741_v54  ;;  %8412 = vmatpush1.bf16.msra.mxu1 %v9743_v30 }
 0x4af   : > { %8044 = vmatprep.subr.bf16.mxu0 %v9750_v50  ;;  %8413 = vmatprep.subr.bf16.mxu1 %v9752_v16 }
 0x4b2   : > { %8045 = vmatpush1.bf16.msra.mxu0 %v9749_v40  ;;  %8414 = vmatpush1.bf16.msra.mxu1 %v9751_v46 }
 0x4b3   : > { %8046 = vmatprep.subr.bf16.mxu0 %v9758_v31  ;;  %8415 = vmatprep.subr.bf16.mxu1 %v9760_v22 }
 0x4b6   : > { %8047 = vmatpush1.bf16.msra.mxu0 %v9757_v43  ;;  %8416 = vmatpush1.bf16.msra.mxu1 %v9759_v21 }
 0x4b7   : > { %8048 = vmatprep.subr.bf16.mxu0 %v9766_v44  ;;  %8417 = vmatprep.subr.bf16.mxu1 %v9768_v26  ;;  %v8508_v44 = vrot.slane %v10041_v13, %v1464_v47 }
 0x4ba   : > { %8049 = vmatpush1.bf16.msra.mxu0 %v9765_v51  ;;  %8418 = vmatpush1.bf16.msra.mxu1 %v9767_v52 }
 0x4bb   : > { %8050 = vmatprep.subr.bf16.mxu0 %v9774_v53  ;;  %8419 = vmatprep.subr.bf16.mxu1 %v9776_v20  ;;  %v8474_v53 = vld [vmem:[%s10446_s29] sm:$0xff] }
 0x4be   : > { %8051 = vmatpush1.bf16.msra.mxu0 %v9773_v58  ;;  %8420 = vmatpush1.bf16.msra.mxu1 %v9775_v23 }
 0x4bf   : > { %8052 = vmatprep.subr.bf16.mxu0 %v9782_v17  ;;  %8421 = vmatprep.subr.bf16.mxu1 %v9784_v63 }
 0x4c2   : > { %8053 = vmatpush1.bf16.msra.mxu0 %v9781_v5  ;;  %8422 = vmatpush1.bf16.msra.mxu1 %v9783_v6 }
 0x4c3   : > { %8054 = vmatprep.subr.bf16.mxu0 %v9790_v7  ;;  %8423 = vmatprep.subr.bf16.mxu1 %v9792_v28 }
 0x4c6   : > { %8055 = vmatpush1.bf16.msra.mxu0 %v9789_v32  ;;  %8424 = vmatpush1.bf16.msra.mxu1 %v9791_v8 }
 0x4c9   : > { %8073 = vmatmul.mubr.bf16.vlgmr.msra.gmra.mrb[4].mxu0 %v10039_v9  ;;  %8442 = vmatmul.mubr.bf16.vlgmr.msra.gmra.mrb[4].mxu1 %v10039_v9 }
 0x59c   : > { %v8074_v60 = vpop.f32.mrb[4].mxu0  ;;  %v8443_v29 = vpop.f32.mrb[4].mxu1 }
 0x59d   : > { %v9802_v27 = vadd.f32 %v8074_v60, %v1453_v15  ;;  %v8076_v59 = vpop.f32.mrb[5].mxu0  ;;  %v9804_v54 = vadd.f32 %v8443_v29, %v1461_v18  ;;  %v8445_v50 = vpop.f32.mrb[5].mxu1 }
 0x59e   : > { %v9803_v30 = vadd.f32 %v8076_v59, %v1457_v19  ;;  %v8078_v16 = vpop.f32.mrb[6].mxu0  ;;  %v9805_v35 = vadd.f32 %v8445_v50, %v1465_v24  ;;  %v8447_v38 = vpop.f32.mrb[6].mxu1 }
 0x59f   : > { %vm8454_vm5 = vcmp.gt.f32.partialorder %v9802_v27, 0.0  ;;  %v8462_v33 = vmul.f32 0.2, %v9802_v27  ;;  %v8079_v36 = vpop.f32.mrb[7].mxu0  ;;  %vm8456_vm6 = vcmp.gt.f32.partialorder %v9804_v54, 0.0  ;;  %v8448_v39 = vpop.f32.mrb[7].mxu1 }
 0x5a0   : > { %v8464_v40 = vmul.f32 0.2, %v9804_v54  ;;  %vm8455_vm7 = vcmp.gt.f32.partialorder %v9803_v30, 0.0  ;;  %v8463_v46 = vmul.f32 0.2, %v9803_v30  ;;  %vm8457_vm8 = vcmp.gt.f32.partialorder %v9805_v35, 0.0 }
 0x5a1   : > { %v8470_v31 = vsel %vm8454_vm5, %v9802_v27, %v8462_v33  ;;  %v8465_v22 = vmul.f32 0.2, %v9805_v35 }
 0x5a2   : > { %v8521_v56 = vmul.f32 %v8496_v37, %v8470_v31  ;;  %v8471_v41 = vsel %vm8455_vm7, %v9803_v30, %v8463_v46  ;;  %v8472_v43 = vsel %vm8456_vm6, %v9804_v54, %v8464_v40 }
 0x5a3   : > { %v8522_v21 = vmul.f32 %v8500_v34, %v8471_v41  ;;  %v8473_v45 = vsel %vm8457_vm8, %v9805_v35, %v8465_v22  ;;  %v8523_v48 = vmul.f32 %v8504_v42, %v8472_v43 }
 0x5a4   : > { %v8528_v26 = vadd.f32 %v11396_v12, %v8521_v56  ;;  %v8524_v2 = vmul.f32 %v8508_v44, %v8473_v45 }
 0x5a6   : > { %v8529_v49 = vadd.f32 %v8528_v26, %v8522_v21 }
 0x5a8   : > { %v8530_v51 = vadd.f32 %v8529_v49, %v8523_v48 }
 0x5aa   : > { %v8531_v52 = vadd.f32 %v8530_v51, %v8524_v2 }
 0x5ac   : > { %8532 = vadd.xlane.f32.xlu0 %v8531_v52 }
 0x639   : > { %v8533_v20 = vpop.xlane.xlu0 %8532 }
 0x63a   : > { %v8534_v57 = vadd.f32 %v8533_v20, %v8474_v53 }
 0x63c   : > { %8536 = vst.msk [vmem:[%s10446_s29] sm:$0xff] %vm8535_vm9, %v8534_v57 }
 0x63d PF: > { %s20_s22 = sadd.s32 1, %s10202_s22   ;;  %s11793_s18 = sld [smem:[#allocation9_spill]] }
 0x63e   : > { %p17_p0 = scmp.ge.s32.totalorder %s20_s22, 6   ;;  %s11794_s19 = sld [smem:[#allocation10_spill]] }
 0x63f   : > { %s11795_s20 = sld [smem:[#allocation11_spill]]  ;;  %s11796_s21 = sld [smem:[#allocation12_spill]] }
 0x640   : > { %s11797_s15 = smov %s10178_s16  ;;  %s11798_s16 = smov %s10182_s17 }
 0x641   : > { %s11799_s17 = smov %s10312_s11  ;;  %19 = sbr.rel (!%p17_p0) target bundleno = 10 (0xa), region = 104 }
 0x648   :  { %8556 = vsyncpa [#allocation3], 1 }
 0x649   :  { %8558 = vsyncpa [#allocation3 + $0x1], 1 }
 0x64a   :  { %8559 = vsyncpa [#allocation5], 1 }
 0x64b   :  { %8561 = vsyncpa [#allocation5 + $0x1], 1 }

</bundles_post_ra>
